<compile_context>
chip_gen: v6e
topology: v6e:2x2x1
jax: 0.10.0
libtpu: 0.0.40
codegen_flags: <defaults>
</compile_context>

<pallas_src>
import math
import functools

import jax
import jax.numpy as jnp
from jax import lax
from jax.experimental import pallas as pl
from jax.experimental.pallas import tpu as pltpu


# ---------------------------------------------------------------------------
# Fused recurrence kernel: grid = (batch_blocks,), full time loop inside.
# ---------------------------------------------------------------------------
def _tgcn_kernel(lx1_ref,   # (1, S, N, TB+1)  [L@x | 1] per step, original node rows
                 lx2_ref,   # (1, S, N, TB+1)  [L@x | 1] per step, [even;odd]-permuted rows
                 lc_ref,    # (N, N)  L with columns permuted to [even; odd]
                 lp_ref,    # (N, N)  L with rows AND columns permuted
                 w1_ref,    # (TB*H, 2*TB*H)  [kron(I,W1h[:, :H]) | kron(I,W1h[:, H:])]
                 w2_ref,    # (TB*H, TB*H)    kron(I, W2h)
                 e1_ref,    # (TB+1, 2*TB*H)  x-row of W1 per packed batch + bias row
                 e2_ref,    # (TB+1, TB*H)    x-row of W2 per packed batch + bias row
                 out_ref):  # (1, N, TB*H)    final hidden state, lane-dense
    f32 = jnp.float32
    S = lx1_ref.shape[1]
    N = lc_ref.shape[0]
    half = N // 2
    tbh = w2_ref.shape[0]                      # TB * H (packed lane width)

    def step(t, h):
        # h: (N, TB*H); node rows in [even; odd] (permuted) order, batches
        # packed along lanes in blocks of H.
        lx1 = lx1_ref[0, t]                                         # (N, TB+1)
        lx2 = lx2_ref[0, t]                                         # (N, TB+1)

        # ---- graph conv 1: sigmoid((L @ [x|h]) @ W1 + b1) -------------------
        # x / bias contribution is the tiny expansion matmul (off the h chain).
        lh = jnp.dot(lc_ref[...], h, preferred_element_type=f32)    # (N, TBH)
        pre = (jnp.dot(lh, w1_ref[...], preferred_element_type=f32) +
               jnp.dot(lx1, e1_ref[...], preferred_element_type=f32))  # (N, 2*TBH)
        sig = 1.0 / (1.0 + jnp.exp(-pre))        # exact sigmoid (matches torch)
        sig_a = sig[:, :tbh]                     # gc1 columns [0, H)  per batch
        sig_b = sig[:, tbh:]                     # gc1 columns [H, 2H) per batch

        # torch.chunk(.., 2, dim=1) quirk in the permuted node layout:
        #   r at permuted row q <  N/2 -> sig_a[q]        (even nodes)
        #   r at permuted row q >= N/2 -> sig_b[q - N/2]  (odd  nodes)
        #   u at permuted row q <  N/2 -> sig_a[N/2 + q]
        #   u at permuted row q >= N/2 -> sig_b[q]
        rh = jnp.concatenate([sig_a[:half] * h[:half],
                              sig_b[:half] * h[half:]], axis=0)     # r * h
        u = jnp.concatenate([sig_a[half:], sig_b[half:]], axis=0)

        # ---- graph conv 2 + GRU update --------------------------------------
        lrh = jnp.dot(lp_ref[...], rh, preferred_element_type=f32)  # (N, TBH)
        c = jnp.tanh(jnp.dot(lrh, w2_ref[...], preferred_element_type=f32) +
                     jnp.dot(lx2, e2_ref[...], preferred_element_type=f32))
        return u * h + (1.0 - u) * c

    h0 = jnp.zeros((N, tbh), dtype=f32)
    h_final = lax.fori_loop(0, S, step, h0, unroll=True)
    out_ref[0] = h_final


def _const_spec(arr):
    """Full-array block with a constant index_map: DMA'd once, VMEM-resident."""
    nd = arr.ndim
    return pl.BlockSpec(arr.shape, lambda g: (0,) * nd)


# ---------------------------------------------------------------------------
# Plain-JAX glue (one-time setup only).
# ---------------------------------------------------------------------------
def calculate_laplacian_with_self_loop(adj):
    n = adj.shape[0]
    m = adj + jnp.eye(n, dtype=adj.dtype)
    row_sum = m.sum(axis=1)
    d_inv_sqrt = jnp.power(row_sum, -0.5)
    d_inv_sqrt = jnp.where(jnp.isinf(d_inv_sqrt), 0.0, d_inv_sqrt)
    d_mat = jnp.diag(d_inv_sqrt)
    return jnp.matmul(jnp.matmul(m, d_mat).T, d_mat)


def xavier_uniform(key, shape):
    fan_in, fan_out = shape
    a = math.sqrt(6.0 / (fan_in + fan_out))
    return jax.random.uniform(key, shape, jnp.float32, -a, a)


def init_params(key, hidden_dim):
    k1, k2 = jax.random.split(key)
    H = hidden_dim
    w1 = xavier_uniform(k1, (H + 1, 2 * H))          # graph_conv1 weights
    b1 = jnp.full((1, 2 * H), 1.0, jnp.float32)      # graph_conv1 bias init = 1.0
    w2 = xavier_uniform(k2, (H + 1, H))              # graph_conv2 weights
    b2 = jnp.zeros((1, H), jnp.float32)              # graph_conv2 bias init = 0.0
    return w1, b1, w2, b2


@functools.partial(jax.jit, static_argnames=("hidden_dim",))
def tgcn_forward(inputs, adj, w1, b1, w2, b2, *, hidden_dim):
    """inputs: (B, S, N) -> (B, N, H): last-step hidden state (PyTorch layout)."""
    inputs = inputs.astype(jnp.float32)
    B, S, N = inputs.shape
    H = hidden_dim
    assert N % 2 == 0, "paired node layout requires an even node count"

    # lane-packing factor: TB batches per grid step so TB*H fills ~128 lanes
    TB = max(1, 128 // H)
    tbh = TB * H
    b_pad = ((B + TB - 1) // TB) * TB
    n_blk = b_pad // TB
    # TODO(synk): for v7x, pad n_blk to a multiple of 2 so the "parallel" batch
    # axis can be split across both TensorCores (irrelevant at n_blk == 1).

    hp = lax.Precision.HIGHEST
    lap = calculate_laplacian_with_self_loop(adj)

    # node permutation [even; odd]: makes the chunk quirk contiguous row halves
    perm = jnp.concatenate([jnp.arange(0, N, 2), jnp.arange(1, N, 2)])
    inv_perm = jnp.argsort(perm)
    lap_c = lap[:, perm]          # gc1: contracts permuted h, original rows out
    lap_p = lap[perm][:, perm]    # gc2: contracts permuted r*h, permuted rows out

    # L @ x hoisted out of the recurrence (one big, MXU-friendly matmul).
    x_pad = jnp.pad(inputs, ((0, b_pad - B), (0, 0), (0, 0)))
    lx = jnp.einsum('nm,bsm->bsn', lap, x_pad, precision=hp)   # (b_pad, S, N)
    lxp = lx[:, :, perm]

    def pack(a):      # (b_pad, S, N) -> (n_blk, S, N, TB): batches along lanes
        return a.reshape(n_blk, TB, S, N).transpose(0, 2, 3, 1)

    ones = jnp.ones((n_blk, S, N, 1), jnp.float32)     # bias column (see E1/E2)
    lx1 = jnp.concatenate([pack(lx), ones], axis=-1)   # (n_blk, S, N, TB+1)
    lx2 = jnp.concatenate([pack(lxp), ones], axis=-1)

    # block-diagonal weights: one matmul applies W to every lane-packed batch
    eye_tb = jnp.eye(TB, dtype=jnp.float32)
    w1_h = w1[1:, :]
    w2_h = w2[1:, :]
    w1_bd = jnp.concatenate([jnp.kron(eye_tb, w1_h[:, :H]),
                             jnp.kron(eye_tb, w1_h[:, H:])], axis=1)   # (tbh, 2*tbh)
    w2_bd = jnp.kron(eye_tb, w2_h)                                     # (tbh, tbh)

    # expansion matrices: row tb broadcasts batch tb's (L@x) value across its H
    # lanes scaled by the x-row of W; the last row carries the bias (paired
    # with the constant-ones column of lx1/lx2).
    e1 = jnp.concatenate(
        [jnp.concatenate([jnp.kron(eye_tb, w1[0:1, :H]),
                          jnp.kron(eye_tb, w1[0:1, H:])], axis=1),
         jnp.concatenate([jnp.tile(b1[:, :H], (1, TB)),
                          jnp.tile(b1[:, H:], (1, TB))], axis=1)],
        axis=0)                                                        # (TB+1, 2*tbh)
    e2 = jnp.concatenate([jnp.kron(eye_tb, w2[0:1, :]),
                          jnp.tile(b2, (1, TB))], axis=0)              # (TB+1, tbh)

    consts = (lap_c, lap_p, w1_bd, w2_bd, e1, e2)

    out = pl.pallas_call(
        _tgcn_kernel,
        out_shape=jax.ShapeDtypeStruct((n_blk, N, tbh), jnp.float32),
        grid=(n_blk,),
        in_specs=[pl.BlockSpec((1, S, N, TB + 1), lambda g: (g, 0, 0, 0)),
                  pl.BlockSpec((1, S, N, TB + 1), lambda g: (g, 0, 0, 0))]
                 + [_const_spec(a) for a in consts],
        out_specs=pl.BlockSpec((1, N, tbh), lambda g: (g, 0, 0)),
        compiler_params=pltpu.CompilerParams(
            dimension_semantics=("parallel",)),
    )(lx1, lx2, *consts)

    # (n_blk, N, TB*H) -> (b_pad, N, H) -> undo node permutation -> (B, N, H)
    out = out.reshape(n_blk, N, TB, H).transpose(0, 2, 1, 3).reshape(b_pad, N, H)
    return out[:, inv_perm, :][:B]


# ---------------------------------------------------------------------------
# Pure-JAX reference mirroring the PyTorch module (for a self-check).
# ---------------------------------------------------------------------------
def tgcn_reference(inputs, adj, w1, b1, w2, b2, hidden_dim):
    B, S, N = inputs.shape
    H = hidden_dim
    lap = calculate_laplacian_with_self_loop(adj)
    hp = lax.Precision.HIGHEST

    def graph_conv(x, h_flat, W, bias):
        out_dim = W.shape[1]
        h = h_flat.reshape(B, N, H)
        cat = jnp.concatenate([x[:, :, None], h], axis=2)            # (B, N, H+1)
        ax = jnp.einsum('nm,bmf->bnf', lap, cat, precision=hp)       # (B, N, H+1)
        out = jnp.einsum('bnf,fo->bno', ax, W, precision=hp) + bias  # (B, N, out)
        return out.reshape(B, N * out_dim)

    h_flat = jnp.zeros((B, N * H), jnp.float32)
    for t in range(S):
        x = inputs[:, t, :]
        conc = 1.0 / (1.0 + jnp.exp(-graph_conv(x, h_flat, w1, b1)))
        r, u = jnp.split(conc, 2, axis=1)
        c = jnp.tanh(graph_conv(x, r * h_flat, w2, b2))
        h_flat = u * h_flat + (1.0 - u) * c
    return h_flat.reshape(B, N, H)


# ---------------------------------------------------------------------------
if __name__ == "__main__":
    B, S, N, H = 2, 8, 16, 32

    key = jax.random.PRNGKey(0)
    k_adj, k_x, k_w = jax.random.split(key, 3)

    # deterministic symmetric adjacency (no self loops; laplacian adds them)
    adj_raw = jax.random.uniform(k_adj, (N, N), dtype=jnp.float32)
    adj = 0.5 * (adj_raw + adj_raw.T) * (1.0 - jnp.eye(N, dtype=jnp.float32))

    inputs = jax.random.normal(k_x, (B, S, N), dtype=jnp.float32)
    w1, b1, w2, b2 = init_params(k_w, H)

    out = tgcn_forward(inputs, adj, w1, b1, w2, b2, hidden_dim=H)
    out = jax.block_until_ready(out)

    assert out.shape == (B, N, H), out.shape
    assert out.dtype == jnp.float32
    assert bool(jnp.all(jnp.isfinite(out)))

    ref = tgcn_reference(inputs, adj, w1, b1, w2, b2, H)
    max_err = float(jnp.max(jnp.abs(out - ref)))
    assert bool(jnp.allclose(out, ref, atol=5e-2, rtol=0.0)), max_err

    print("KERNEL_OK")
</pallas_src>

<mosaic_0001>
module attributes {stable_mosaic.version = 11 : i64} {
  func.func @_tgcn_kernel(%arg0: i32, %arg1: memref<1x8x16x5xf32, #tpu.memory_space<vmem>>, %arg2: memref<1x8x16x5xf32, #tpu.memory_space<vmem>>, %arg3: memref<16x16xf32, #tpu.memory_space<vmem>>, %arg4: memref<16x16xf32, #tpu.memory_space<vmem>>, %arg5: memref<128x256xf32, #tpu.memory_space<vmem>>, %arg6: memref<128x128xf32, #tpu.memory_space<vmem>>, %arg7: memref<5x256xf32, #tpu.memory_space<vmem>>, %arg8: memref<5x128xf32, #tpu.memory_space<vmem>>, %arg9: memref<1x16x128xf32, #tpu.memory_space<vmem>>) attributes {dimension_semantics = [#tpu.dimension_semantics<parallel>], iteration_bounds = array<i64: 1>, scalar_prefetch = 0 : i64, scratch_operands = 0 : i64, tpu.core_type = #tpu.core_type<tc>, window_params = [{transform_indices = @transform_0, window_bounds = array<i64: 1, 8, 16, 5>}, {transform_indices = @transform_1, window_bounds = array<i64: 1, 8, 16, 5>}, {pipeline_mode = #tpu.pipeline_mode<synchronous>, transform_indices = @transform_2, window_bounds = array<i64: 16, 16>}, {pipeline_mode = #tpu.pipeline_mode<synchronous>, transform_indices = @transform_3, window_bounds = array<i64: 16, 16>}, {pipeline_mode = #tpu.pipeline_mode<synchronous>, transform_indices = @transform_4, window_bounds = array<i64: 128, 256>}, {pipeline_mode = #tpu.pipeline_mode<synchronous>, transform_indices = @transform_5, window_bounds = array<i64: 128, 128>}, {pipeline_mode = #tpu.pipeline_mode<synchronous>, transform_indices = @transform_6, window_bounds = array<i64: 5, 256>}, {pipeline_mode = #tpu.pipeline_mode<synchronous>, transform_indices = @transform_7, window_bounds = array<i64: 5, 128>}, {transform_indices = @transform_8, window_bounds = array<i64: 1, 16, 128>}]} {
    %cst = arith.constant 0.000000e+00 : f32
    %0 = vector.broadcast %cst : f32 to vector<16x128xf32>
    %c0_i32 = arith.constant 0 : i32
    %c0 = arith.constant 0 : index
    %1 = arith.index_cast %c0_i32 : i32 to index
    %c0_0 = arith.constant 0 : index
    %c0_1 = arith.constant 0 : index
    %2 = vector.load %arg1[%c0, %1, %c0_0, %c0_1] : memref<1x8x16x5xf32, #tpu.memory_space<vmem>>, vector<1x1x16x5xf32>
    %3 = vector.shape_cast %2 : vector<1x1x16x5xf32> to vector<16x5xf32>
    %c0_2 = arith.constant 0 : index
    %4 = arith.index_cast %c0_i32 : i32 to index
    %c0_3 = arith.constant 0 : index
    %c0_4 = arith.constant 0 : index
    %5 = vector.load %arg2[%c0_2, %4, %c0_3, %c0_4] : memref<1x8x16x5xf32, #tpu.memory_space<vmem>>, vector<1x1x16x5xf32>
    %6 = vector.shape_cast %5 : vector<1x1x16x5xf32> to vector<16x5xf32>
    %c0_5 = arith.constant 0 : index
    %c0_6 = arith.constant 0 : index
    %7 = vector.load %arg3[%c0_5, %c0_6] : memref<16x16xf32, #tpu.memory_space<vmem>>, vector<16x16xf32>
    %cst_7 = arith.constant dense<0.000000e+00> : vector<16x128xf32>
    %8 = tpu.matmul %7, %0, %cst_7 {dimension_numbers = #tpu.dot_dimension_numbers<[1], [0], [0], [1], [0, 0, 1, 1], [], []>} : vector<16x16xf32>, vector<16x128xf32>, vector<16x128xf32> -> vector<16x128xf32>
    %c0_8 = arith.constant 0 : index
    %c0_9 = arith.constant 0 : index
    %9 = vector.load %arg5[%c0_8, %c0_9] : memref<128x256xf32, #tpu.memory_space<vmem>>, vector<128x256xf32>
    %cst_10 = arith.constant dense<0.000000e+00> : vector<16x256xf32>
    %10 = tpu.matmul %8, %9, %cst_10 {dimension_numbers = #tpu.dot_dimension_numbers<[1], [0], [0], [1], [0, 0, 1, 1], [], []>} : vector<16x128xf32>, vector<128x256xf32>, vector<16x256xf32> -> vector<16x256xf32>
    %c0_11 = arith.constant 0 : index
    %c0_12 = arith.constant 0 : index
    %11 = vector.load %arg7[%c0_11, %c0_12] : memref<5x256xf32, #tpu.memory_space<vmem>>, vector<5x256xf32>
    %cst_13 = arith.constant dense<0.000000e+00> : vector<16x256xf32>
    %12 = tpu.matmul %3, %11, %cst_13 {dimension_numbers = #tpu.dot_dimension_numbers<[1], [0], [0], [1], [0, 0, 1, 1], [], []>} : vector<16x5xf32>, vector<5x256xf32>, vector<16x256xf32> -> vector<16x256xf32>
    %13 = arith.addf %10, %12 : vector<16x256xf32>
    %cst_14 = arith.constant 0.000000e+00 : f32
    %14 = vector.broadcast %cst_14 : f32 to vector<16x256xf32>
    %15 = arith.subf %14, %13 : vector<16x256xf32>
    %16 = math.exp %15 : vector<16x256xf32>
    %cst_15 = arith.constant 1.000000e+00 : f32
    %17 = vector.broadcast %cst_15 : f32 to vector<16x256xf32>
    %18 = arith.addf %17, %16 : vector<16x256xf32>
    %cst_16 = arith.constant 1.000000e+00 : f32
    %19 = vector.broadcast %cst_16 : f32 to vector<16x256xf32>
    %20 = arith.divf %19, %18 : vector<16x256xf32>
    %21 = vector.extract_strided_slice %20 {offsets = [0, 0], sizes = [16, 128], strides = [1, 1]} : vector<16x256xf32> to vector<16x128xf32>
    %22 = vector.extract_strided_slice %20 {offsets = [0, 128], sizes = [16, 128], strides = [1, 1]} : vector<16x256xf32> to vector<16x128xf32>
    %23 = vector.extract_strided_slice %21 {offsets = [0, 0], sizes = [8, 128], strides = [1, 1]} : vector<16x128xf32> to vector<8x128xf32>
    %24 = vector.extract_strided_slice %0 {offsets = [0, 0], sizes = [8, 128], strides = [1, 1]} : vector<16x128xf32> to vector<8x128xf32>
    %25 = arith.mulf %23, %24 : vector<8x128xf32>
    %26 = vector.extract_strided_slice %22 {offsets = [0, 0], sizes = [8, 128], strides = [1, 1]} : vector<16x128xf32> to vector<8x128xf32>
    %27 = vector.extract_strided_slice %0 {offsets = [8, 0], sizes = [8, 128], strides = [1, 1]} : vector<16x128xf32> to vector<8x128xf32>
    %28 = arith.mulf %26, %27 : vector<8x128xf32>
    %29 = tpu.concatenate %25, %28 in 0 : vector<8x128xf32>, vector<8x128xf32> -> vector<16x128xf32>
    %30 = vector.extract_strided_slice %21 {offsets = [8, 0], sizes = [8, 128], strides = [1, 1]} : vector<16x128xf32> to vector<8x128xf32>
    %31 = vector.extract_strided_slice %22 {offsets = [8, 0], sizes = [8, 128], strides = [1, 1]} : vector<16x128xf32> to vector<8x128xf32>
    %32 = tpu.concatenate %30, %31 in 0 : vector<8x128xf32>, vector<8x128xf32> -> vector<16x128xf32>
    %c0_17 = arith.constant 0 : index
    %c0_18 = arith.constant 0 : index
    %33 = vector.load %arg4[%c0_17, %c0_18] : memref<16x16xf32, #tpu.memory_space<vmem>>, vector<16x16xf32>
    %cst_19 = arith.constant dense<0.000000e+00> : vector<16x128xf32>
    %34 = tpu.matmul %33, %29, %cst_19 {dimension_numbers = #tpu.dot_dimension_numbers<[1], [0], [0], [1], [0, 0, 1, 1], [], []>} : vector<16x16xf32>, vector<16x128xf32>, vector<16x128xf32> -> vector<16x128xf32>
    %c0_20 = arith.constant 0 : index
    %c0_21 = arith.constant 0 : index
    %35 = vector.load %arg6[%c0_20, %c0_21] : memref<128x128xf32, #tpu.memory_space<vmem>>, vector<128x128xf32>
    %cst_22 = arith.constant dense<0.000000e+00> : vector<16x128xf32>
    %36 = tpu.matmul %34, %35, %cst_22 {dimension_numbers = #tpu.dot_dimension_numbers<[1], [0], [0], [1], [0, 0, 1, 1], [], []>} : vector<16x128xf32>, vector<128x128xf32>, vector<16x128xf32> -> vector<16x128xf32>
    %c0_23 = arith.constant 0 : index
    %c0_24 = arith.constant 0 : index
    %37 = vector.load %arg8[%c0_23, %c0_24] : memref<5x128xf32, #tpu.memory_space<vmem>>, vector<5x128xf32>
    %cst_25 = arith.constant dense<0.000000e+00> : vector<16x128xf32>
    %38 = tpu.matmul %6, %37, %cst_25 {dimension_numbers = #tpu.dot_dimension_numbers<[1], [0], [0], [1], [0, 0, 1, 1], [], []>} : vector<16x5xf32>, vector<5x128xf32>, vector<16x128xf32> -> vector<16x128xf32>
    %39 = arith.addf %36, %38 : vector<16x128xf32>
    %40 = math.tanh %39 : vector<16x128xf32>
    %41 = arith.mulf %32, %0 : vector<16x128xf32>
    %cst_26 = arith.constant 1.000000e+00 : f32
    %42 = vector.broadcast %cst_26 : f32 to vector<16x128xf32>
    %43 = arith.subf %42, %32 : vector<16x128xf32>
    %44 = arith.mulf %43, %40 : vector<16x128xf32>
    %45 = arith.addf %41, %44 : vector<16x128xf32>
    %c1_i32 = arith.constant 1 : i32
    %c0_27 = arith.constant 0 : index
    %46 = arith.index_cast %c1_i32 : i32 to index
    %c0_28 = arith.constant 0 : index
    %c0_29 = arith.constant 0 : index
    %47 = vector.load %arg1[%c0_27, %46, %c0_28, %c0_29] : memref<1x8x16x5xf32, #tpu.memory_space<vmem>>, vector<1x1x16x5xf32>
    %48 = vector.shape_cast %47 : vector<1x1x16x5xf32> to vector<16x5xf32>
    %c0_30 = arith.constant 0 : index
    %49 = arith.index_cast %c1_i32 : i32 to index
    %c0_31 = arith.constant 0 : index
    %c0_32 = arith.constant 0 : index
    %50 = vector.load %arg2[%c0_30, %49, %c0_31, %c0_32] : memref<1x8x16x5xf32, #tpu.memory_space<vmem>>, vector<1x1x16x5xf32>
    %51 = vector.shape_cast %50 : vector<1x1x16x5xf32> to vector<16x5xf32>
    %c0_33 = arith.constant 0 : index
    %c0_34 = arith.constant 0 : index
    %52 = vector.load %arg3[%c0_33, %c0_34] : memref<16x16xf32, #tpu.memory_space<vmem>>, vector<16x16xf32>
    %cst_35 = arith.constant dense<0.000000e+00> : vector<16x128xf32>
    %53 = tpu.matmul %52, %45, %cst_35 {dimension_numbers = #tpu.dot_dimension_numbers<[1], [0], [0], [1], [0, 0, 1, 1], [], []>} : vector<16x16xf32>, vector<16x128xf32>, vector<16x128xf32> -> vector<16x128xf32>
    %c0_36 = arith.constant 0 : index
    %c0_37 = arith.constant 0 : index
    %54 = vector.load %arg5[%c0_36, %c0_37] : memref<128x256xf32, #tpu.memory_space<vmem>>, vector<128x256xf32>
    %cst_38 = arith.constant dense<0.000000e+00> : vector<16x256xf32>
    %55 = tpu.matmul %53, %54, %cst_38 {dimension_numbers = #tpu.dot_dimension_numbers<[1], [0], [0], [1], [0, 0, 1, 1], [], []>} : vector<16x128xf32>, vector<128x256xf32>, vector<16x256xf32> -> vector<16x256xf32>
    %c0_39 = arith.constant 0 : index
    %c0_40 = arith.constant 0 : index
    %56 = vector.load %arg7[%c0_39, %c0_40] : memref<5x256xf32, #tpu.memory_space<vmem>>, vector<5x256xf32>
    %cst_41 = arith.constant dense<0.000000e+00> : vector<16x256xf32>
    %57 = tpu.matmul %48, %56, %cst_41 {dimension_numbers = #tpu.dot_dimension_numbers<[1], [0], [0], [1], [0, 0, 1, 1], [], []>} : vector<16x5xf32>, vector<5x256xf32>, vector<16x256xf32> -> vector<16x256xf32>
    %58 = arith.addf %55, %57 : vector<16x256xf32>
    %cst_42 = arith.constant 0.000000e+00 : f32
    %59 = vector.broadcast %cst_42 : f32 to vector<16x256xf32>
    %60 = arith.subf %59, %58 : vector<16x256xf32>
    %61 = math.exp %60 : vector<16x256xf32>
    %cst_43 = arith.constant 1.000000e+00 : f32
    %62 = vector.broadcast %cst_43 : f32 to vector<16x256xf32>
    %63 = arith.addf %62, %61 : vector<16x256xf32>
    %cst_44 = arith.constant 1.000000e+00 : f32
    %64 = vector.broadcast %cst_44 : f32 to vector<16x256xf32>
    %65 = arith.divf %64, %63 : vector<16x256xf32>
    %66 = vector.extract_strided_slice %65 {offsets = [0, 0], sizes = [16, 128], strides = [1, 1]} : vector<16x256xf32> to vector<16x128xf32>
    %67 = vector.extract_strided_slice %65 {offsets = [0, 128], sizes = [16, 128], strides = [1, 1]} : vector<16x256xf32> to vector<16x128xf32>
    %68 = vector.extract_strided_slice %66 {offsets = [0, 0], sizes = [8, 128], strides = [1, 1]} : vector<16x128xf32> to vector<8x128xf32>
    %69 = vector.extract_strided_slice %45 {offsets = [0, 0], sizes = [8, 128], strides = [1, 1]} : vector<16x128xf32> to vector<8x128xf32>
    %70 = arith.mulf %68, %69 : vector<8x128xf32>
    %71 = vector.extract_strided_slice %67 {offsets = [0, 0], sizes = [8, 128], strides = [1, 1]} : vector<16x128xf32> to vector<8x128xf32>
    %72 = vector.extract_strided_slice %45 {offsets = [8, 0], sizes = [8, 128], strides = [1, 1]} : vector<16x128xf32> to vector<8x128xf32>
    %73 = arith.mulf %71, %72 : vector<8x128xf32>
    %74 = tpu.concatenate %70, %73 in 0 : vector<8x128xf32>, vector<8x128xf32> -> vector<16x128xf32>
    %75 = vector.extract_strided_slice %66 {offsets = [8, 0], sizes = [8, 128], strides = [1, 1]} : vector<16x128xf32> to vector<8x128xf32>
    %76 = vector.extract_strided_slice %67 {offsets = [8, 0], sizes = [8, 128], strides = [1, 1]} : vector<16x128xf32> to vector<8x128xf32>
    %77 = tpu.concatenate %75, %76 in 0 : vector<8x128xf32>, vector<8x128xf32> -> vector<16x128xf32>
    %c0_45 = arith.constant 0 : index
    %c0_46 = arith.constant 0 : index
    %78 = vector.load %arg4[%c0_45, %c0_46] : memref<16x16xf32, #tpu.memory_space<vmem>>, vector<16x16xf32>
    %cst_47 = arith.constant dense<0.000000e+00> : vector<16x128xf32>
    %79 = tpu.matmul %78, %74, %cst_47 {dimension_numbers = #tpu.dot_dimension_numbers<[1], [0], [0], [1], [0, 0, 1, 1], [], []>} : vector<16x16xf32>, vector<16x128xf32>, vector<16x128xf32> -> vector<16x128xf32>
    %c0_48 = arith.constant 0 : index
    %c0_49 = arith.constant 0 : index
    %80 = vector.load %arg6[%c0_48, %c0_49] : memref<128x128xf32, #tpu.memory_space<vmem>>, vector<128x128xf32>
    %cst_50 = arith.constant dense<0.000000e+00> : vector<16x128xf32>
    %81 = tpu.matmul %79, %80, %cst_50 {dimension_numbers = #tpu.dot_dimension_numbers<[1], [0], [0], [1], [0, 0, 1, 1], [], []>} : vector<16x128xf32>, vector<128x128xf32>, vector<16x128xf32> -> vector<16x128xf32>
    %c0_51 = arith.constant 0 : index
    %c0_52 = arith.constant 0 : index
    %82 = vector.load %arg8[%c0_51, %c0_52] : memref<5x128xf32, #tpu.memory_space<vmem>>, vector<5x128xf32>
    %cst_53 = arith.constant dense<0.000000e+00> : vector<16x128xf32>
    %83 = tpu.matmul %51, %82, %cst_53 {dimension_numbers = #tpu.dot_dimension_numbers<[1], [0], [0], [1], [0, 0, 1, 1], [], []>} : vector<16x5xf32>, vector<5x128xf32>, vector<16x128xf32> -> vector<16x128xf32>
    %84 = arith.addf %81, %83 : vector<16x128xf32>
    %85 = math.tanh %84 : vector<16x128xf32>
    %86 = arith.mulf %77, %45 : vector<16x128xf32>
    %cst_54 = arith.constant 1.000000e+00 : f32
    %87 = vector.broadcast %cst_54 : f32 to vector<16x128xf32>
    %88 = arith.subf %87, %77 : vector<16x128xf32>
    %89 = arith.mulf %88, %85 : vector<16x128xf32>
    %90 = arith.addf %86, %89 : vector<16x128xf32>
    %c2_i32 = arith.constant 2 : i32
    %c0_55 = arith.constant 0 : index
    %91 = arith.index_cast %c2_i32 : i32 to index
    %c0_56 = arith.constant 0 : index
    %c0_57 = arith.constant 0 : index
    %92 = vector.load %arg1[%c0_55, %91, %c0_56, %c0_57] : memref<1x8x16x5xf32, #tpu.memory_space<vmem>>, vector<1x1x16x5xf32>
    %93 = vector.shape_cast %92 : vector<1x1x16x5xf32> to vector<16x5xf32>
    %c0_58 = arith.constant 0 : index
    %94 = arith.index_cast %c2_i32 : i32 to index
    %c0_59 = arith.constant 0 : index
    %c0_60 = arith.constant 0 : index
    %95 = vector.load %arg2[%c0_58, %94, %c0_59, %c0_60] : memref<1x8x16x5xf32, #tpu.memory_space<vmem>>, vector<1x1x16x5xf32>
    %96 = vector.shape_cast %95 : vector<1x1x16x5xf32> to vector<16x5xf32>
    %c0_61 = arith.constant 0 : index
    %c0_62 = arith.constant 0 : index
    %97 = vector.load %arg3[%c0_61, %c0_62] : memref<16x16xf32, #tpu.memory_space<vmem>>, vector<16x16xf32>
    %cst_63 = arith.constant dense<0.000000e+00> : vector<16x128xf32>
    %98 = tpu.matmul %97, %90, %cst_63 {dimension_numbers = #tpu.dot_dimension_numbers<[1], [0], [0], [1], [0, 0, 1, 1], [], []>} : vector<16x16xf32>, vector<16x128xf32>, vector<16x128xf32> -> vector<16x128xf32>
    %c0_64 = arith.constant 0 : index
    %c0_65 = arith.constant 0 : index
    %99 = vector.load %arg5[%c0_64, %c0_65] : memref<128x256xf32, #tpu.memory_space<vmem>>, vector<128x256xf32>
    %cst_66 = arith.constant dense<0.000000e+00> : vector<16x256xf32>
    %100 = tpu.matmul %98, %99, %cst_66 {dimension_numbers = #tpu.dot_dimension_numbers<[1], [0], [0], [1], [0, 0, 1, 1], [], []>} : vector<16x128xf32>, vector<128x256xf32>, vector<16x256xf32> -> vector<16x256xf32>
    %c0_67 = arith.constant 0 : index
    %c0_68 = arith.constant 0 : index
    %101 = vector.load %arg7[%c0_67, %c0_68] : memref<5x256xf32, #tpu.memory_space<vmem>>, vector<5x256xf32>
    %cst_69 = arith.constant dense<0.000000e+00> : vector<16x256xf32>
    %102 = tpu.matmul %93, %101, %cst_69 {dimension_numbers = #tpu.dot_dimension_numbers<[1], [0], [0], [1], [0, 0, 1, 1], [], []>} : vector<16x5xf32>, vector<5x256xf32>, vector<16x256xf32> -> vector<16x256xf32>
    %103 = arith.addf %100, %102 : vector<16x256xf32>
    %cst_70 = arith.constant 0.000000e+00 : f32
    %104 = vector.broadcast %cst_70 : f32 to vector<16x256xf32>
    %105 = arith.subf %104, %103 : vector<16x256xf32>
    %106 = math.exp %105 : vector<16x256xf32>
    %cst_71 = arith.constant 1.000000e+00 : f32
    %107 = vector.broadcast %cst_71 : f32 to vector<16x256xf32>
    %108 = arith.addf %107, %106 : vector<16x256xf32>
    %cst_72 = arith.constant 1.000000e+00 : f32
    %109 = vector.broadcast %cst_72 : f32 to vector<16x256xf32>
    %110 = arith.divf %109, %108 : vector<16x256xf32>
    %111 = vector.extract_strided_slice %110 {offsets = [0, 0], sizes = [16, 128], strides = [1, 1]} : vector<16x256xf32> to vector<16x128xf32>
    %112 = vector.extract_strided_slice %110 {offsets = [0, 128], sizes = [16, 128], strides = [1, 1]} : vector<16x256xf32> to vector<16x128xf32>
    %113 = vector.extract_strided_slice %111 {offsets = [0, 0], sizes = [8, 128], strides = [1, 1]} : vector<16x128xf32> to vector<8x128xf32>
    %114 = vector.extract_strided_slice %90 {offsets = [0, 0], sizes = [8, 128], strides = [1, 1]} : vector<16x128xf32> to vector<8x128xf32>
    %115 = arith.mulf %113, %114 : vector<8x128xf32>
    %116 = vector.extract_strided_slice %112 {offsets = [0, 0], sizes = [8, 128], strides = [1, 1]} : vector<16x128xf32> to vector<8x128xf32>
    %117 = vector.extract_strided_slice %90 {offsets = [8, 0], sizes = [8, 128], strides = [1, 1]} : vector<16x128xf32> to vector<8x128xf32>
    %118 = arith.mulf %116, %117 : vector<8x128xf32>
    %119 = tpu.concatenate %115, %118 in 0 : vector<8x128xf32>, vector<8x128xf32> -> vector<16x128xf32>
    %120 = vector.extract_strided_slice %111 {offsets = [8, 0], sizes = [8, 128], strides = [1, 1]} : vector<16x128xf32> to vector<8x128xf32>
    %121 = vector.extract_strided_slice %112 {offsets = [8, 0], sizes = [8, 128], strides = [1, 1]} : vector<16x128xf32> to vector<8x128xf32>
    %122 = tpu.concatenate %120, %121 in 0 : vector<8x128xf32>, vector<8x128xf32> -> vector<16x128xf32>
    %c0_73 = arith.constant 0 : index
    %c0_74 = arith.constant 0 : index
    %123 = vector.load %arg4[%c0_73, %c0_74] : memref<16x16xf32, #tpu.memory_space<vmem>>, vector<16x16xf32>
    %cst_75 = arith.constant dense<0.000000e+00> : vector<16x128xf32>
    %124 = tpu.matmul %123, %119, %cst_75 {dimension_numbers = #tpu.dot_dimension_numbers<[1], [0], [0], [1], [0, 0, 1, 1], [], []>} : vector<16x16xf32>, vector<16x128xf32>, vector<16x128xf32> -> vector<16x128xf32>
    %c0_76 = arith.constant 0 : index
    %c0_77 = arith.constant 0 : index
    %125 = vector.load %arg6[%c0_76, %c0_77] : memref<128x128xf32, #tpu.memory_space<vmem>>, vector<128x128xf32>
    %cst_78 = arith.constant dense<0.000000e+00> : vector<16x128xf32>
    %126 = tpu.matmul %124, %125, %cst_78 {dimension_numbers = #tpu.dot_dimension_numbers<[1], [0], [0], [1], [0, 0, 1, 1], [], []>} : vector<16x128xf32>, vector<128x128xf32>, vector<16x128xf32> -> vector<16x128xf32>
    %c0_79 = arith.constant 0 : index
    %c0_80 = arith.constant 0 : index
    %127 = vector.load %arg8[%c0_79, %c0_80] : memref<5x128xf32, #tpu.memory_space<vmem>>, vector<5x128xf32>
    %cst_81 = arith.constant dense<0.000000e+00> : vector<16x128xf32>
    %128 = tpu.matmul %96, %127, %cst_81 {dimension_numbers = #tpu.dot_dimension_numbers<[1], [0], [0], [1], [0, 0, 1, 1], [], []>} : vector<16x5xf32>, vector<5x128xf32>, vector<16x128xf32> -> vector<16x128xf32>
    %129 = arith.addf %126, %128 : vector<16x128xf32>
    %130 = math.tanh %129 : vector<16x128xf32>
    %131 = arith.mulf %122, %90 : vector<16x128xf32>
    %cst_82 = arith.constant 1.000000e+00 : f32
    %132 = vector.broadcast %cst_82 : f32 to vector<16x128xf32>
    %133 = arith.subf %132, %122 : vector<16x128xf32>
    %134 = arith.mulf %133, %130 : vector<16x128xf32>
    %135 = arith.addf %131, %134 : vector<16x128xf32>
    %c3_i32 = arith.constant 3 : i32
    %c0_83 = arith.constant 0 : index
    %136 = arith.index_cast %c3_i32 : i32 to index
    %c0_84 = arith.constant 0 : index
    %c0_85 = arith.constant 0 : index
    %137 = vector.load %arg1[%c0_83, %136, %c0_84, %c0_85] : memref<1x8x16x5xf32, #tpu.memory_space<vmem>>, vector<1x1x16x5xf32>
    %138 = vector.shape_cast %137 : vector<1x1x16x5xf32> to vector<16x5xf32>
    %c0_86 = arith.constant 0 : index
    %139 = arith.index_cast %c3_i32 : i32 to index
    %c0_87 = arith.constant 0 : index
    %c0_88 = arith.constant 0 : index
    %140 = vector.load %arg2[%c0_86, %139, %c0_87, %c0_88] : memref<1x8x16x5xf32, #tpu.memory_space<vmem>>, vector<1x1x16x5xf32>
    %141 = vector.shape_cast %140 : vector<1x1x16x5xf32> to vector<16x5xf32>
    %c0_89 = arith.constant 0 : index
    %c0_90 = arith.constant 0 : index
    %142 = vector.load %arg3[%c0_89, %c0_90] : memref<16x16xf32, #tpu.memory_space<vmem>>, vector<16x16xf32>
    %cst_91 = arith.constant dense<0.000000e+00> : vector<16x128xf32>
    %143 = tpu.matmul %142, %135, %cst_91 {dimension_numbers = #tpu.dot_dimension_numbers<[1], [0], [0], [1], [0, 0, 1, 1], [], []>} : vector<16x16xf32>, vector<16x128xf32>, vector<16x128xf32> -> vector<16x128xf32>
    %c0_92 = arith.constant 0 : index
    %c0_93 = arith.constant 0 : index
    %144 = vector.load %arg5[%c0_92, %c0_93] : memref<128x256xf32, #tpu.memory_space<vmem>>, vector<128x256xf32>
    %cst_94 = arith.constant dense<0.000000e+00> : vector<16x256xf32>
    %145 = tpu.matmul %143, %144, %cst_94 {dimension_numbers = #tpu.dot_dimension_numbers<[1], [0], [0], [1], [0, 0, 1, 1], [], []>} : vector<16x128xf32>, vector<128x256xf32>, vector<16x256xf32> -> vector<16x256xf32>
    %c0_95 = arith.constant 0 : index
    %c0_96 = arith.constant 0 : index
    %146 = vector.load %arg7[%c0_95, %c0_96] : memref<5x256xf32, #tpu.memory_space<vmem>>, vector<5x256xf32>
    %cst_97 = arith.constant dense<0.000000e+00> : vector<16x256xf32>
    %147 = tpu.matmul %138, %146, %cst_97 {dimension_numbers = #tpu.dot_dimension_numbers<[1], [0], [0], [1], [0, 0, 1, 1], [], []>} : vector<16x5xf32>, vector<5x256xf32>, vector<16x256xf32> -> vector<16x256xf32>
    %148 = arith.addf %145, %147 : vector<16x256xf32>
    %cst_98 = arith.constant 0.000000e+00 : f32
    %149 = vector.broadcast %cst_98 : f32 to vector<16x256xf32>
    %150 = arith.subf %149, %148 : vector<16x256xf32>
    %151 = math.exp %150 : vector<16x256xf32>
    %cst_99 = arith.constant 1.000000e+00 : f32
    %152 = vector.broadcast %cst_99 : f32 to vector<16x256xf32>
    %153 = arith.addf %152, %151 : vector<16x256xf32>
    %cst_100 = arith.constant 1.000000e+00 : f32
    %154 = vector.broadcast %cst_100 : f32 to vector<16x256xf32>
    %155 = arith.divf %154, %153 : vector<16x256xf32>
    %156 = vector.extract_strided_slice %155 {offsets = [0, 0], sizes = [16, 128], strides = [1, 1]} : vector<16x256xf32> to vector<16x128xf32>
    %157 = vector.extract_strided_slice %155 {offsets = [0, 128], sizes = [16, 128], strides = [1, 1]} : vector<16x256xf32> to vector<16x128xf32>
    %158 = vector.extract_strided_slice %156 {offsets = [0, 0], sizes = [8, 128], strides = [1, 1]} : vector<16x128xf32> to vector<8x128xf32>
    %159 = vector.extract_strided_slice %135 {offsets = [0, 0], sizes = [8, 128], strides = [1, 1]} : vector<16x128xf32> to vector<8x128xf32>
    %160 = arith.mulf %158, %159 : vector<8x128xf32>
    %161 = vector.extract_strided_slice %157 {offsets = [0, 0], sizes = [8, 128], strides = [1, 1]} : vector<16x128xf32> to vector<8x128xf32>
    %162 = vector.extract_strided_slice %135 {offsets = [8, 0], sizes = [8, 128], strides = [1, 1]} : vector<16x128xf32> to vector<8x128xf32>
    %163 = arith.mulf %161, %162 : vector<8x128xf32>
    %164 = tpu.concatenate %160, %163 in 0 : vector<8x128xf32>, vector<8x128xf32> -> vector<16x128xf32>
    %165 = vector.extract_strided_slice %156 {offsets = [8, 0], sizes = [8, 128], strides = [1, 1]} : vector<16x128xf32> to vector<8x128xf32>
    %166 = vector.extract_strided_slice %157 {offsets = [8, 0], sizes = [8, 128], strides = [1, 1]} : vector<16x128xf32> to vector<8x128xf32>
    %167 = tpu.concatenate %165, %166 in 0 : vector<8x128xf32>, vector<8x128xf32> -> vector<16x128xf32>
    %c0_101 = arith.constant 0 : index
    %c0_102 = arith.constant 0 : index
    %168 = vector.load %arg4[%c0_101, %c0_102] : memref<16x16xf32, #tpu.memory_space<vmem>>, vector<16x16xf32>
    %cst_103 = arith.constant dense<0.000000e+00> : vector<16x128xf32>
    %169 = tpu.matmul %168, %164, %cst_103 {dimension_numbers = #tpu.dot_dimension_numbers<[1], [0], [0], [1], [0, 0, 1, 1], [], []>} : vector<16x16xf32>, vector<16x128xf32>, vector<16x128xf32> -> vector<16x128xf32>
    %c0_104 = arith.constant 0 : index
    %c0_105 = arith.constant 0 : index
    %170 = vector.load %arg6[%c0_104, %c0_105] : memref<128x128xf32, #tpu.memory_space<vmem>>, vector<128x128xf32>
    %cst_106 = arith.constant dense<0.000000e+00> : vector<16x128xf32>
    %171 = tpu.matmul %169, %170, %cst_106 {dimension_numbers = #tpu.dot_dimension_numbers<[1], [0], [0], [1], [0, 0, 1, 1], [], []>} : vector<16x128xf32>, vector<128x128xf32>, vector<16x128xf32> -> vector<16x128xf32>
    %c0_107 = arith.constant 0 : index
    %c0_108 = arith.constant 0 : index
    %172 = vector.load %arg8[%c0_107, %c0_108] : memref<5x128xf32, #tpu.memory_space<vmem>>, vector<5x128xf32>
    %cst_109 = arith.constant dense<0.000000e+00> : vector<16x128xf32>
    %173 = tpu.matmul %141, %172, %cst_109 {dimension_numbers = #tpu.dot_dimension_numbers<[1], [0], [0], [1], [0, 0, 1, 1], [], []>} : vector<16x5xf32>, vector<5x128xf32>, vector<16x128xf32> -> vector<16x128xf32>
    %174 = arith.addf %171, %173 : vector<16x128xf32>
    %175 = math.tanh %174 : vector<16x128xf32>
    %176 = arith.mulf %167, %135 : vector<16x128xf32>
    %cst_110 = arith.constant 1.000000e+00 : f32
    %177 = vector.broadcast %cst_110 : f32 to vector<16x128xf32>
    %178 = arith.subf %177, %167 : vector<16x128xf32>
    %179 = arith.mulf %178, %175 : vector<16x128xf32>
    %180 = arith.addf %176, %179 : vector<16x128xf32>
    %c4_i32 = arith.constant 4 : i32
    %c0_111 = arith.constant 0 : index
    %181 = arith.index_cast %c4_i32 : i32 to index
    %c0_112 = arith.constant 0 : index
    %c0_113 = arith.constant 0 : index
    %182 = vector.load %arg1[%c0_111, %181, %c0_112, %c0_113] : memref<1x8x16x5xf32, #tpu.memory_space<vmem>>, vector<1x1x16x5xf32>
    %183 = vector.shape_cast %182 : vector<1x1x16x5xf32> to vector<16x5xf32>
    %c0_114 = arith.constant 0 : index
    %184 = arith.index_cast %c4_i32 : i32 to index
    %c0_115 = arith.constant 0 : index
    %c0_116 = arith.constant 0 : index
    %185 = vector.load %arg2[%c0_114, %184, %c0_115, %c0_116] : memref<1x8x16x5xf32, #tpu.memory_space<vmem>>, vector<1x1x16x5xf32>
    %186 = vector.shape_cast %185 : vector<1x1x16x5xf32> to vector<16x5xf32>
    %c0_117 = arith.constant 0 : index
    %c0_118 = arith.constant 0 : index
    %187 = vector.load %arg3[%c0_117, %c0_118] : memref<16x16xf32, #tpu.memory_space<vmem>>, vector<16x16xf32>
    %cst_119 = arith.constant dense<0.000000e+00> : vector<16x128xf32>
    %188 = tpu.matmul %187, %180, %cst_119 {dimension_numbers = #tpu.dot_dimension_numbers<[1], [0], [0], [1], [0, 0, 1, 1], [], []>} : vector<16x16xf32>, vector<16x128xf32>, vector<16x128xf32> -> vector<16x128xf32>
    %c0_120 = arith.constant 0 : index
    %c0_121 = arith.constant 0 : index
    %189 = vector.load %arg5[%c0_120, %c0_121] : memref<128x256xf32, #tpu.memory_space<vmem>>, vector<128x256xf32>
    %cst_122 = arith.constant dense<0.000000e+00> : vector<16x256xf32>
    %190 = tpu.matmul %188, %189, %cst_122 {dimension_numbers = #tpu.dot_dimension_numbers<[1], [0], [0], [1], [0, 0, 1, 1], [], []>} : vector<16x128xf32>, vector<128x256xf32>, vector<16x256xf32> -> vector<16x256xf32>
    %c0_123 = arith.constant 0 : index
    %c0_124 = arith.constant 0 : index
    %191 = vector.load %arg7[%c0_123, %c0_124] : memref<5x256xf32, #tpu.memory_space<vmem>>, vector<5x256xf32>
    %cst_125 = arith.constant dense<0.000000e+00> : vector<16x256xf32>
    %192 = tpu.matmul %183, %191, %cst_125 {dimension_numbers = #tpu.dot_dimension_numbers<[1], [0], [0], [1], [0, 0, 1, 1], [], []>} : vector<16x5xf32>, vector<5x256xf32>, vector<16x256xf32> -> vector<16x256xf32>
    %193 = arith.addf %190, %192 : vector<16x256xf32>
    %cst_126 = arith.constant 0.000000e+00 : f32
    %194 = vector.broadcast %cst_126 : f32 to vector<16x256xf32>
    %195 = arith.subf %194, %193 : vector<16x256xf32>
    %196 = math.exp %195 : vector<16x256xf32>
    %cst_127 = arith.constant 1.000000e+00 : f32
    %197 = vector.broadcast %cst_127 : f32 to vector<16x256xf32>
    %198 = arith.addf %197, %196 : vector<16x256xf32>
    %cst_128 = arith.constant 1.000000e+00 : f32
    %199 = vector.broadcast %cst_128 : f32 to vector<16x256xf32>
    %200 = arith.divf %199, %198 : vector<16x256xf32>
    %201 = vector.extract_strided_slice %200 {offsets = [0, 0], sizes = [16, 128], strides = [1, 1]} : vector<16x256xf32> to vector<16x128xf32>
    %202 = vector.extract_strided_slice %200 {offsets = [0, 128], sizes = [16, 128], strides = [1, 1]} : vector<16x256xf32> to vector<16x128xf32>
    %203 = vector.extract_strided_slice %201 {offsets = [0, 0], sizes = [8, 128], strides = [1, 1]} : vector<16x128xf32> to vector<8x128xf32>
    %204 = vector.extract_strided_slice %180 {offsets = [0, 0], sizes = [8, 128], strides = [1, 1]} : vector<16x128xf32> to vector<8x128xf32>
    %205 = arith.mulf %203, %204 : vector<8x128xf32>
    %206 = vector.extract_strided_slice %202 {offsets = [0, 0], sizes = [8, 128], strides = [1, 1]} : vector<16x128xf32> to vector<8x128xf32>
    %207 = vector.extract_strided_slice %180 {offsets = [8, 0], sizes = [8, 128], strides = [1, 1]} : vector<16x128xf32> to vector<8x128xf32>
    %208 = arith.mulf %206, %207 : vector<8x128xf32>
    %209 = tpu.concatenate %205, %208 in 0 : vector<8x128xf32>, vector<8x128xf32> -> vector<16x128xf32>
    %210 = vector.extract_strided_slice %201 {offsets = [8, 0], sizes = [8, 128], strides = [1, 1]} : vector<16x128xf32> to vector<8x128xf32>
    %211 = vector.extract_strided_slice %202 {offsets = [8, 0], sizes = [8, 128], strides = [1, 1]} : vector<16x128xf32> to vector<8x128xf32>
    %212 = tpu.concatenate %210, %211 in 0 : vector<8x128xf32>, vector<8x128xf32> -> vector<16x128xf32>
    %c0_129 = arith.constant 0 : index
    %c0_130 = arith.constant 0 : index
    %213 = vector.load %arg4[%c0_129, %c0_130] : memref<16x16xf32, #tpu.memory_space<vmem>>, vector<16x16xf32>
    %cst_131 = arith.constant dense<0.000000e+00> : vector<16x128xf32>
    %214 = tpu.matmul %213, %209, %cst_131 {dimension_numbers = #tpu.dot_dimension_numbers<[1], [0], [0], [1], [0, 0, 1, 1], [], []>} : vector<16x16xf32>, vector<16x128xf32>, vector<16x128xf32> -> vector<16x128xf32>
    %c0_132 = arith.constant 0 : index
    %c0_133 = arith.constant 0 : index
    %215 = vector.load %arg6[%c0_132, %c0_133] : memref<128x128xf32, #tpu.memory_space<vmem>>, vector<128x128xf32>
    %cst_134 = arith.constant dense<0.000000e+00> : vector<16x128xf32>
    %216 = tpu.matmul %214, %215, %cst_134 {dimension_numbers = #tpu.dot_dimension_numbers<[1], [0], [0], [1], [0, 0, 1, 1], [], []>} : vector<16x128xf32>, vector<128x128xf32>, vector<16x128xf32> -> vector<16x128xf32>
    %c0_135 = arith.constant 0 : index
    %c0_136 = arith.constant 0 : index
    %217 = vector.load %arg8[%c0_135, %c0_136] : memref<5x128xf32, #tpu.memory_space<vmem>>, vector<5x128xf32>
    %cst_137 = arith.constant dense<0.000000e+00> : vector<16x128xf32>
    %218 = tpu.matmul %186, %217, %cst_137 {dimension_numbers = #tpu.dot_dimension_numbers<[1], [0], [0], [1], [0, 0, 1, 1], [], []>} : vector<16x5xf32>, vector<5x128xf32>, vector<16x128xf32> -> vector<16x128xf32>
    %219 = arith.addf %216, %218 : vector<16x128xf32>
    %220 = math.tanh %219 : vector<16x128xf32>
    %221 = arith.mulf %212, %180 : vector<16x128xf32>
    %cst_138 = arith.constant 1.000000e+00 : f32
    %222 = vector.broadcast %cst_138 : f32 to vector<16x128xf32>
    %223 = arith.subf %222, %212 : vector<16x128xf32>
    %224 = arith.mulf %223, %220 : vector<16x128xf32>
    %225 = arith.addf %221, %224 : vector<16x128xf32>
    %c5_i32 = arith.constant 5 : i32
    %c0_139 = arith.constant 0 : index
    %226 = arith.index_cast %c5_i32 : i32 to index
    %c0_140 = arith.constant 0 : index
    %c0_141 = arith.constant 0 : index
    %227 = vector.load %arg1[%c0_139, %226, %c0_140, %c0_141] : memref<1x8x16x5xf32, #tpu.memory_space<vmem>>, vector<1x1x16x5xf32>
    %228 = vector.shape_cast %227 : vector<1x1x16x5xf32> to vector<16x5xf32>
    %c0_142 = arith.constant 0 : index
    %229 = arith.index_cast %c5_i32 : i32 to index
    %c0_143 = arith.constant 0 : index
    %c0_144 = arith.constant 0 : index
    %230 = vector.load %arg2[%c0_142, %229, %c0_143, %c0_144] : memref<1x8x16x5xf32, #tpu.memory_space<vmem>>, vector<1x1x16x5xf32>
    %231 = vector.shape_cast %230 : vector<1x1x16x5xf32> to vector<16x5xf32>
    %c0_145 = arith.constant 0 : index
    %c0_146 = arith.constant 0 : index
    %232 = vector.load %arg3[%c0_145, %c0_146] : memref<16x16xf32, #tpu.memory_space<vmem>>, vector<16x16xf32>
    %cst_147 = arith.constant dense<0.000000e+00> : vector<16x128xf32>
    %233 = tpu.matmul %232, %225, %cst_147 {dimension_numbers = #tpu.dot_dimension_numbers<[1], [0], [0], [1], [0, 0, 1, 1], [], []>} : vector<16x16xf32>, vector<16x128xf32>, vector<16x128xf32> -> vector<16x128xf32>
    %c0_148 = arith.constant 0 : index
    %c0_149 = arith.constant 0 : index
    %234 = vector.load %arg5[%c0_148, %c0_149] : memref<128x256xf32, #tpu.memory_space<vmem>>, vector<128x256xf32>
    %cst_150 = arith.constant dense<0.000000e+00> : vector<16x256xf32>
    %235 = tpu.matmul %233, %234, %cst_150 {dimension_numbers = #tpu.dot_dimension_numbers<[1], [0], [0], [1], [0, 0, 1, 1], [], []>} : vector<16x128xf32>, vector<128x256xf32>, vector<16x256xf32> -> vector<16x256xf32>
    %c0_151 = arith.constant 0 : index
    %c0_152 = arith.constant 0 : index
    %236 = vector.load %arg7[%c0_151, %c0_152] : memref<5x256xf32, #tpu.memory_space<vmem>>, vector<5x256xf32>
    %cst_153 = arith.constant dense<0.000000e+00> : vector<16x256xf32>
    %237 = tpu.matmul %228, %236, %cst_153 {dimension_numbers = #tpu.dot_dimension_numbers<[1], [0], [0], [1], [0, 0, 1, 1], [], []>} : vector<16x5xf32>, vector<5x256xf32>, vector<16x256xf32> -> vector<16x256xf32>
    %238 = arith.addf %235, %237 : vector<16x256xf32>
    %cst_154 = arith.constant 0.000000e+00 : f32
    %239 = vector.broadcast %cst_154 : f32 to vector<16x256xf32>
    %240 = arith.subf %239, %238 : vector<16x256xf32>
    %241 = math.exp %240 : vector<16x256xf32>
    %cst_155 = arith.constant 1.000000e+00 : f32
    %242 = vector.broadcast %cst_155 : f32 to vector<16x256xf32>
    %243 = arith.addf %242, %241 : vector<16x256xf32>
    %cst_156 = arith.constant 1.000000e+00 : f32
    %244 = vector.broadcast %cst_156 : f32 to vector<16x256xf32>
    %245 = arith.divf %244, %243 : vector<16x256xf32>
    %246 = vector.extract_strided_slice %245 {offsets = [0, 0], sizes = [16, 128], strides = [1, 1]} : vector<16x256xf32> to vector<16x128xf32>
    %247 = vector.extract_strided_slice %245 {offsets = [0, 128], sizes = [16, 128], strides = [1, 1]} : vector<16x256xf32> to vector<16x128xf32>
    %248 = vector.extract_strided_slice %246 {offsets = [0, 0], sizes = [8, 128], strides = [1, 1]} : vector<16x128xf32> to vector<8x128xf32>
    %249 = vector.extract_strided_slice %225 {offsets = [0, 0], sizes = [8, 128], strides = [1, 1]} : vector<16x128xf32> to vector<8x128xf32>
    %250 = arith.mulf %248, %249 : vector<8x128xf32>
    %251 = vector.extract_strided_slice %247 {offsets = [0, 0], sizes = [8, 128], strides = [1, 1]} : vector<16x128xf32> to vector<8x128xf32>
    %252 = vector.extract_strided_slice %225 {offsets = [8, 0], sizes = [8, 128], strides = [1, 1]} : vector<16x128xf32> to vector<8x128xf32>
    %253 = arith.mulf %251, %252 : vector<8x128xf32>
    %254 = tpu.concatenate %250, %253 in 0 : vector<8x128xf32>, vector<8x128xf32> -> vector<16x128xf32>
    %255 = vector.extract_strided_slice %246 {offsets = [8, 0], sizes = [8, 128], strides = [1, 1]} : vector<16x128xf32> to vector<8x128xf32>
    %256 = vector.extract_strided_slice %247 {offsets = [8, 0], sizes = [8, 128], strides = [1, 1]} : vector<16x128xf32> to vector<8x128xf32>
    %257 = tpu.concatenate %255, %256 in 0 : vector<8x128xf32>, vector<8x128xf32> -> vector<16x128xf32>
    %c0_157 = arith.constant 0 : index
    %c0_158 = arith.constant 0 : index
    %258 = vector.load %arg4[%c0_157, %c0_158] : memref<16x16xf32, #tpu.memory_space<vmem>>, vector<16x16xf32>
    %cst_159 = arith.constant dense<0.000000e+00> : vector<16x128xf32>
    %259 = tpu.matmul %258, %254, %cst_159 {dimension_numbers = #tpu.dot_dimension_numbers<[1], [0], [0], [1], [0, 0, 1, 1], [], []>} : vector<16x16xf32>, vector<16x128xf32>, vector<16x128xf32> -> vector<16x128xf32>
    %c0_160 = arith.constant 0 : index
    %c0_161 = arith.constant 0 : index
    %260 = vector.load %arg6[%c0_160, %c0_161] : memref<128x128xf32, #tpu.memory_space<vmem>>, vector<128x128xf32>
    %cst_162 = arith.constant dense<0.000000e+00> : vector<16x128xf32>
    %261 = tpu.matmul %259, %260, %cst_162 {dimension_numbers = #tpu.dot_dimension_numbers<[1], [0], [0], [1], [0, 0, 1, 1], [], []>} : vector<16x128xf32>, vector<128x128xf32>, vector<16x128xf32> -> vector<16x128xf32>
    %c0_163 = arith.constant 0 : index
    %c0_164 = arith.constant 0 : index
    %262 = vector.load %arg8[%c0_163, %c0_164] : memref<5x128xf32, #tpu.memory_space<vmem>>, vector<5x128xf32>
    %cst_165 = arith.constant dense<0.000000e+00> : vector<16x128xf32>
    %263 = tpu.matmul %231, %262, %cst_165 {dimension_numbers = #tpu.dot_dimension_numbers<[1], [0], [0], [1], [0, 0, 1, 1], [], []>} : vector<16x5xf32>, vector<5x128xf32>, vector<16x128xf32> -> vector<16x128xf32>
    %264 = arith.addf %261, %263 : vector<16x128xf32>
    %265 = math.tanh %264 : vector<16x128xf32>
    %266 = arith.mulf %257, %225 : vector<16x128xf32>
    %cst_166 = arith.constant 1.000000e+00 : f32
    %267 = vector.broadcast %cst_166 : f32 to vector<16x128xf32>
    %268 = arith.subf %267, %257 : vector<16x128xf32>
    %269 = arith.mulf %268, %265 : vector<16x128xf32>
    %270 = arith.addf %266, %269 : vector<16x128xf32>
    %c6_i32 = arith.constant 6 : i32
    %c0_167 = arith.constant 0 : index
    %271 = arith.index_cast %c6_i32 : i32 to index
    %c0_168 = arith.constant 0 : index
    %c0_169 = arith.constant 0 : index
    %272 = vector.load %arg1[%c0_167, %271, %c0_168, %c0_169] : memref<1x8x16x5xf32, #tpu.memory_space<vmem>>, vector<1x1x16x5xf32>
    %273 = vector.shape_cast %272 : vector<1x1x16x5xf32> to vector<16x5xf32>
    %c0_170 = arith.constant 0 : index
    %274 = arith.index_cast %c6_i32 : i32 to index
    %c0_171 = arith.constant 0 : index
    %c0_172 = arith.constant 0 : index
    %275 = vector.load %arg2[%c0_170, %274, %c0_171, %c0_172] : memref<1x8x16x5xf32, #tpu.memory_space<vmem>>, vector<1x1x16x5xf32>
    %276 = vector.shape_cast %275 : vector<1x1x16x5xf32> to vector<16x5xf32>
    %c0_173 = arith.constant 0 : index
    %c0_174 = arith.constant 0 : index
    %277 = vector.load %arg3[%c0_173, %c0_174] : memref<16x16xf32, #tpu.memory_space<vmem>>, vector<16x16xf32>
    %cst_175 = arith.constant dense<0.000000e+00> : vector<16x128xf32>
    %278 = tpu.matmul %277, %270, %cst_175 {dimension_numbers = #tpu.dot_dimension_numbers<[1], [0], [0], [1], [0, 0, 1, 1], [], []>} : vector<16x16xf32>, vector<16x128xf32>, vector<16x128xf32> -> vector<16x128xf32>
    %c0_176 = arith.constant 0 : index
    %c0_177 = arith.constant 0 : index
    %279 = vector.load %arg5[%c0_176, %c0_177] : memref<128x256xf32, #tpu.memory_space<vmem>>, vector<128x256xf32>
    %cst_178 = arith.constant dense<0.000000e+00> : vector<16x256xf32>
    %280 = tpu.matmul %278, %279, %cst_178 {dimension_numbers = #tpu.dot_dimension_numbers<[1], [0], [0], [1], [0, 0, 1, 1], [], []>} : vector<16x128xf32>, vector<128x256xf32>, vector<16x256xf32> -> vector<16x256xf32>
    %c0_179 = arith.constant 0 : index
    %c0_180 = arith.constant 0 : index
    %281 = vector.load %arg7[%c0_179, %c0_180] : memref<5x256xf32, #tpu.memory_space<vmem>>, vector<5x256xf32>
    %cst_181 = arith.constant dense<0.000000e+00> : vector<16x256xf32>
    %282 = tpu.matmul %273, %281, %cst_181 {dimension_numbers = #tpu.dot_dimension_numbers<[1], [0], [0], [1], [0, 0, 1, 1], [], []>} : vector<16x5xf32>, vector<5x256xf32>, vector<16x256xf32> -> vector<16x256xf32>
    %283 = arith.addf %280, %282 : vector<16x256xf32>
    %cst_182 = arith.constant 0.000000e+00 : f32
    %284 = vector.broadcast %cst_182 : f32 to vector<16x256xf32>
    %285 = arith.subf %284, %283 : vector<16x256xf32>
    %286 = math.exp %285 : vector<16x256xf32>
    %cst_183 = arith.constant 1.000000e+00 : f32
    %287 = vector.broadcast %cst_183 : f32 to vector<16x256xf32>
    %288 = arith.addf %287, %286 : vector<16x256xf32>
    %cst_184 = arith.constant 1.000000e+00 : f32
    %289 = vector.broadcast %cst_184 : f32 to vector<16x256xf32>
    %290 = arith.divf %289, %288 : vector<16x256xf32>
    %291 = vector.extract_strided_slice %290 {offsets = [0, 0], sizes = [16, 128], strides = [1, 1]} : vector<16x256xf32> to vector<16x128xf32>
    %292 = vector.extract_strided_slice %290 {offsets = [0, 128], sizes = [16, 128], strides = [1, 1]} : vector<16x256xf32> to vector<16x128xf32>
    %293 = vector.extract_strided_slice %291 {offsets = [0, 0], sizes = [8, 128], strides = [1, 1]} : vector<16x128xf32> to vector<8x128xf32>
    %294 = vector.extract_strided_slice %270 {offsets = [0, 0], sizes = [8, 128], strides = [1, 1]} : vector<16x128xf32> to vector<8x128xf32>
    %295 = arith.mulf %293, %294 : vector<8x128xf32>
    %296 = vector.extract_strided_slice %292 {offsets = [0, 0], sizes = [8, 128], strides = [1, 1]} : vector<16x128xf32> to vector<8x128xf32>
    %297 = vector.extract_strided_slice %270 {offsets = [8, 0], sizes = [8, 128], strides = [1, 1]} : vector<16x128xf32> to vector<8x128xf32>
    %298 = arith.mulf %296, %297 : vector<8x128xf32>
    %299 = tpu.concatenate %295, %298 in 0 : vector<8x128xf32>, vector<8x128xf32> -> vector<16x128xf32>
    %300 = vector.extract_strided_slice %291 {offsets = [8, 0], sizes = [8, 128], strides = [1, 1]} : vector<16x128xf32> to vector<8x128xf32>
    %301 = vector.extract_strided_slice %292 {offsets = [8, 0], sizes = [8, 128], strides = [1, 1]} : vector<16x128xf32> to vector<8x128xf32>
    %302 = tpu.concatenate %300, %301 in 0 : vector<8x128xf32>, vector<8x128xf32> -> vector<16x128xf32>
    %c0_185 = arith.constant 0 : index
    %c0_186 = arith.constant 0 : index
    %303 = vector.load %arg4[%c0_185, %c0_186] : memref<16x16xf32, #tpu.memory_space<vmem>>, vector<16x16xf32>
    %cst_187 = arith.constant dense<0.000000e+00> : vector<16x128xf32>
    %304 = tpu.matmul %303, %299, %cst_187 {dimension_numbers = #tpu.dot_dimension_numbers<[1], [0], [0], [1], [0, 0, 1, 1], [], []>} : vector<16x16xf32>, vector<16x128xf32>, vector<16x128xf32> -> vector<16x128xf32>
    %c0_188 = arith.constant 0 : index
    %c0_189 = arith.constant 0 : index
    %305 = vector.load %arg6[%c0_188, %c0_189] : memref<128x128xf32, #tpu.memory_space<vmem>>, vector<128x128xf32>
    %cst_190 = arith.constant dense<0.000000e+00> : vector<16x128xf32>
    %306 = tpu.matmul %304, %305, %cst_190 {dimension_numbers = #tpu.dot_dimension_numbers<[1], [0], [0], [1], [0, 0, 1, 1], [], []>} : vector<16x128xf32>, vector<128x128xf32>, vector<16x128xf32> -> vector<16x128xf32>
    %c0_191 = arith.constant 0 : index
    %c0_192 = arith.constant 0 : index
    %307 = vector.load %arg8[%c0_191, %c0_192] : memref<5x128xf32, #tpu.memory_space<vmem>>, vector<5x128xf32>
    %cst_193 = arith.constant dense<0.000000e+00> : vector<16x128xf32>
    %308 = tpu.matmul %276, %307, %cst_193 {dimension_numbers = #tpu.dot_dimension_numbers<[1], [0], [0], [1], [0, 0, 1, 1], [], []>} : vector<16x5xf32>, vector<5x128xf32>, vector<16x128xf32> -> vector<16x128xf32>
    %309 = arith.addf %306, %308 : vector<16x128xf32>
    %310 = math.tanh %309 : vector<16x128xf32>
    %311 = arith.mulf %302, %270 : vector<16x128xf32>
    %cst_194 = arith.constant 1.000000e+00 : f32
    %312 = vector.broadcast %cst_194 : f32 to vector<16x128xf32>
    %313 = arith.subf %312, %302 : vector<16x128xf32>
    %314 = arith.mulf %313, %310 : vector<16x128xf32>
    %315 = arith.addf %311, %314 : vector<16x128xf32>
    %c7_i32 = arith.constant 7 : i32
    %c0_195 = arith.constant 0 : index
    %316 = arith.index_cast %c7_i32 : i32 to index
    %c0_196 = arith.constant 0 : index
    %c0_197 = arith.constant 0 : index
    %317 = vector.load %arg1[%c0_195, %316, %c0_196, %c0_197] : memref<1x8x16x5xf32, #tpu.memory_space<vmem>>, vector<1x1x16x5xf32>
    %318 = vector.shape_cast %317 : vector<1x1x16x5xf32> to vector<16x5xf32>
    %c0_198 = arith.constant 0 : index
    %319 = arith.index_cast %c7_i32 : i32 to index
    %c0_199 = arith.constant 0 : index
    %c0_200 = arith.constant 0 : index
    %320 = vector.load %arg2[%c0_198, %319, %c0_199, %c0_200] : memref<1x8x16x5xf32, #tpu.memory_space<vmem>>, vector<1x1x16x5xf32>
    %321 = vector.shape_cast %320 : vector<1x1x16x5xf32> to vector<16x5xf32>
    %c0_201 = arith.constant 0 : index
    %c0_202 = arith.constant 0 : index
    %322 = vector.load %arg3[%c0_201, %c0_202] : memref<16x16xf32, #tpu.memory_space<vmem>>, vector<16x16xf32>
    %cst_203 = arith.constant dense<0.000000e+00> : vector<16x128xf32>
    %323 = tpu.matmul %322, %315, %cst_203 {dimension_numbers = #tpu.dot_dimension_numbers<[1], [0], [0], [1], [0, 0, 1, 1], [], []>} : vector<16x16xf32>, vector<16x128xf32>, vector<16x128xf32> -> vector<16x128xf32>
    %c0_204 = arith.constant 0 : index
    %c0_205 = arith.constant 0 : index
    %324 = vector.load %arg5[%c0_204, %c0_205] : memref<128x256xf32, #tpu.memory_space<vmem>>, vector<128x256xf32>
    %cst_206 = arith.constant dense<0.000000e+00> : vector<16x256xf32>
    %325 = tpu.matmul %323, %324, %cst_206 {dimension_numbers = #tpu.dot_dimension_numbers<[1], [0], [0], [1], [0, 0, 1, 1], [], []>} : vector<16x128xf32>, vector<128x256xf32>, vector<16x256xf32> -> vector<16x256xf32>
    %c0_207 = arith.constant 0 : index
    %c0_208 = arith.constant 0 : index
    %326 = vector.load %arg7[%c0_207, %c0_208] : memref<5x256xf32, #tpu.memory_space<vmem>>, vector<5x256xf32>
    %cst_209 = arith.constant dense<0.000000e+00> : vector<16x256xf32>
    %327 = tpu.matmul %318, %326, %cst_209 {dimension_numbers = #tpu.dot_dimension_numbers<[1], [0], [0], [1], [0, 0, 1, 1], [], []>} : vector<16x5xf32>, vector<5x256xf32>, vector<16x256xf32> -> vector<16x256xf32>
    %328 = arith.addf %325, %327 : vector<16x256xf32>
    %cst_210 = arith.constant 0.000000e+00 : f32
    %329 = vector.broadcast %cst_210 : f32 to vector<16x256xf32>
    %330 = arith.subf %329, %328 : vector<16x256xf32>
    %331 = math.exp %330 : vector<16x256xf32>
    %cst_211 = arith.constant 1.000000e+00 : f32
    %332 = vector.broadcast %cst_211 : f32 to vector<16x256xf32>
    %333 = arith.addf %332, %331 : vector<16x256xf32>
    %cst_212 = arith.constant 1.000000e+00 : f32
    %334 = vector.broadcast %cst_212 : f32 to vector<16x256xf32>
    %335 = arith.divf %334, %333 : vector<16x256xf32>
    %336 = vector.extract_strided_slice %335 {offsets = [0, 0], sizes = [16, 128], strides = [1, 1]} : vector<16x256xf32> to vector<16x128xf32>
    %337 = vector.extract_strided_slice %335 {offsets = [0, 128], sizes = [16, 128], strides = [1, 1]} : vector<16x256xf32> to vector<16x128xf32>
    %338 = vector.extract_strided_slice %336 {offsets = [0, 0], sizes = [8, 128], strides = [1, 1]} : vector<16x128xf32> to vector<8x128xf32>
    %339 = vector.extract_strided_slice %315 {offsets = [0, 0], sizes = [8, 128], strides = [1, 1]} : vector<16x128xf32> to vector<8x128xf32>
    %340 = arith.mulf %338, %339 : vector<8x128xf32>
    %341 = vector.extract_strided_slice %337 {offsets = [0, 0], sizes = [8, 128], strides = [1, 1]} : vector<16x128xf32> to vector<8x128xf32>
    %342 = vector.extract_strided_slice %315 {offsets = [8, 0], sizes = [8, 128], strides = [1, 1]} : vector<16x128xf32> to vector<8x128xf32>
    %343 = arith.mulf %341, %342 : vector<8x128xf32>
    %344 = tpu.concatenate %340, %343 in 0 : vector<8x128xf32>, vector<8x128xf32> -> vector<16x128xf32>
    %345 = vector.extract_strided_slice %336 {offsets = [8, 0], sizes = [8, 128], strides = [1, 1]} : vector<16x128xf32> to vector<8x128xf32>
    %346 = vector.extract_strided_slice %337 {offsets = [8, 0], sizes = [8, 128], strides = [1, 1]} : vector<16x128xf32> to vector<8x128xf32>
    %347 = tpu.concatenate %345, %346 in 0 : vector<8x128xf32>, vector<8x128xf32> -> vector<16x128xf32>
    %c0_213 = arith.constant 0 : index
    %c0_214 = arith.constant 0 : index
    %348 = vector.load %arg4[%c0_213, %c0_214] : memref<16x16xf32, #tpu.memory_space<vmem>>, vector<16x16xf32>
    %cst_215 = arith.constant dense<0.000000e+00> : vector<16x128xf32>
    %349 = tpu.matmul %348, %344, %cst_215 {dimension_numbers = #tpu.dot_dimension_numbers<[1], [0], [0], [1], [0, 0, 1, 1], [], []>} : vector<16x16xf32>, vector<16x128xf32>, vector<16x128xf32> -> vector<16x128xf32>
    %c0_216 = arith.constant 0 : index
    %c0_217 = arith.constant 0 : index
    %350 = vector.load %arg6[%c0_216, %c0_217] : memref<128x128xf32, #tpu.memory_space<vmem>>, vector<128x128xf32>
    %cst_218 = arith.constant dense<0.000000e+00> : vector<16x128xf32>
    %351 = tpu.matmul %349, %350, %cst_218 {dimension_numbers = #tpu.dot_dimension_numbers<[1], [0], [0], [1], [0, 0, 1, 1], [], []>} : vector<16x128xf32>, vector<128x128xf32>, vector<16x128xf32> -> vector<16x128xf32>
    %c0_219 = arith.constant 0 : index
    %c0_220 = arith.constant 0 : index
    %352 = vector.load %arg8[%c0_219, %c0_220] : memref<5x128xf32, #tpu.memory_space<vmem>>, vector<5x128xf32>
    %cst_221 = arith.constant dense<0.000000e+00> : vector<16x128xf32>
    %353 = tpu.matmul %321, %352, %cst_221 {dimension_numbers = #tpu.dot_dimension_numbers<[1], [0], [0], [1], [0, 0, 1, 1], [], []>} : vector<16x5xf32>, vector<5x128xf32>, vector<16x128xf32> -> vector<16x128xf32>
    %354 = arith.addf %351, %353 : vector<16x128xf32>
    %355 = math.tanh %354 : vector<16x128xf32>
    %356 = arith.mulf %347, %315 : vector<16x128xf32>
    %cst_222 = arith.constant 1.000000e+00 : f32
    %357 = vector.broadcast %cst_222 : f32 to vector<16x128xf32>
    %358 = arith.subf %357, %347 : vector<16x128xf32>
    %359 = arith.mulf %358, %355 : vector<16x128xf32>
    %360 = arith.addf %356, %359 : vector<16x128xf32>
    %c8_i32 = arith.constant 8 : i32
    %c0_223 = arith.constant 0 : index
    %c0_224 = arith.constant 0 : index
    %c0_225 = arith.constant 0 : index
    %361 = vector.load %arg9[%c0_223, %c0_224, %c0_225] : memref<1x16x128xf32, #tpu.memory_space<vmem>>, vector<1x16x128xf32>
    %362 = vector.shape_cast %361 : vector<1x16x128xf32> to vector<16x128xf32>
    %363 = vector.shape_cast %360 : vector<16x128xf32> to vector<1x16x128xf32>
    tpu.vector_store %arg9[%c0_223, %c0_224, %c0_225], %363 {strides = array<i32>} : memref<1x16x128xf32, #tpu.memory_space<vmem>>, vector<1x16x128xf32>,
    return
  }
  func.func @transform_0(%arg0: i32) -> (i32, i32, i32, i32) {
    %c0_i32 = arith.constant 0 : i32
    %c0_i32_0 = arith.constant 0 : i32
    %c0_i32_1 = arith.constant 0 : i32
    %c0_i32_2 = arith.constant 0 : i32
    return %arg0, %c0_i32, %c0_i32_0, %c0_i32_1 : i32, i32, i32, i32
  }
  func.func @transform_1(%arg0: i32) -> (i32, i32, i32, i32) {
    %c0_i32 = arith.constant 0 : i32
    %c0_i32_0 = arith.constant 0 : i32
    %c0_i32_1 = arith.constant 0 : i32
    %c0_i32_2 = arith.constant 0 : i32
    return %arg0, %c0_i32, %c0_i32_0, %c0_i32_1 : i32, i32, i32, i32
  }
  func.func @transform_2(%arg0: i32) -> (i32, i32) {
    %c0_i32 = arith.constant 0 : i32
    %c0_i32_0 = arith.constant 0 : i32
    %c0_i32_1 = arith.constant 0 : i32
    return %c0_i32, %c0_i32_0 : i32, i32
  }
  func.func @transform_3(%arg0: i32) -> (i32, i32) {
    %c0_i32 = arith.constant 0 : i32
    %c0_i32_0 = arith.constant 0 : i32
    %c0_i32_1 = arith.constant 0 : i32
    return %c0_i32, %c0_i32_0 : i32, i32
  }
  func.func @transform_4(%arg0: i32) -> (i32, i32) {
    %c0_i32 = arith.constant 0 : i32
    %c0_i32_0 = arith.constant 0 : i32
    %c0_i32_1 = arith.constant 0 : i32
    return %c0_i32, %c0_i32_0 : i32, i32
  }
  func.func @transform_5(%arg0: i32) -> (i32, i32) {
    %c0_i32 = arith.constant 0 : i32
    %c0_i32_0 = arith.constant 0 : i32
    %c0_i32_1 = arith.constant 0 : i32
    return %c0_i32, %c0_i32_0 : i32, i32
  }
  func.func @transform_6(%arg0: i32) -> (i32, i32) {
    %c0_i32 = arith.constant 0 : i32
    %c0_i32_0 = arith.constant 0 : i32
    %c0_i32_1 = arith.constant 0 : i32
    return %c0_i32, %c0_i32_0 : i32, i32
  }
  func.func @transform_7(%arg0: i32) -> (i32, i32) {
    %c0_i32 = arith.constant 0 : i32
    %c0_i32_0 = arith.constant 0 : i32
    %c0_i32_1 = arith.constant 0 : i32
    return %c0_i32, %c0_i32_0 : i32, i32
  }
  func.func @transform_8(%arg0: i32) -> (i32, i32, i32) {
    %c0_i32 = arith.constant 0 : i32
    %c0_i32_0 = arith.constant 0 : i32
    %c0_i32_1 = arith.constant 0 : i32
    return %arg0, %c0_i32, %c0_i32_0 : i32, i32, i32
  }
}

</mosaic_0001>

<bundles_post_ra>
// kernel: tgcn_forward.1
= control target key start
LH: loop header
LB: loop body
LE: loop exit
PB: predicated region body
PF: predicated region fallthrough
CT: control target
= control target key end

     0   :  { %vm35_vm0 = vcmask 130048   ;;  %v6798_v0 = vmov 0.0   ;;  %vm158_vm1 = vcmask 1044480   ;;  %vm151_vm2 = vcmask 39936   ;;  %s6789_s2 = inlined_call_operand.vmem [shape: f32[16,16], index: 2, kind: input, shape index: {}]   ;;  %s6790_s4 = inlined_call_operand.vmem [shape: f32[128,256], index: 4, kind: input, shape index: {}]   ;;  %s6791_s6 = inlined_call_operand.vmem [shape: f32[5,256], index: 6, kind: input, shape index: {}]   ;;  %s6792_s0 = inlined_call_operand.vmem [shape: f32[1,8,16,5], index: 0, kind: input, shape index: {}]   ;;  %s6793_s3 = inlined_call_operand.vmem [shape: f32[16,16], index: 3, kind: input, shape index: {}]   ;;  %s6794_s7 = inlined_call_operand.vmem [shape: f32[5,128], index: 7, kind: input, shape index: {}]   ;;  %s6795_s1 = inlined_call_operand.vmem [shape: f32[1,8,16,5], index: 1, kind: input, shape index: {}]   ;;  %s6796_s5 = inlined_call_operand.vmem [shape: f32[128,128], index: 5, kind: input, shape index: {}]   ;;  %s6797_s8 = inlined_call_operand.vmem [shape: f32[1,16,128], index: 8, kind: output, shape index: {}]  }
   0x1   :  { %4523 = vmatprep.subr.mxu0 %v6798_v0  ;;  %v5253_v1 = vld [vmem:[%s6789_s2] sm:$0xff]  ;;  %v5258_v2 = vld [vmem:[%s6789_s2 + $0x8] sm:$0xff]  ;;  %v5263_v3 = vld [vmem:[%s6790_s4 + $0xf8] sm:$0xff]  ;;  %229 = vmatprep.mubr.f32.mxu1 %v6798_v0 }
   0x2   :  { %6857 = vst [vmem:[#allocation2_spill] sm:$0xff] %v5253_v1  ;;  %6858 = vst [vmem:[#allocation3_spill] sm:$0xff] %v5258_v2  ;;  %4524 = vmatpush3.msra.mxu0 %v6798_v0  ;;  %4525 = vmatprep.mubr.msk.f32.mxu0 %vm35_vm0, %v5253_v1  ;;  %v5272_v4 = vld [vmem:[%s6790_s4 + $0xf0] sm:$0xff]  ;;  %v5277_v5 = vld [vmem:[%s6790_s4 + $0xe8] sm:$0xff] }
   0x3   :  { %4526 = vmatmul.mubr.msk.f32.vlgmr.msra.gmra.mxu0 %vm35_vm0, %v5258_v2  ;;  %242 = vmatprep.subr.mxu0 %v5263_v3  ;;  %v5285_v6 = vld [vmem:[%s6790_s4 + $0xe0] sm:$0xff]  ;;  %v5291_v7 = vld [vmem:[%s6790_s4 + $0xd8] sm:$0xff]  ;;  %v5298_v8 = vld [vmem:[%s6790_s4 + $0xd0] sm:$0xff] }
   0x4   :  { %243 = vmatpush1.msra.mxu0 %v5272_v4  ;;  %306 = vmatprep.mubr.f32.mxu0 %v6798_v0  ;;  %v5304_v9 = vld [vmem:[%s6790_s4 + $0xc8] sm:$0xff]  ;;  %v5310_v10 = vld [vmem:[%s6790_s4 + $0xc0] sm:$0xff]  ;;  %v5316_v11 = vld [vmem:[%s6790_s4 + $0xb8] sm:$0xff] }
   0x5   :  { %244 = vmatprep.subr.mxu0 %v5277_v5  ;;  %v5322_v12 = vld [vmem:[%s6790_s4 + $0xb0] sm:$0xff]  ;;  %v5328_v13 = vld [vmem:[%s6790_s4 + $0xa8] sm:$0xff]  ;;  %v5334_v14 = vld [vmem:[%s6790_s4 + $0xa0] sm:$0xff] }
   0x6   :  { %245 = vmatpush1.msra.mxu0 %v5285_v6  ;;  %v5339_v15 = vld [vmem:[%s6791_s6 + $0x8] sm:$0x1f]  ;;  %v5345_v16 = vld [vmem:[%s6790_s4 + $0x98] sm:$0xff]  ;;  %v5353_v17 = vld [vmem:[%s6790_s4 + $0x90] sm:$0xff] }
   0x7   :  { %246 = vmatprep.subr.mxu0 %v5291_v7  ;;  %6859 = vst [vmem:[#allocation4_spill] sm:$0xff] %v5339_v15  ;;  %4178 = vmatprep.subr.msk.mxu1 %vm158_vm1, %v5339_v15  ;;  %v5359_v18 = vld [vmem:[%s6790_s4 + $0x88] sm:$0xff]  ;;  %v5365_v19 = vld [vmem:[%s6790_s4 + $0x80] sm:$0xff]  ;;  %v5371_v20 = vld [vmem:[%s6790_s4 + $0x78] sm:$0xff] }
   0x8   :  { %247 = vmatpush1.msra.mxu0 %v5298_v8  ;;  %v5377_v21 = vld [vmem:[%s6790_s4 + $0x70] sm:$0xff]  ;;  %v5383_v22 = vld [vmem:[%s6790_s4 + $0x68] sm:$0xff]  ;;  %v5389_v23 = vld [vmem:[%s6790_s4 + $0x60] sm:$0xff] }
   0x9   :  { %248 = vmatprep.subr.mxu0 %v5304_v9  ;;  %v5395_v24 = vld [vmem:[%s6790_s4 + $0x58] sm:$0xff]  ;;  %v5401_v25 = vld [vmem:[%s6790_s4 + $0x50] sm:$0xff]  ;;  %v5407_v26 = vld [vmem:[%s6790_s4 + $0x48] sm:$0xff] }
   0xa   :  { %249 = vmatpush1.msra.mxu0 %v5310_v10  ;;  %v5413_v27 = vld [vmem:[%s6790_s4 + $0x40] sm:$0xff]  ;;  %v5419_v28 = vld [vmem:[%s6790_s4 + $0x38] sm:$0xff]  ;;  %v5425_v29 = vld [vmem:[%s6790_s4 + $0x30] sm:$0xff] }
   0xb   :  { %250 = vmatprep.subr.mxu0 %v5316_v11  ;;  %6860 = vst [vmem:[#allocation5_spill] sm:$0xff] %v5419_v28  ;;  %6861 = vst [vmem:[#allocation6_spill] sm:$0xff] %v5425_v29  ;;  %v5431_v30 = vld [vmem:[%s6790_s4 + $0x28] sm:$0xff]  ;;  %v5437_v31 = vld [vmem:[%s6790_s4 + $0x20] sm:$0xff] }
   0xc   :  { %251 = vmatpush1.msra.mxu0 %v5322_v12  ;;  %6862 = vst [vmem:[#allocation7_spill] sm:$0xff] %v5431_v30  ;;  %6863 = vst [vmem:[#allocation8_spill] sm:$0xff] %v5437_v31  ;;  %v5443_v32 = vld [vmem:[%s6790_s4 + $0x18] sm:$0xff]  ;;  %v5451_v33 = vld [vmem:[%s6791_s6] sm:$0x1f] }
   0xd   :  { %252 = vmatprep.subr.mxu0 %v5328_v13  ;;  %6864 = vst [vmem:[#allocation9_spill] sm:$0xff] %v5443_v32  ;;  %6865 = vst [vmem:[#allocation10_spill] sm:$0xff] %v5451_v33  ;;  %v5456_v34 = vld [vmem:[%s6790_s4 + $0x10] sm:$0xff]  ;;  %4179 = vmatpush1.msk.msra.mxu1 %vm158_vm1, %v5451_v33  ;;  %v29_v35 = vld [vmem:[%s6792_s0] sm:$0xff] }
   0xe   :  { %253 = vmatpush1.msra.mxu0 %v5334_v14  ;;  %6866 = vst [vmem:[#allocation11_spill] sm:$0xff] %v5456_v34  ;;  %v5467_v36 = vld [vmem:[%s6790_s4 + $0x8] sm:$0xff]  ;;  %4180 = vmatmul.mubr.msk.f32.vlgmr.msra.gmra.mxu1 %vm151_vm2, %v29_v35  ;;  %v5474_v37 = vld [vmem:[%s6790_s4] sm:$0xff]  ;;  %v5512_v63 = vld [vmem:[%s6796_s5 + $0x78] sm:$0xff] }
   0xf   :  { %254 = vmatprep.subr.mxu0 %v5345_v16  ;;  %6867 = vst [vmem:[#allocation12_spill] sm:$0xff] %v5467_v36  ;;  %6868 = vst [vmem:[#allocation13_spill] sm:$0xff] %v5474_v37  ;;  %235 = vmatprep.mubr.f32.mxu1 %v6798_v0  ;;  %v30_v38 = vld [vmem:[%s6792_s0 + $0x8] sm:$0xff]  ;;  %v5492_v41 = vld [vmem:[%s6793_s3] sm:$0xff] }
  0x10   :  { %255 = vmatpush1.msra.mxu0 %v5353_v17  ;;  %6869 = vst [vmem:[#allocation14_spill] sm:$0xff] %v5492_v41  ;;  %v5499_v60 = vld [vmem:[%s6793_s3 + $0x8] sm:$0xff]  ;;  %v5504_v61 = vld [vmem:[%s6794_s7] sm:$0x1f] }
  0x11   :  { %256 = vmatprep.subr.mxu0 %v5359_v18  ;;  %v31_v62 = vld [vmem:[%s6795_s1] sm:$0xff]  ;;  %v32_v35 = vld [vmem:[%s6795_s1 + $0x8] sm:$0xff] }
  0x12   :  { %257 = vmatpush1.msra.mxu0 %v5365_v19  ;;  %4181 = vmatmul.mubr.msk.f32.gmra.mxu1 %vm151_vm2, %v30_v38  ;;  %v5528_v38 = vld [vmem:[%s6796_s5 + $0x70] sm:$0xff] }
  0x13   :  { %258 = vmatprep.subr.mxu0 %v5371_v20  ;;  %4532 = vmatprep.mubr.msk.f32.mxu1 %vm35_vm0, %v5492_v41 }
  0x14   :  { %259 = vmatpush1.msra.mxu0 %v5377_v21 }
  0x15   :  { %260 = vmatprep.subr.mxu0 %v5383_v22 }
  0x16   :  { %261 = vmatpush1.msra.mxu0 %v5389_v23 }
  0x17   :  { %262 = vmatprep.subr.mxu0 %v5395_v24 }
  0x18   :  { %263 = vmatpush1.msra.mxu0 %v5401_v25 }
  0x19   :  { %264 = vmatprep.subr.mxu0 %v5407_v26 }
  0x1a   :  { %265 = vmatpush1.msra.mxu0 %v5413_v27 }
  0x1b   :  { %266 = vmatprep.subr.mxu0 %v5419_v28 }
  0x1c   :  { %267 = vmatpush1.msra.mxu0 %v5425_v29 }
  0x1d   :  { %268 = vmatprep.subr.mxu0 %v5431_v30 }
  0x1e   :  { %269 = vmatpush1.msra.mxu0 %v5437_v31 }
  0x1f   :  { %270 = vmatprep.subr.mxu0 %v5443_v32 }
  0x20   :  { %271 = vmatpush1.msra.mxu0 %v5456_v34 }
  0x21   :  { %272 = vmatprep.subr.mxu0 %v5467_v36 }
  0x22   :  { %273 = vmatpush1.msra.mxu0 %v5474_v37 }
  0x23   :  { %4193 = vmatprep.subr.msk.mxu0 %vm158_vm1, %v5339_v15 }
  0xc3   :  { %v4527_v39 = vpop.f32.mrf.mxu0 }
  0xc5   :  { %v108_v40 = vpop.f32.mrf.mxu0 }
  0xc6   :  { %307 = vmatmul.mubr.f32.vlgmr.msra.gmra.mxu0 %v108_v40  ;;  %v5542_v40 = vld [vmem:[%s6796_s5 + $0x60] sm:$0xff] }
  0xc7   :  { %312 = vmatprep.mubr.f32.mxu0 %v6798_v0  ;;  %4194 = vmatpush1.msk.msra.mxu0 %vm158_vm1, %v5451_v33 }
  0xc8   :  { %778 = vmatprep.subr.mxu0 %v5263_v3 }
  0xca   :  { %313 = vmatmul.mubr.f32.gmra.mxu0 %v4527_v39  ;;  %v5535_v39 = vld [vmem:[%s6796_s5 + $0x68] sm:$0xff] }
  0xcb   :  { %765 = vmatprep.mubr.f32.mxu0 %v6798_v0 }
  0xce   :  { %v231_v42 = vpop.f32.mrf.mxu1 }
  0xd0   :  { %v233_v45 = vpop.f32.mrf.mxu1 }
 0x186   :  { %v308_v43 = vpop.f32.mrf.mxu0 }
 0x187   :  { %v309_v44 = vadd.f32 %v308_v43, %v231_v42  ;;  %v5549_v42 = vld [vmem:[%s6796_s5 + $0x58] sm:$0xff]  ;;  %v5556_v43 = vld [vmem:[%s6796_s5 + $0x50] sm:$0xff] }
 0x188   :  { %v310_v46 = vpop.f32.mrf.mxu0 }
 0x189   :  { %v319_v47 = vsub.f32 0.0, %v309_v44  ;;  %v311_v48 = vadd.f32 %v310_v46, %v233_v45  ;;  %v5563_v44 = vld [vmem:[%s6796_s5 + $0x48] sm:$0xff]  ;;  %v5570_v45 = vld [vmem:[%s6796_s5 + $0x40] sm:$0xff]  ;;  %v5577_v46 = vld [vmem:[%s6796_s5 + $0x38] sm:$0xff] }
 0x18b   :  { %v323_v49 = vmul.f32 1.442695, %v319_v47  ;;  %v320_v50 = vsub.f32 0.0, %v311_v48  ;;  %v5584_v47 = vld [vmem:[%s6796_s5 + $0x30] sm:$0xff]  ;;  %v5591_v48 = vld [vmem:[%s6796_s5 + $0x28] sm:$0xff] }
 0x18d   :  { %4954 = vpow2.f32 %v323_v49  ;;  %v325_v51 = vmul.f32 1.442695, %v320_v50  ;;  %v5598_v49 = vld [vmem:[%s6796_s5 + $0x20] sm:$0xff]  ;;  %v5605_v50 = vld [vmem:[%s6796_s5 + $0x18] sm:$0xff] }
 0x18f   :  { %4956 = vpow2.f32 %v325_v51  ;;  %v5612_v51 = vld [vmem:[%s6796_s5 + $0x10] sm:$0xff] }
 0x19a   :  { %v4955_v52 = vpop.eup %4954 }
 0x19b   :  { %v331_v53 = vadd.f32 1.0, %v4955_v52  ;;  %v5621_v52 = vld [vmem:[%s6796_s5 + $0x8] sm:$0xff] }
 0x19c   :  { %v4957_v54 = vpop.eup %4956 }
 0x19d   :  { %v332_v55 = vadd.f32 1.0, %v4957_v54  ;;  %4958 = vrcp.f32 %v331_v53  ;;  %v5628_v53 = vld [vmem:[%s6796_s5] sm:$0xff]  ;;  %v237_v54 = vpop.f32.mrf.mxu1 }
 0x19f   :  { %4960 = vrcp.f32 %v332_v55  ;;  %v239_v55 = vpop.f32.mrf.mxu1 }
 0x1aa   :  { %v4959_v56 = vpop.eup %4958 }
 0x1ab   :  { %v343_v59 = vmul.f32 0.0, %v4959_v56 }
 0x1ac   :  { %v4961_v57 = vpop.eup %4960 }
 0x1ad   :  { %v344_v58 = vmul.f32 0.0, %v4961_v57 }
 0x1af   :  { %4528 = vmatprep.subr.mxu1 %v344_v58 }
 0x1b0   :  { %4529 = vmatpush3.msra.mxu1 %v344_v58  ;;  %v4187_v58 = vld [vmem:[%s6792_s0 + $0x10] sm:$0xff] }
 0x1b1   :  { %4530 = vmatprep.subr.mxu1 %v343_v59  ;;  %4195 = vmatmul.mubr.msk.f32.vlgmr.msra.gmra.mxu0 %vm151_vm2, %v4187_v58 }
 0x1b2   :  { %4531 = vmatpush3.msra.mxu1 %v343_v59  ;;  %779 = vmatpush1.msra.mxu0 %v5272_v4  ;;  %v4188_v59 = vld [vmem:[%s6792_s0 + $0x18] sm:$0xff] }
 0x1b3   :  { %4533 = vmatmul.mubr.msk.f32.vlgmr.msra.gmra.mxu1 %vm35_vm0, %v5499_v60  ;;  %4535 = vmatprep.subr.msk.mxu1 %vm158_vm1, %v5504_v61 }
 0x1b4   :  { %4536 = vmatpush3.msk.msra.mxu1 %vm158_vm1, %v5504_v61  ;;  %4537 = vmatprep.mubr.msk.f32.mxu1 %vm151_vm2, %v31_v62  ;;  %v314_v62 = vpop.f32.mrf.mxu0 }
 0x1b5   :  { %4540 = vmatprep.subr.mxu1 %v5512_v63  ;;  %771 = vmatprep.mubr.f32.mxu0 %v6798_v0 }
 0x1b6   :  { %780 = vmatprep.subr.mxu0 %v5277_v5  ;;  %4196 = vmatmul.mubr.msk.f32.gmra.mxu0 %vm151_vm2, %v4188_v59 }
 0x1b7   :  { %4538 = vmatmul.mubr.msk.f32.vlgmr.msra.gmra.mxu1 %vm151_vm2, %v32_v35  ;;  %781 = vmatpush1.msra.mxu0 %v5285_v6  ;;  %v316_v35 = vpop.f32.mrf.mxu0 }
 0x1b8   :  { %4541 = vmatpush3.msra.mxu1 %v5512_v63  ;;  %782 = vmatprep.subr.mxu0 %v5291_v7 }
 0x1b9   :  { %4542 = vmatprep.subr.mxu1 %v5528_v38  ;;  %783 = vmatpush1.msra.mxu0 %v5298_v8 }
 0x1ba   :  { %4543 = vmatpush3.msra.mxu1 %v5528_v38  ;;  %842 = vmatprep.mubr.f32.mxu0 %v6798_v0 }
 0x1bb   :  { %4544 = vmatprep.subr.mxu1 %v5535_v39  ;;  %784 = vmatprep.subr.mxu0 %v5304_v9 }
 0x1bc   :  { %4545 = vmatpush3.msra.mxu1 %v5535_v39  ;;  %785 = vmatpush1.msra.mxu0 %v5310_v10 }
 0x1bd   :  { %4546 = vmatprep.subr.mxu1 %v5542_v40  ;;  %786 = vmatprep.subr.mxu0 %v5316_v11 }
 0x1be   :  { %4547 = vmatpush3.msra.mxu1 %v5542_v40  ;;  %787 = vmatpush1.msra.mxu0 %v5322_v12 }
 0x1bf   :  { %4548 = vmatprep.subr.mxu1 %v5549_v42  ;;  %788 = vmatprep.subr.mxu0 %v5328_v13 }
 0x1c0   :  { %4549 = vmatpush3.msra.mxu1 %v5549_v42  ;;  %789 = vmatpush1.msra.mxu0 %v5334_v14 }
 0x1c1   :  { %4550 = vmatprep.subr.mxu1 %v5556_v43  ;;  %790 = vmatprep.subr.mxu0 %v5345_v16 }
 0x1c2   :  { %4551 = vmatpush3.msra.mxu1 %v5556_v43  ;;  %791 = vmatpush1.msra.mxu0 %v5353_v17 }
 0x1c3   :  { %4552 = vmatprep.subr.mxu1 %v5563_v44  ;;  %792 = vmatprep.subr.mxu0 %v5359_v18 }
 0x1c4   :  { %4553 = vmatpush3.msra.mxu1 %v5563_v44  ;;  %793 = vmatpush1.msra.mxu0 %v5365_v19 }
 0x1c5   :  { %4554 = vmatprep.subr.mxu1 %v5570_v45  ;;  %794 = vmatprep.subr.mxu0 %v5371_v20 }
 0x1c6   :  { %4555 = vmatpush3.msra.mxu1 %v5570_v45  ;;  %795 = vmatpush1.msra.mxu0 %v5377_v21 }
 0x1c7   :  { %4556 = vmatprep.subr.mxu1 %v5577_v46  ;;  %796 = vmatprep.subr.mxu0 %v5383_v22 }
 0x1c8   :  { %4557 = vmatpush3.msra.mxu1 %v5577_v46  ;;  %797 = vmatpush1.msra.mxu0 %v5389_v23 }
 0x1c9   :  { %4558 = vmatprep.subr.mxu1 %v5584_v47  ;;  %798 = vmatprep.subr.mxu0 %v5395_v24 }
 0x1ca   :  { %4559 = vmatpush3.msra.mxu1 %v5584_v47  ;;  %799 = vmatpush1.msra.mxu0 %v5401_v25 }
 0x1cb   :  { %4560 = vmatprep.subr.mxu1 %v5591_v48  ;;  %800 = vmatprep.subr.mxu0 %v5407_v26 }
 0x1cc   :  { %4561 = vmatpush3.msra.mxu1 %v5591_v48  ;;  %801 = vmatpush1.msra.mxu0 %v5413_v27 }
 0x1cd   :  { %4562 = vmatprep.subr.mxu1 %v5598_v49  ;;  %802 = vmatprep.subr.mxu0 %v5419_v28 }
 0x1ce   :  { %4563 = vmatpush3.msra.mxu1 %v5598_v49  ;;  %803 = vmatpush1.msra.mxu0 %v5425_v29 }
 0x1cf   :  { %4564 = vmatprep.subr.mxu1 %v5605_v50  ;;  %804 = vmatprep.subr.mxu0 %v5431_v30 }
 0x1d0   :  { %4565 = vmatpush3.msra.mxu1 %v5605_v50  ;;  %805 = vmatpush1.msra.mxu0 %v5437_v31 }
 0x1d1   :  { %4566 = vmatprep.subr.mxu1 %v5612_v51  ;;  %806 = vmatprep.subr.mxu0 %v5443_v32 }
 0x1d2   :  { %4567 = vmatpush3.msra.mxu1 %v5612_v51  ;;  %807 = vmatpush1.msra.mxu0 %v5456_v34 }
 0x1d3   :  { %4568 = vmatprep.subr.mxu1 %v5621_v52  ;;  %808 = vmatprep.subr.mxu0 %v5467_v36 }
 0x1d4   :  { %4569 = vmatpush3.msra.mxu1 %v5621_v52  ;;  %809 = vmatpush1.msra.mxu0 %v5474_v37 }
 0x1d5   :  { %4570 = vmatprep.subr.mxu1 %v5628_v53 }
 0x1d6   :  { %4571 = vmatpush3.msra.mxu1 %v5628_v53 }
 0x273   :  { %v4534_v56 = vpop.f32.mrf.mxu1 }
 0x275   :  { %v419_v57 = vpop.f32.mrf.mxu1 }
 0x276   :  { %4572 = vmatprep.mubr.f32.mxu1 %v419_v57  ;;  %v315_v57 = vadd.f32 %v314_v62, %v237_v54 }
 0x277   :  { %4573 = vmatmul.mubr.f32.vlgmr.msra.gmra.mxu1 %v4534_v56  ;;  %v317_v56 = vadd.f32 %v316_v35, %v239_v55  ;;  %v4539_v30 = vpop.f32.mrf.mxu1 }
 0x278   :  { %4579 = vmatprep.mubr.msk.f32.mxu1 %vm35_vm0, %v5253_v1  ;;  %v321_v59 = vsub.f32 0.0, %v315_v57 }
 0x279   :  { %v322_v58 = vsub.f32 0.0, %v317_v56  ;;  %v520_v34 = vpop.f32.mrf.mxu1 }
 0x27a   :  { %v327_v33 = vmul.f32 1.442695, %v321_v59 }
 0x27b   :  { %v329_v0 = vmul.f32 1.442695, %v322_v58 }
 0x27d   :  { %4962 = vpow2.f32 %v329_v0 }
 0x27e   :  { %4964 = vpow2.f32 %v327_v33 }
 0x28a   :  { %v4963_v15 = vpop.eup %4962 }
 0x28b   :  { %v4965_v31 = vpop.eup %4964  ;;  %v334_v32 = vadd.f32 1.0, %v4963_v15 }
 0x28c   :  { %v333_v29 = vadd.f32 1.0, %v4965_v31 }
 0x28d   :  { %4966 = vrcp.f32 %v334_v32  ;;  %v6870_v32 = vmov 0.0  }
 0x28e   :  { %4968 = vrcp.f32 %v333_v29 }
 0x29a   :  { %v4967_v54 = vpop.eup %4966 }
 0x29b   :  { %v4969_v62 = vpop.eup %4968  ;;  %v609_v35 = vsub.f32 1.0, %v4967_v54  ;;  %v607_v0 = vmul.f32 0.0, %v4967_v54 }
 0x29c   :  { %v608_v57 = vsub.f32 1.0, %v4969_v62  ;;  %v606_v15 = vmul.f32 0.0, %v4969_v62 }
 0x337   :  { %v4574_v36 = vpop.f32.mrf.mxu1 }
 0x338   :  { %v601_v37 = vadd.f32 %v4574_v36, %v4539_v30 }
 0x339   :  { %v595_v28 = vpop.f32.mrf.mxu1 }
 0x33a   :  { %4970 = vtanh.f32 %v601_v37  ;;  %v596_v55 = vadd.f32 %v595_v28, %v520_v34  ;;  %v767_v34 = vpop.f32.mrf.mxu0 }
 0x33c   :  { %4972 = vtanh.f32 %v596_v55  ;;  %v769_v36 = vpop.f32.mrf.mxu0 }
 0x33e   :  { %v5690_v37 = vpop.f32.mrf.mxu0 }
 0x340   :  { %v5692_v55 = vpop.f32.mrf.mxu0 }
 0x347   :  { %v4971_v56 = vpop.eup %4970 }
 0x348   :  { %v611_v33 = vmul.f32 %v4971_v56, %v609_v35 }
 0x349   :  { %v4973_v58 = vpop.eup %4972 }
 0x34a   :  { %v5675_v59 = vadd.f32 %v611_v33, %v607_v0  ;;  %v610_v31 = vmul.f32 %v4973_v58, %v608_v57 }
 0x34c   :  { %4575 = vmatprep.subr.mxu1 %v5675_v59  ;;  %v5678_v29 = vadd.f32 %v610_v31, %v606_v15 }
 0x34d   :  { %4576 = vmatpush3.msra.mxu1 %v5675_v59 }
 0x34e   :  { %4577 = vmatprep.subr.mxu1 %v5678_v29 }
 0x34f   :  { %4578 = vmatpush3.msra.mxu1 %v5678_v29 }
 0x350   :  { %4580 = vmatmul.mubr.msk.f32.vlgmr.msra.gmra.mxu1 %vm35_vm0, %v5258_v2 }
 0x351   :  { %4586 = vmatprep.mubr.msk.f32.mxu1 %vm35_vm0, %v5492_v41 }
 0x410   :  { %v4581_v28 = vpop.f32.mrf.mxu1 }
 0x412   :  { %v686_v30 = vpop.f32.mrf.mxu1 }
 0x413   :  { %843 = vmatmul.mubr.f32.vlgmr.msra.gmra.mxu0 %v686_v30 }
 0x414   :  { %848 = vmatprep.mubr.f32.mxu0 %v6870_v32 }
 0x417   :  { %849 = vmatmul.mubr.f32.gmra.mxu0 %v4581_v28 }
 0x418   :  { %4633 = vmatprep.mubr.msk.f32.mxu0 %vm35_vm0, %v5253_v1 }
 0x4d3   :  { %v844_v54 = vpop.f32.mrf.mxu0 }
 0x4d4   :  { %v845_v62 = vadd.f32 %v844_v54, %v767_v34 }
 0x4d5   :  { %v846_v35 = vpop.f32.mrf.mxu0 }
 0x4d6   :  { %v855_v56 = vsub.f32 0.0, %v845_v62  ;;  %v847_v0 = vadd.f32 %v846_v35, %v769_v36  ;;  %v4189_v36 = vld [vmem:[%s6795_s1 + $0x10] sm:$0xff] }
 0x4d8   :  { %v859_v33 = vmul.f32 1.442695, %v855_v56  ;;  %v856_v57 = vsub.f32 0.0, %v847_v0 }
 0x4da   :  { %4974 = vpow2.f32 %v859_v33  ;;  %v861_v58 = vmul.f32 1.442695, %v856_v57 }
 0x4dc   :  { %4976 = vpow2.f32 %v861_v58 }
 0x4e7   :  { %v4975_v15 = vpop.eup %4974 }
 0x4e8   :  { %v867_v31 = vadd.f32 1.0, %v4975_v15 }
 0x4e9   :  { %v4977_v28 = vpop.eup %4976 }
 0x4ea   :  { %v868_v30 = vadd.f32 1.0, %v4977_v28  ;;  %4978 = vrcp.f32 %v867_v31 }
 0x4ec   :  { %4980 = vrcp.f32 %v868_v30 }
 0x4f7   :  { %v4979_v1 = vpop.eup %4978 }
 0x4f8   :  { %v879_v34 = vmul.f32 %v4979_v1, %v5678_v29  ;;  %v4190_v1 = vld [vmem:[%s6795_s1 + $0x18] sm:$0xff] }
 0x4f9   :  { %v4981_v41 = vpop.eup %4980 }
 0x4fa   :  { %v880_v2 = vmul.f32 %v4981_v41, %v5675_v59 }
 0x4fc   :  { %4582 = vmatprep.subr.mxu1 %v880_v2 }
 0x4fd   :  { %4583 = vmatpush3.msra.mxu1 %v880_v2 }
 0x4fe   :  { %4584 = vmatprep.subr.mxu1 %v879_v34 }
 0x4ff   :  { %4585 = vmatpush3.msra.mxu1 %v879_v34  ;;  %v6879_v34 = vld [vmem:[#allocation3_spill] sm:$0xff] }
 0x500   :  { %4587 = vmatmul.mubr.msk.f32.vlgmr.msra.gmra.mxu1 %vm35_vm0, %v5499_v60  ;;  %4589 = vmatprep.subr.msk.mxu1 %vm158_vm1, %v5504_v61 }
 0x501   :  { %4590 = vmatpush3.msk.msra.mxu1 %vm158_vm1, %v5504_v61  ;;  %4591 = vmatprep.mubr.msk.f32.mxu1 %vm151_vm2, %v4189_v36  ;;  %v6881_v36 = vld [vmem:[#allocation10_spill] sm:$0xff] }
 0x502   :  { %4594 = vmatprep.subr.mxu1 %v5512_v63 }
 0x504   :  { %4592 = vmatmul.mubr.msk.f32.vlgmr.msra.gmra.mxu1 %vm151_vm2, %v4190_v1  ;;  %v4203_v1 = vld [vmem:[%s6792_s0 + $0x28] sm:$0xff] }
 0x505   :  { %4595 = vmatpush3.msra.mxu1 %v5512_v63 }
 0x506   :  { %4596 = vmatprep.subr.mxu1 %v5528_v38 }
 0x507   :  { %4597 = vmatpush3.msra.mxu1 %v5528_v38 }
 0x508   :  { %4598 = vmatprep.subr.mxu1 %v5535_v39 }
 0x509   :  { %4599 = vmatpush3.msra.mxu1 %v5535_v39 }
 0x50a   :  { %4600 = vmatprep.subr.mxu1 %v5542_v40 }
 0x50b   :  { %4601 = vmatpush3.msra.mxu1 %v5542_v40 }
 0x50c   :  { %4602 = vmatprep.subr.mxu1 %v5549_v42 }
 0x50d   :  { %4603 = vmatpush3.msra.mxu1 %v5549_v42 }
 0x50e   :  { %4604 = vmatprep.subr.mxu1 %v5556_v43 }
 0x50f   :  { %4605 = vmatpush3.msra.mxu1 %v5556_v43 }
 0x510   :  { %4606 = vmatprep.subr.mxu1 %v5563_v44 }
 0x511   :  { %4607 = vmatpush3.msra.mxu1 %v5563_v44 }
 0x512   :  { %4608 = vmatprep.subr.mxu1 %v5570_v45 }
 0x513   :  { %4609 = vmatpush3.msra.mxu1 %v5570_v45 }
 0x514   :  { %4610 = vmatprep.subr.mxu1 %v5577_v46 }
 0x515   :  { %4611 = vmatpush3.msra.mxu1 %v5577_v46 }
 0x516   :  { %4612 = vmatprep.subr.mxu1 %v5584_v47 }
 0x517   :  { %4613 = vmatpush3.msra.mxu1 %v5584_v47 }
 0x518   :  { %4614 = vmatprep.subr.mxu1 %v5591_v48 }
 0x519   :  { %4615 = vmatpush3.msra.mxu1 %v5591_v48 }
 0x51a   :  { %4616 = vmatprep.subr.mxu1 %v5598_v49 }
 0x51b   :  { %4617 = vmatpush3.msra.mxu1 %v5598_v49 }
 0x51c   :  { %4618 = vmatprep.subr.mxu1 %v5605_v50 }
 0x51d   :  { %4619 = vmatpush3.msra.mxu1 %v5605_v50 }
 0x51e   :  { %4620 = vmatprep.subr.mxu1 %v5612_v51 }
 0x51f   :  { %4621 = vmatpush3.msra.mxu1 %v5612_v51 }
 0x520   :  { %4622 = vmatprep.subr.mxu1 %v5621_v52 }
 0x521   :  { %4623 = vmatpush3.msra.mxu1 %v5621_v52 }
 0x522   :  { %4624 = vmatprep.subr.mxu1 %v5628_v53 }
 0x523   :  { %4625 = vmatpush3.msra.mxu1 %v5628_v53 }
 0x524   :  { %1286 = vmatprep.subr.mxu1 %v5263_v3  ;;  %v6871_v3 = vld [vmem:[#allocation5_spill] sm:$0xff] }
 0x5c0   :  { %v4588_v2 = vpop.f32.mrf.mxu1 }
 0x5c2   :  { %v947_v41 = vpop.f32.mrf.mxu1 }
 0x5c3   :  { %4626 = vmatprep.mubr.f32.mxu1 %v947_v41 }
 0x5c4   :  { %4627 = vmatmul.mubr.f32.vlgmr.msra.gmra.mxu1 %v4588_v2  ;;  %v6882_v2 = vld [vmem:[#allocation14_spill] sm:$0xff] }
 0x5c5   :  { %1287 = vmatpush1.msra.mxu1 %v5272_v4  ;;  %1350 = vmatprep.mubr.f32.mxu1 %v6870_v32  ;;  %v6872_v4 = vld [vmem:[#allocation6_spill] sm:$0xff] }
 0x5c6   :  { %1288 = vmatprep.subr.mxu1 %v5277_v5  ;;  %v6873_v5 = vld [vmem:[#allocation7_spill] sm:$0xff] }
 0x5c7   :  { %1289 = vmatpush1.msra.mxu1 %v5285_v6  ;;  %v6874_v6 = vld [vmem:[#allocation8_spill] sm:$0xff] }
 0x5c8   :  { %1290 = vmatprep.subr.mxu1 %v5291_v7  ;;  %v6875_v7 = vld [vmem:[#allocation9_spill] sm:$0xff] }
 0x5c9   :  { %1291 = vmatpush1.msra.mxu1 %v5298_v8  ;;  %v6876_v8 = vld [vmem:[#allocation11_spill] sm:$0xff] }
 0x5ca   :  { %1292 = vmatprep.subr.mxu1 %v5304_v9  ;;  %v6877_v9 = vld [vmem:[#allocation12_spill] sm:$0xff] }
 0x5cb   :  { %1293 = vmatpush1.msra.mxu1 %v5310_v10  ;;  %v6878_v10 = vld [vmem:[#allocation13_spill] sm:$0xff] }
 0x5cc   :  { %1294 = vmatprep.subr.mxu1 %v5316_v11  ;;  %v850_v11 = vpop.f32.mrf.mxu0 }
 0x5cd   :  { %1295 = vmatpush1.msra.mxu1 %v5322_v12 }
 0x5ce   :  { %1296 = vmatprep.subr.mxu1 %v5328_v13  ;;  %v852_v12 = vpop.f32.mrf.mxu0 }
 0x5cf   :  { %1297 = vmatpush1.msra.mxu1 %v5334_v14  ;;  %v853_v13 = vadd.f32 %v852_v12, %v5692_v55  ;;  %v851_v14 = vadd.f32 %v850_v11, %v5690_v37 }
 0x5d0   :  { %1298 = vmatprep.subr.mxu1 %v5345_v16 }
 0x5d1   :  { %1299 = vmatpush1.msra.mxu1 %v5353_v17  ;;  %v858_v16 = vsub.f32 0.0, %v853_v13  ;;  %v857_v17 = vsub.f32 0.0, %v851_v14 }
 0x5d2   :  { %1300 = vmatprep.subr.mxu1 %v5359_v18 }
 0x5d3   :  { %1301 = vmatpush1.msra.mxu1 %v5365_v19  ;;  %v865_v18 = vmul.f32 1.442695, %v858_v16  ;;  %v863_v19 = vmul.f32 1.442695, %v857_v17 }
 0x5d4   :  { %1302 = vmatprep.subr.mxu1 %v5371_v20 }
 0x5d5   :  { %1303 = vmatpush1.msra.mxu1 %v5377_v21  ;;  %4982 = vpow2.f32 %v865_v18 }
 0x5d6   :  { %1304 = vmatprep.subr.mxu1 %v5383_v22  ;;  %4984 = vpow2.f32 %v863_v19  ;;  %v4593_v22 = vpop.f32.mrf.mxu1 }
 0x5d7   :  { %1305 = vmatpush1.msra.mxu1 %v5389_v23 }
 0x5d8   :  { %1306 = vmatprep.subr.mxu1 %v5395_v24 }
 0x5d9   :  { %1307 = vmatpush1.msra.mxu1 %v5401_v25  ;;  %v1028_v25 = vpop.f32.mrf.mxu1 }
 0x5da   :  { %1308 = vmatprep.subr.mxu1 %v5407_v26 }
 0x5db   :  { %1309 = vmatpush1.msra.mxu1 %v5413_v27 }
 0x5dc   :  { %1310 = vmatprep.subr.mxu1 %v6871_v3 }
 0x5dd   :  { %1311 = vmatpush1.msra.mxu1 %v6872_v4  ;;  %v6883_v4 = vld [vmem:[#allocation2_spill] sm:$0xff] }
 0x5de   :  { %1312 = vmatprep.subr.mxu1 %v6873_v5 }
 0x5df   :  { %1313 = vmatpush1.msra.mxu1 %v6874_v6 }
 0x5e0   :  { %1314 = vmatprep.subr.mxu1 %v6875_v7 }
 0x5e1   :  { %1315 = vmatpush1.msra.mxu1 %v6876_v8 }
 0x5e2   :  { %1316 = vmatprep.subr.mxu1 %v6877_v9  ;;  %v4983_v20 = vpop.eup %4982 }
 0x5e3   :  { %1317 = vmatpush1.msra.mxu1 %v6878_v10  ;;  %v4985_v21 = vpop.eup %4984  ;;  %v870_v23 = vadd.f32 1.0, %v4983_v20 }
 0x5e4   :  { %v869_v24 = vadd.f32 1.0, %v4985_v21 }
 0x5e5   :  { %4986 = vrcp.f32 %v870_v23 }
 0x5e6   :  { %4988 = vrcp.f32 %v869_v24 }
 0x5f2   :  { %v4987_v37 = vpop.eup %4986 }
 0x5f3   :  { %v4989_v62 = vpop.eup %4988  ;;  %v1117_v35 = vsub.f32 1.0, %v4987_v37  ;;  %v1115_v0 = vmul.f32 %v4987_v37, %v5675_v59  ;;  %v6880_v59 = vld [vmem:[#allocation4_spill] sm:$0xff] }
 0x5f4   :  { %v1116_v57 = vsub.f32 1.0, %v4989_v62  ;;  %v1114_v31 = vmul.f32 %v4989_v62, %v5678_v29  ;;  %v4202_v29 = vld [vmem:[%s6792_s0 + $0x20] sm:$0xff] }
 0x684   :  { %v4628_v26 = vpop.f32.mrf.mxu1 }
 0x685   :  { %v1109_v27 = vadd.f32 %v4628_v26, %v4593_v22  ;;  %v4204_v26 = vld [vmem:[%s6795_s1 + $0x20] sm:$0xff] }
 0x686   :  { %v1103_v54 = vpop.f32.mrf.mxu1 }
 0x687   :  { %4990 = vtanh.f32 %v1109_v27  ;;  %v1104_v55 = vadd.f32 %v1103_v54, %v1028_v25  ;;  %v4205_v27 = vld [vmem:[%s6795_s1 + $0x28] sm:$0xff] }
 0x689   :  { %4992 = vtanh.f32 %v1104_v55 }
 0x694   :  { %v4991_v56 = vpop.eup %4990 }
 0x695   :  { %v1119_v33 = vmul.f32 %v4991_v56, %v1117_v35 }
 0x696   :  { %v4993_v58 = vpop.eup %4992 }
 0x697   :  { %v5778_v15 = vadd.f32 %v1119_v33, %v1115_v0  ;;  %v1118_v28 = vmul.f32 %v4993_v58, %v1116_v57 }
 0x699   :  { %4629 = vmatprep.subr.mxu0 %v5778_v15  ;;  %v5782_v30 = vadd.f32 %v1118_v28, %v1114_v31 }
 0x69a   :  { %4630 = vmatpush3.msra.mxu0 %v5778_v15 }
 0x69b   :  { %4631 = vmatprep.subr.mxu0 %v5782_v30 }
 0x69c   :  { %4632 = vmatpush3.msra.mxu0 %v5782_v30 }
 0x69d   :  { %4634 = vmatmul.mubr.msk.f32.vlgmr.msra.gmra.mxu0 %vm35_vm0, %v6879_v34  ;;  %4208 = vmatprep.subr.msk.mxu0 %vm158_vm1, %v6880_v59 }
 0x69e   :  { %4209 = vmatpush1.msk.msra.mxu0 %vm158_vm1, %v6881_v36  ;;  %1273 = vmatprep.mubr.f32.mxu0 %v6870_v32 }
 0x6a1   :  { %4210 = vmatmul.mubr.msk.f32.vlgmr.msra.gmra.mxu0 %vm151_vm2, %v4202_v29 }
 0x6a2   :  { %1279 = vmatprep.mubr.f32.mxu0 %v6870_v32 }
 0x6a5   :  { %4211 = vmatmul.mubr.msk.f32.gmra.mxu0 %vm151_vm2, %v4203_v1 }
 0x6a6   :  { %4640 = vmatprep.mubr.msk.f32.mxu0 %vm35_vm0, %v6882_v2 }
 0x75d   :  { %v4635_v41 = vpop.f32.mrf.mxu0 }
 0x75f   :  { %v1194_v3 = vpop.f32.mrf.mxu0 }
 0x760   :  { %1351 = vmatmul.mubr.f32.vlgmr.msra.gmra.mxu1 %v1194_v3 }
 0x761   :  { %1356 = vmatprep.mubr.f32.mxu1 %v6870_v32  ;;  %v1275_v5 = vpop.f32.mrf.mxu0 }
 0x763   :  { %v1277_v8 = vpop.f32.mrf.mxu0 }
 0x764   :  { %1357 = vmatmul.mubr.f32.gmra.mxu1 %v4635_v41 }
 0x765   :  { %4687 = vmatprep.mubr.msk.f32.mxu1 %vm35_vm0, %v6883_v4  ;;  %v1281_v54 = vpop.f32.mrf.mxu0 }
 0x767   :  { %v1283_v55 = vpop.f32.mrf.mxu0 }
 0x820   :  { %v1352_v6 = vpop.f32.mrf.mxu1 }
 0x821   :  { %v1353_v7 = vadd.f32 %v1352_v6, %v1275_v5 }
 0x822   :  { %v1354_v11 = vpop.f32.mrf.mxu1 }
 0x823   :  { %v1363_v12 = vsub.f32 0.0, %v1353_v7  ;;  %v1355_v13 = vadd.f32 %v1354_v11, %v1277_v8 }
 0x824   :  { %v1358_v35 = vpop.f32.mrf.mxu1 }
 0x825   :  { %v1367_v14 = vmul.f32 1.442695, %v1363_v12  ;;  %v1364_v16 = vsub.f32 0.0, %v1355_v13  ;;  %v1359_v33 = vadd.f32 %v1358_v35, %v1281_v54  ;;  %v5927_v54 = vld [vmem:[%s6790_s4 + $0xd0] sm:$0xff] }
 0x826   :  { %v1360_v56 = vpop.f32.mrf.mxu1  ;;  %v5952_v35 = vld [vmem:[%s6790_s4 + $0xb0] sm:$0xff] }
 0x827   :  { %4994 = vpow2.f32 %v1367_v14  ;;  %v1369_v17 = vmul.f32 1.442695, %v1364_v16  ;;  %v1361_v0 = vadd.f32 %v1360_v56, %v1283_v55  ;;  %v1365_v58 = vsub.f32 0.0, %v1359_v33  ;;  %v5934_v55 = vld [vmem:[%s6790_s4 + $0xc8] sm:$0xff]  ;;  %v5970_v33 = vld [vmem:[%s6790_s4 + $0x98] sm:$0xff] }
 0x828   :  { %v5958_v56 = vld [vmem:[%s6790_s4 + $0xa8] sm:$0xff] }
 0x829   :  { %4996 = vpow2.f32 %v1369_v17  ;;  %v1366_v57 = vsub.f32 0.0, %v1361_v0  ;;  %v1371_v28 = vmul.f32 1.442695, %v1365_v58  ;;  %v5964_v0 = vld [vmem:[%s6790_s4 + $0xa0] sm:$0xff]  ;;  %v5982_v58 = vld [vmem:[%s6790_s4 + $0x88] sm:$0xff] }
 0x82b   :  { %v1373_v31 = vmul.f32 1.442695, %v1366_v57  ;;  %v5976_v57 = vld [vmem:[%s6790_s4 + $0x90] sm:$0xff] }
 0x834   :  { %v4995_v18 = vpop.eup %4994 }
 0x835   :  { %v1375_v19 = vadd.f32 1.0, %v4995_v18 }
 0x836   :  { %v4997_v20 = vpop.eup %4996 }
 0x837   :  { %v1376_v21 = vadd.f32 1.0, %v4997_v20  ;;  %4998 = vrcp.f32 %v1375_v19 }
 0x839   :  { %5000 = vrcp.f32 %v1376_v21 }
 0x83a   :  { %5002 = vpow2.f32 %v1373_v31  ;;  %v5988_v31 = vld [vmem:[%s6790_s4 + $0x80] sm:$0xff] }
 0x83b   :  { %5004 = vpow2.f32 %v1371_v28  ;;  %v5994_v28 = vld [vmem:[%s6790_s4 + $0x78] sm:$0xff] }
 0x844   :  { %v4999_v22 = vpop.eup %4998 }
 0x845   :  { %v1387_v25 = vmul.f32 %v4999_v22, %v5782_v30  ;;  %v4217_v22 = vld [vmem:[%s6792_s0 + $0x30] sm:$0xff] }
 0x846   :  { %v5001_v23 = vpop.eup %5000 }
 0x847   :  { %v1388_v24 = vmul.f32 %v5001_v23, %v5778_v15  ;;  %v5003_v34 = vpop.eup %5002  ;;  %v5891_v23 = vld [vmem:[%s6790_s4 + $0xf8] sm:$0xff] }
 0x848   :  { %v5005_v59 = vpop.eup %5004  ;;  %v1378_v1 = vadd.f32 1.0, %v5003_v34  ;;  %v6000_v34 = vld [vmem:[%s6790_s4 + $0x70] sm:$0xff] }
 0x849   :  { %4636 = vmatprep.subr.mxu0 %v1388_v24  ;;  %v1377_v41 = vadd.f32 1.0, %v5005_v59  ;;  %v6006_v59 = vld [vmem:[%s6790_s4 + $0x68] sm:$0xff] }
 0x84a   :  { %4637 = vmatpush3.msra.mxu0 %v1388_v24  ;;  %5006 = vrcp.f32 %v1378_v1  ;;  %v5898_v24 = vld [vmem:[%s6790_s4 + $0xf0] sm:$0xff]  ;;  %v6018_v1 = vld [vmem:[%s6790_s4 + $0x58] sm:$0xff] }
 0x84b   :  { %4638 = vmatprep.subr.mxu0 %v1387_v25  ;;  %5008 = vrcp.f32 %v1377_v41  ;;  %v6024_v41 = vld [vmem:[%s6790_s4 + $0x50] sm:$0xff] }
 0x84c   :  { %4639 = vmatpush3.msra.mxu0 %v1387_v25  ;;  %v5908_v25 = vld [vmem:[%s6790_s4 + $0xe8] sm:$0xff] }
 0x84d   :  { %4641 = vmatmul.mubr.msk.f32.vlgmr.msra.gmra.mxu0 %vm35_vm0, %v5499_v60  ;;  %4643 = vmatprep.subr.msk.mxu0 %vm158_vm1, %v5504_v61 }
 0x84e   :  { %4644 = vmatpush3.msk.msra.mxu0 %vm158_vm1, %v5504_v61  ;;  %4645 = vmatprep.mubr.msk.f32.mxu0 %vm151_vm2, %v4204_v26  ;;  %v5914_v26 = vld [vmem:[%s6790_s4 + $0xe0] sm:$0xff] }
 0x84f   :  { %4648 = vmatprep.subr.mxu0 %v5512_v63 }
 0x851   :  { %4646 = vmatmul.mubr.msk.f32.vlgmr.msra.gmra.mxu0 %vm151_vm2, %v4205_v27  ;;  %v5920_v27 = vld [vmem:[%s6790_s4 + $0xd8] sm:$0xff] }
 0x852   :  { %4649 = vmatpush3.msra.mxu0 %v5512_v63 }
 0x853   :  { %4650 = vmatprep.subr.mxu0 %v5528_v38 }
 0x854   :  { %4651 = vmatpush3.msra.mxu0 %v5528_v38 }
 0x855   :  { %4652 = vmatprep.subr.mxu0 %v5535_v39 }
 0x856   :  { %4653 = vmatpush3.msra.mxu0 %v5535_v39 }
 0x857   :  { %4654 = vmatprep.subr.mxu0 %v5542_v40  ;;  %v5007_v7 = vpop.eup %5006 }
 0x858   :  { %4655 = vmatpush3.msra.mxu0 %v5542_v40  ;;  %v5009_v8 = vpop.eup %5008  ;;  %v1625_v11 = vsub.f32 1.0, %v5007_v7  ;;  %v1623_v13 = vmul.f32 %v5007_v7, %v5778_v15  ;;  %v5871_v15 = vld [vmem:[%s6789_s2 + $0x8] sm:$0xff]  ;;  %v6060_v7 = vld [vmem:[%s6790_s4 + $0x20] sm:$0xff] }
 0x859   :  { %4656 = vmatprep.subr.mxu0 %v5549_v42  ;;  %v1624_v16 = vsub.f32 1.0, %v5009_v8  ;;  %v1622_v19 = vmul.f32 %v5009_v8, %v5782_v30  ;;  %6884 = vst [vmem:[#allocation5_spill] sm:$0xff] %v5871_v15  ;;  %v5878_v30 = vld [vmem:[%s6791_s6 + $0x8] sm:$0x1f]  ;;  %6887 = vst [vmem:[#allocation8_spill] sm:$0xff] %v6060_v7  ;;  %v6066_v8 = vld [vmem:[%s6790_s4 + $0x18] sm:$0xff] }
 0x85a   :  { %4657 = vmatpush3.msra.mxu0 %v5549_v42  ;;  %6885 = vst [vmem:[#allocation6_spill] sm:$0xff] %v5878_v30  ;;  %6888 = vst [vmem:[#allocation9_spill] sm:$0xff] %v6066_v8 }
 0x85b   :  { %4658 = vmatprep.subr.mxu0 %v5556_v43 }
 0x85c   :  { %4659 = vmatpush3.msra.mxu0 %v5556_v43 }
 0x85d   :  { %4660 = vmatprep.subr.mxu0 %v5563_v44 }
 0x85e   :  { %4661 = vmatpush3.msra.mxu0 %v5563_v44 }
 0x85f   :  { %4662 = vmatprep.subr.mxu0 %v5570_v45 }
 0x860   :  { %4663 = vmatpush3.msra.mxu0 %v5570_v45 }
 0x861   :  { %4664 = vmatprep.subr.mxu0 %v5577_v46 }
 0x862   :  { %4665 = vmatpush3.msra.mxu0 %v5577_v46 }
 0x863   :  { %4666 = vmatprep.subr.mxu0 %v5584_v47 }
 0x864   :  { %4667 = vmatpush3.msra.mxu0 %v5584_v47 }
 0x865   :  { %4668 = vmatprep.subr.mxu0 %v5591_v48 }
 0x866   :  { %4669 = vmatpush3.msra.mxu0 %v5591_v48 }
 0x867   :  { %4670 = vmatprep.subr.mxu0 %v5598_v49 }
 0x868   :  { %4671 = vmatpush3.msra.mxu0 %v5598_v49 }
 0x869   :  { %4672 = vmatprep.subr.mxu0 %v5605_v50 }
 0x86a   :  { %4673 = vmatpush3.msra.mxu0 %v5605_v50 }
 0x86b   :  { %4674 = vmatprep.subr.mxu0 %v5612_v51 }
 0x86c   :  { %4675 = vmatpush3.msra.mxu0 %v5612_v51 }
 0x86d   :  { %4676 = vmatprep.subr.mxu0 %v5621_v52 }
 0x86e   :  { %4677 = vmatpush3.msra.mxu0 %v5621_v52 }
 0x86f   :  { %4678 = vmatprep.subr.mxu0 %v5628_v53 }
 0x870   :  { %4679 = vmatpush3.msra.mxu0 %v5628_v53 }
 0x90d   :  { %v4642_v37 = vpop.f32.mrf.mxu0 }
 0x90f   :  { %v1455_v62 = vpop.f32.mrf.mxu0 }
 0x910   :  { %4680 = vmatprep.mubr.f32.mxu0 %v1455_v62  ;;  %v5946_v62 = vld [vmem:[%s6790_s4 + $0xb8] sm:$0xff] }
 0x911   :  { %4681 = vmatmul.mubr.f32.vlgmr.msra.gmra.mxu0 %v4642_v37  ;;  %v4647_v29 = vpop.f32.mrf.mxu0  ;;  %v5940_v37 = vld [vmem:[%s6790_s4 + $0xc0] sm:$0xff] }
 0x912   :  { %4694 = vmatprep.mubr.msk.f32.mxu0 %vm35_vm0, %v6882_v2 }
 0x913   :  { %v1536_v3 = vpop.f32.mrf.mxu0 }
 0x9d1   :  { %v4682_v4 = vpop.f32.mrf.mxu0 }
 0x9d2   :  { %v1617_v2 = vadd.f32 %v4682_v4, %v4647_v29  ;;  %v6012_v29 = vld [vmem:[%s6790_s4 + $0x60] sm:$0xff] }
 0x9d3   :  { %v1611_v5 = vpop.f32.mrf.mxu0  ;;  %v6036_v4 = vld [vmem:[%s6790_s4 + $0x40] sm:$0xff] }
 0x9d4   :  { %5010 = vtanh.f32 %v1617_v2  ;;  %v1612_v6 = vadd.f32 %v1611_v5, %v1536_v3  ;;  %v6030_v3 = vld [vmem:[%s6790_s4 + $0x48] sm:$0xff]  ;;  %v6042_v2 = vld [vmem:[%s6790_s4 + $0x38] sm:$0xff]  ;;  %v6048_v5 = vld [vmem:[%s6790_s4 + $0x30] sm:$0xff] }
 0x9d6   :  { %5012 = vtanh.f32 %v1612_v6  ;;  %v6054_v6 = vld [vmem:[%s6790_s4 + $0x28] sm:$0xff] }
 0x9d7   :  { %6886 = vst [vmem:[#allocation7_spill] sm:$0xff] %v6054_v6 }
 0x9e1   :  { %v5011_v12 = vpop.eup %5010 }
 0x9e2   :  { %v1627_v14 = vmul.f32 %v5011_v12, %v1625_v11  ;;  %v6072_v11 = vld [vmem:[%s6790_s4 + $0x10] sm:$0xff] }
 0x9e3   :  { %v5013_v17 = vpop.eup %5012  ;;  %6889 = vst [vmem:[#allocation11_spill] sm:$0xff] %v6072_v11 }
 0x9e4   :  { %v5859_v18 = vadd.f32 %v1627_v14, %v1623_v13  ;;  %v1626_v20 = vmul.f32 %v5013_v17, %v1624_v16  ;;  %v6081_v14 = vld [vmem:[%s6789_s2] sm:$0xff] }
 0x9e5   :  { %6890 = vst [vmem:[#allocation12_spill] sm:$0xff] %v6081_v14 }
 0x9e6   :  { %4683 = vmatprep.subr.mxu1 %v5859_v18  ;;  %v5863_v21 = vadd.f32 %v1626_v20, %v1622_v19 }
 0x9e7   :  { %4684 = vmatpush3.msra.mxu1 %v5859_v18 }
 0x9e8   :  { %4685 = vmatprep.subr.mxu1 %v5863_v21 }
 0x9e9   :  { %4686 = vmatpush3.msra.mxu1 %v5863_v21 }
 0x9ea   :  { %4688 = vmatmul.mubr.msk.f32.vlgmr.msra.gmra.mxu1 %vm35_vm0, %v5871_v15  ;;  %4223 = vmatprep.subr.msk.mxu1 %vm158_vm1, %v5878_v30 }
 0x9eb   :  { %4224 = vmatpush1.msk.msra.mxu1 %vm158_vm1, %v6881_v36  ;;  %1781 = vmatprep.mubr.f32.mxu1 %v6870_v32  ;;  %v4218_v36 = vld [vmem:[%s6792_s0 + $0x38] sm:$0xff] }
 0x9ec   :  { %1794 = vmatprep.subr.mxu1 %v5891_v23 }
 0x9ee   :  { %4225 = vmatmul.mubr.msk.f32.vlgmr.msra.gmra.mxu1 %vm151_vm2, %v4217_v22 }
 0x9ef   :  { %1795 = vmatpush1.msra.mxu1 %v5898_v24  ;;  %1787 = vmatprep.mubr.f32.mxu1 %v6870_v32 }
 0x9f0   :  { %1796 = vmatprep.subr.mxu1 %v5908_v25 }
 0x9f1   :  { %1797 = vmatpush1.msra.mxu1 %v5914_v26 }
 0x9f2   :  { %1798 = vmatprep.subr.mxu1 %v5920_v27  ;;  %4226 = vmatmul.mubr.msk.f32.gmra.mxu1 %vm151_vm2, %v4218_v36 }
 0x9f3   :  { %1799 = vmatpush1.msra.mxu1 %v5927_v54  ;;  %1858 = vmatprep.mubr.f32.mxu1 %v6870_v32 }
 0x9f4   :  { %1800 = vmatprep.subr.mxu1 %v5934_v55 }
 0x9f5   :  { %1801 = vmatpush1.msra.mxu1 %v5940_v37 }
 0x9f6   :  { %1802 = vmatprep.subr.mxu1 %v5946_v62 }
 0x9f7   :  { %1803 = vmatpush1.msra.mxu1 %v5952_v35 }
 0x9f8   :  { %1804 = vmatprep.subr.mxu1 %v5958_v56 }
 0x9f9   :  { %1805 = vmatpush1.msra.mxu1 %v5964_v0 }
 0x9fa   :  { %1806 = vmatprep.subr.mxu1 %v5970_v33 }
 0x9fb   :  { %1807 = vmatpush1.msra.mxu1 %v5976_v57 }
 0x9fc   :  { %1808 = vmatprep.subr.mxu1 %v5982_v58 }
 0x9fd   :  { %1809 = vmatpush1.msra.mxu1 %v5988_v31 }
 0x9fe   :  { %1810 = vmatprep.subr.mxu1 %v5994_v28 }
 0x9ff   :  { %1811 = vmatpush1.msra.mxu1 %v6000_v34 }
 0xa00   :  { %1812 = vmatprep.subr.mxu1 %v6006_v59 }
 0xa01   :  { %1813 = vmatpush1.msra.mxu1 %v6012_v29 }
 0xa02   :  { %1814 = vmatprep.subr.mxu1 %v6018_v1 }
 0xa03   :  { %1815 = vmatpush1.msra.mxu1 %v6024_v41 }
 0xa04   :  { %1816 = vmatprep.subr.mxu1 %v6030_v3 }
 0xa05   :  { %1817 = vmatpush1.msra.mxu1 %v6036_v4 }
 0xa06   :  { %1818 = vmatprep.subr.mxu1 %v6042_v2 }
 0xa07   :  { %1819 = vmatpush1.msra.mxu1 %v6048_v5 }
 0xa08   :  { %1820 = vmatprep.subr.mxu1 %v6054_v6 }
 0xa09   :  { %1821 = vmatpush1.msra.mxu1 %v6060_v7 }
 0xa0a   :  { %1822 = vmatprep.subr.mxu1 %v6066_v8 }
 0xa0b   :  { %1823 = vmatpush1.msra.mxu1 %v6072_v11 }
 0xa0c   :  { %1824 = vmatprep.subr.mxu1 %v6877_v9 }
 0xa0d   :  { %1825 = vmatpush1.msra.mxu1 %v6878_v10 }
 0xaaa   :  { %v4689_v12 = vpop.f32.mrf.mxu1 }
 0xaac   :  { %v1702_v13 = vpop.f32.mrf.mxu1 }
 0xaad   :  { %1859 = vmatmul.mubr.f32.vlgmr.msra.gmra.mxu1 %v1702_v13 }
 0xaae   :  { %1864 = vmatprep.mubr.f32.mxu1 %v6870_v32  ;;  %v1783_v16 = vpop.f32.mrf.mxu1 }
 0xab0   :  { %v1785_v17 = vpop.f32.mrf.mxu1 }
 0xab1   :  { %1865 = vmatmul.mubr.f32.gmra.mxu1 %v4689_v12 }
 0xab2   :  { %4741 = vmatprep.mubr.msk.f32.mxu1 %vm35_vm0, %v6081_v14  ;;  %v6085_v19 = vpop.f32.mrf.mxu1 }
 0xab3   :  { %6891 = vst [vmem:[#allocation13_spill] sm:$0xff] %v6085_v19 }
 0xab4   :  { %v6087_v9 = vpop.f32.mrf.mxu1 }
 0xab5   :  { %6892 = vst [vmem:[#allocation3_spill] sm:$0xff] %v6087_v9 }
 0xb6d   :  { %v1860_v10 = vpop.f32.mrf.mxu1 }
 0xb6e   :  { %v1861_v20 = vadd.f32 %v1860_v10, %v1783_v16 }
 0xb6f   :  { %v1862_v22 = vpop.f32.mrf.mxu1 }
 0xb70   :  { %v1871_v36 = vsub.f32 0.0, %v1861_v20  ;;  %v1863_v13 = vadd.f32 %v1862_v22, %v1785_v17 }
 0xb72   :  { %v1875_v12 = vmul.f32 1.442695, %v1871_v36  ;;  %v1872_v30 = vsub.f32 0.0, %v1863_v13 }
 0xb74   :  { %5014 = vpow2.f32 %v1875_v12  ;;  %v1877_v15 = vmul.f32 1.442695, %v1872_v30  ;;  %v4219_v30 = vld [vmem:[%s6795_s1 + $0x30] sm:$0xff] }
 0xb76   :  { %5016 = vpow2.f32 %v1877_v15  ;;  %v4220_v15 = vld [vmem:[%s6795_s1 + $0x38] sm:$0xff] }
 0xb81   :  { %v5015_v11 = vpop.eup %5014 }
 0xb82   :  { %v1883_v8 = vadd.f32 1.0, %v5015_v11 }
 0xb83   :  { %v5017_v7 = vpop.eup %5016 }
 0xb84   :  { %v1884_v14 = vadd.f32 1.0, %v5017_v7  ;;  %5018 = vrcp.f32 %v1883_v8 }
 0xb86   :  { %5020 = vrcp.f32 %v1884_v14 }
 0xb91   :  { %v5019_v6 = vpop.eup %5018 }
 0xb92   :  { %v1895_v16 = vmul.f32 %v5019_v6, %v5863_v21 }
 0xb93   :  { %v5021_v19 = vpop.eup %5020 }
 0xb94   :  { %v1896_v9 = vmul.f32 %v5021_v19, %v5859_v18 }
 0xb96   :  { %4690 = vmatprep.subr.mxu0 %v1896_v9 }
 0xb97   :  { %4691 = vmatpush3.msra.mxu0 %v1896_v9 }
 0xb98   :  { %4692 = vmatprep.subr.mxu0 %v1895_v16 }
 0xb99   :  { %4693 = vmatpush3.msra.mxu0 %v1895_v16 }
 0xb9a   :  { %4695 = vmatmul.mubr.msk.f32.vlgmr.msra.gmra.mxu0 %vm35_vm0, %v5499_v60  ;;  %4697 = vmatprep.subr.msk.mxu0 %vm158_vm1, %v5504_v61 }
 0xb9b   :  { %4698 = vmatpush3.msk.msra.mxu0 %vm158_vm1, %v5504_v61  ;;  %4699 = vmatprep.mubr.msk.f32.mxu0 %vm151_vm2, %v4219_v30 }
 0xb9c   :  { %4702 = vmatprep.subr.mxu0 %v5512_v63 }
 0xb9e   :  { %4700 = vmatmul.mubr.msk.f32.vlgmr.msra.gmra.mxu0 %vm151_vm2, %v4220_v15 }
 0xb9f   :  { %4703 = vmatpush3.msra.mxu0 %v5512_v63  ;;  %v6893_v63 = vld [vmem:[#allocation7_spill] sm:$0xff] }
 0xba0   :  { %4704 = vmatprep.subr.mxu0 %v5528_v38 }
 0xba1   :  { %4705 = vmatpush3.msra.mxu0 %v5528_v38  ;;  %v6894_v38 = vld [vmem:[#allocation8_spill] sm:$0xff] }
 0xba2   :  { %4706 = vmatprep.subr.mxu0 %v5535_v39 }
 0xba3   :  { %4707 = vmatpush3.msra.mxu0 %v5535_v39  ;;  %v6895_v39 = vld [vmem:[#allocation9_spill] sm:$0xff] }
 0xba4   :  { %4708 = vmatprep.subr.mxu0 %v5542_v40 }
 0xba5   :  { %4709 = vmatpush3.msra.mxu0 %v5542_v40  ;;  %v6896_v40 = vld [vmem:[#allocation11_spill] sm:$0xff] }
 0xba6   :  { %4710 = vmatprep.subr.mxu0 %v5549_v42 }
 0xba7   :  { %4711 = vmatpush3.msra.mxu0 %v5549_v42  ;;  %v6171_v42 = vld [vmem:[%s6790_s4 + $0x8] sm:$0xff] }
 0xba8   :  { %4712 = vmatprep.subr.mxu0 %v5556_v43 }
 0xba9   :  { %4713 = vmatpush3.msra.mxu0 %v5556_v43  ;;  %v6177_v43 = vld [vmem:[%s6790_s4] sm:$0xff] }
 0xbaa   :  { %4714 = vmatprep.subr.mxu0 %v5563_v44 }
 0xbab   :  { %4715 = vmatpush3.msra.mxu0 %v5563_v44  ;;  %v1866_v44 = vpop.f32.mrf.mxu1 }
 0xbac   :  { %4716 = vmatprep.subr.mxu0 %v5570_v45 }
 0xbad   :  { %4717 = vmatpush3.msra.mxu0 %v5570_v45  ;;  %v1868_v45 = vpop.f32.mrf.mxu1 }
 0xbae   :  { %4718 = vmatprep.subr.mxu0 %v5577_v46 }
 0xbaf   :  { %4719 = vmatpush3.msra.mxu0 %v5577_v46  ;;  %v6897_v46 = vld [vmem:[#allocation3_spill] sm:$0xff] }
 0xbb0   :  { %4720 = vmatprep.subr.mxu0 %v5584_v47 }
 0xbb1   :  { %4721 = vmatpush3.msra.mxu0 %v5584_v47  ;;  %v1869_v47 = vadd.f32 %v1868_v45, %v6897_v46 }
 0xbb2   :  { %4722 = vmatprep.subr.mxu0 %v5591_v48 }
 0xbb3   :  { %4723 = vmatpush3.msra.mxu0 %v5591_v48  ;;  %v6898_v48 = vld [vmem:[#allocation13_spill] sm:$0xff] }
 0xbb4   :  { %4724 = vmatprep.subr.mxu0 %v5598_v49 }
 0xbb5   :  { %4725 = vmatpush3.msra.mxu0 %v5598_v49  ;;  %v1867_v49 = vadd.f32 %v1866_v44, %v6898_v48  ;;  %v4232_v48 = vld [vmem:[%s6792_s0 + $0x40] sm:$0xff] }
 0xbb6   :  { %4726 = vmatprep.subr.mxu0 %v5605_v50 }
 0xbb7   :  { %4727 = vmatpush3.msra.mxu0 %v5605_v50  ;;  %v1874_v50 = vsub.f32 0.0, %v1869_v47  ;;  %v6899_v47 = vld [vmem:[#allocation5_spill] sm:$0xff] }
 0xbb8   :  { %4728 = vmatprep.subr.mxu0 %v5612_v51 }
 0xbb9   :  { %4729 = vmatpush3.msra.mxu0 %v5612_v51  ;;  %v1873_v51 = vsub.f32 0.0, %v1867_v49  ;;  %v4233_v49 = vld [vmem:[%s6792_s0 + $0x48] sm:$0xff] }
 0xbba   :  { %4730 = vmatprep.subr.mxu0 %v5621_v52 }
 0xbbb   :  { %4731 = vmatpush3.msra.mxu0 %v5621_v52  ;;  %v1881_v52 = vmul.f32 1.442695, %v1874_v50  ;;  %v6216_v50 = vld [vmem:[%s6793_s3] sm:$0xff] }
 0xbbc   :  { %4732 = vmatprep.subr.mxu0 %v5628_v53  ;;  %6901 = vst [vmem:[#allocation4_spill] sm:$0xff] %v6216_v50 }
 0xbbd   :  { %4733 = vmatpush3.msra.mxu0 %v5628_v53  ;;  %v1879_v53 = vmul.f32 1.442695, %v1873_v51  ;;  %5022 = vpow2.f32 %v1881_v52 }
 0xbbe   :  { %2302 = vmatprep.subr.mxu0 %v5891_v23 }
 0xbbf   :  { %5024 = vpow2.f32 %v1879_v53  ;;  %v6902_v53 = vld [vmem:[#allocation12_spill] sm:$0xff] }
 0xbca   :  { %v5023_v6 = vpop.eup %5022 }
 0xbcb   :  { %v1886_v11 = vadd.f32 1.0, %v5023_v6 }
 0xbcc   :  { %v5025_v7 = vpop.eup %5024 }
 0xbcd   :  { %v1885_v14 = vadd.f32 1.0, %v5025_v7  ;;  %5026 = vrcp.f32 %v1886_v11 }
 0xbcf   :  { %5028 = vrcp.f32 %v1885_v14 }
 0xbda   :  { %v5027_v22 = vpop.eup %5026 }
 0xbdb   :  { %v2133_v13 = vsub.f32 1.0, %v5027_v22  ;;  %v2131_v16 = vmul.f32 %v5027_v22, %v5859_v18  ;;  %v6900_v18 = vld [vmem:[#allocation6_spill] sm:$0xff] }
 0xbdc   :  { %v5029_v36 = vpop.eup %5028 }
 0xbdd   :  { %v2132_v15 = vsub.f32 1.0, %v5029_v36  ;;  %v2130_v44 = vmul.f32 %v5029_v36, %v5863_v21  ;;  %v6199_v21 = vld [vmem:[%s6791_s6] sm:$0x1f] }
 0xc5a   :  { %v4696_v60 = vpop.f32.mrf.mxu0 }
 0xc5c   :  { %v1963_v61 = vpop.f32.mrf.mxu0 }
 0xc5d   :  { %4734 = vmatprep.mubr.f32.mxu0 %v1963_v61 }
 0xc5e   :  { %4735 = vmatmul.mubr.f32.vlgmr.msra.gmra.mxu0 %v4696_v60  ;;  %v4701_v8 = vpop.f32.mrf.mxu0 }
 0xc5f   :  { %2303 = vmatpush1.msra.mxu0 %v5898_v24  ;;  %2366 = vmatprep.mubr.f32.mxu0 %v6870_v32 }
 0xc60   :  { %2304 = vmatprep.subr.mxu0 %v5908_v25  ;;  %v2044_v17 = vpop.f32.mrf.mxu0 }
 0xc61   :  { %2305 = vmatpush1.msra.mxu0 %v5914_v26 }
 0xc62   :  { %2306 = vmatprep.subr.mxu0 %v5920_v27 }
 0xc63   :  { %2307 = vmatpush1.msra.mxu0 %v5927_v54 }
 0xc64   :  { %2308 = vmatprep.subr.mxu0 %v5934_v55 }
 0xc65   :  { %2309 = vmatpush1.msra.mxu0 %v5940_v37 }
 0xc66   :  { %2310 = vmatprep.subr.mxu0 %v5946_v62 }
 0xc67   :  { %2311 = vmatpush1.msra.mxu0 %v5952_v35 }
 0xc68   :  { %2312 = vmatprep.subr.mxu0 %v5958_v56 }
 0xc69   :  { %2313 = vmatpush1.msra.mxu0 %v5964_v0 }
 0xc6a   :  { %2314 = vmatprep.subr.mxu0 %v5970_v33 }
 0xc6b   :  { %2315 = vmatpush1.msra.mxu0 %v5976_v57 }
 0xc6c   :  { %2316 = vmatprep.subr.mxu0 %v5982_v58 }
 0xc6d   :  { %2317 = vmatpush1.msra.mxu0 %v5988_v31 }
 0xc6e   :  { %2318 = vmatprep.subr.mxu0 %v5994_v28 }
 0xc6f   :  { %2319 = vmatpush1.msra.mxu0 %v6000_v34 }
 0xc70   :  { %2320 = vmatprep.subr.mxu0 %v6006_v59 }
 0xc71   :  { %2321 = vmatpush1.msra.mxu0 %v6012_v29 }
 0xc72   :  { %2322 = vmatprep.subr.mxu0 %v6018_v1 }
 0xc73   :  { %2323 = vmatpush1.msra.mxu0 %v6024_v41 }
 0xc74   :  { %2324 = vmatprep.subr.mxu0 %v6030_v3 }
 0xc75   :  { %2325 = vmatpush1.msra.mxu0 %v6036_v4 }
 0xc76   :  { %2326 = vmatprep.subr.mxu0 %v6042_v2 }
 0xc77   :  { %2327 = vmatpush1.msra.mxu0 %v6048_v5 }
 0xc78   :  { %2328 = vmatprep.subr.mxu0 %v6893_v63 }
 0xc79   :  { %2329 = vmatpush1.msra.mxu0 %v6894_v38 }
 0xc7a   :  { %2330 = vmatprep.subr.mxu0 %v6895_v39 }
 0xc7b   :  { %2331 = vmatpush1.msra.mxu0 %v6896_v40 }
 0xc7c   :  { %2332 = vmatprep.subr.mxu0 %v6171_v42 }
 0xc7d   :  { %2333 = vmatpush1.msra.mxu0 %v6177_v43 }
 0xd1e   :  { %v4736_v19 = vpop.f32.mrf.mxu0 }
 0xd1f   :  { %v2125_v9 = vadd.f32 %v4736_v19, %v4701_v8 }
 0xd20   :  { %v2119_v10 = vpop.f32.mrf.mxu0 }
 0xd21   :  { %5030 = vtanh.f32 %v2125_v9  ;;  %v2120_v20 = vadd.f32 %v2119_v10, %v2044_v17 }
 0xd23   :  { %5032 = vtanh.f32 %v2120_v20 }
 0xd2e   :  { %v5031_v12 = vpop.eup %5030 }
 0xd2f   :  { %v2135_v30 = vmul.f32 %v5031_v12, %v2133_v13 }
 0xd30   :  { %v5033_v60 = vpop.eup %5032 }
 0xd31   :  { %v6183_v61 = vadd.f32 %v2135_v30, %v2131_v16  ;;  %v2134_v45 = vmul.f32 %v5033_v60, %v2132_v15 }
 0xd33   :  { %4737 = vmatprep.subr.mxu1 %v6183_v61  ;;  %v6187_v46 = vadd.f32 %v2134_v45, %v2130_v44  ;;  %v4234_v44 = vld [vmem:[%s6795_s1 + $0x40] sm:$0xff]  ;;  %v6231_v45 = vld [vmem:[%s6793_s3 + $0x8] sm:$0xff] }
 0xd34   :  { %4738 = vmatpush3.msra.mxu1 %v6183_v61 }
 0xd35   :  { %4739 = vmatprep.subr.mxu1 %v6187_v46 }
 0xd36   :  { %4740 = vmatpush3.msra.mxu1 %v6187_v46 }
 0xd37   :  { %4742 = vmatmul.mubr.msk.f32.vlgmr.msra.gmra.mxu1 %vm35_vm0, %v6899_v47  ;;  %4238 = vmatprep.subr.msk.mxu1 %vm158_vm1, %v6900_v18 }
 0xd38   :  { %4239 = vmatpush1.msk.msra.mxu1 %vm158_vm1, %v6199_v21  ;;  %2289 = vmatprep.mubr.f32.mxu1 %v6870_v32 }
 0xd3b   :  { %4240 = vmatmul.mubr.msk.f32.vlgmr.msra.gmra.mxu1 %vm151_vm2, %v4232_v48  ;;  %v6238_v48 = vld [vmem:[%s6794_s7] sm:$0x1f] }
 0xd3c   :  { %2295 = vmatprep.mubr.f32.mxu1 %v6870_v32 }
 0xd3f   :  { %4241 = vmatmul.mubr.msk.f32.gmra.mxu1 %vm151_vm2, %v4233_v49  ;;  %v4235_v49 = vld [vmem:[%s6795_s1 + $0x48] sm:$0xff] }
 0xd40   :  { %4748 = vmatprep.mubr.msk.f32.mxu1 %vm35_vm0, %v6216_v50 }
 0xdf7   :  { %v4743_v51 = vpop.f32.mrf.mxu1 }
 0xdf9   :  { %v2210_v52 = vpop.f32.mrf.mxu1 }
 0xdfa   :  { %2367 = vmatmul.mubr.f32.vlgmr.msra.gmra.mxu0 %v2210_v52  ;;  %v6259_v52 = vld [vmem:[%s6796_s5 + $0x70] sm:$0xff] }
 0xdfb   :  { %2372 = vmatprep.mubr.f32.mxu0 %v6870_v32  ;;  %v2291_v6 = vpop.f32.mrf.mxu1 }
 0xdfd   :  { %v2293_v11 = vpop.f32.mrf.mxu1 }
 0xdfe   :  { %2373 = vmatmul.mubr.f32.gmra.mxu0 %v4743_v51  ;;  %v6251_v51 = vld [vmem:[%s6796_s5 + $0x78] sm:$0xff] }
 0xdff   :  { %4795 = vmatprep.mubr.msk.f32.mxu0 %vm35_vm0, %v6902_v53 }
 0xeba   :  { %v2368_v7 = vpop.f32.mrf.mxu0 }
 0xebb   :  { %v2369_v8 = vadd.f32 %v2368_v7, %v2291_v6  ;;  %v6266_v6 = vld [vmem:[%s6796_s5 + $0x68] sm:$0xff]  ;;  %v6273_v7 = vld [vmem:[%s6796_s5 + $0x60] sm:$0xff] }
 0xebc   :  { %v2370_v14 = vpop.f32.mrf.mxu0 }
 0xebd   :  { %v2379_v17 = vsub.f32 0.0, %v2369_v8  ;;  %v2371_v19 = vadd.f32 %v2370_v14, %v2293_v11  ;;  %v6280_v8 = vld [vmem:[%s6796_s5 + $0x58] sm:$0xff]  ;;  %v6287_v11 = vld [vmem:[%s6796_s5 + $0x50] sm:$0xff]  ;;  %v6294_v14 = vld [vmem:[%s6796_s5 + $0x48] sm:$0xff] }
 0xebe   :  { %6903 = vst [vmem:[#allocation10_spill] sm:$0xff] %v6280_v8  ;;  %6904 = vst [vmem:[#allocation14_spill] sm:$0xff] %v6287_v11 }
 0xebf   :  { %v2383_v9 = vmul.f32 1.442695, %v2379_v17  ;;  %v2380_v10 = vsub.f32 0.0, %v2371_v19  ;;  %6905 = vst [vmem:[#allocation2_spill] sm:$0xff] %v6294_v14  ;;  %v6301_v17 = vld [vmem:[%s6796_s5 + $0x40] sm:$0xff]  ;;  %v6308_v19 = vld [vmem:[%s6796_s5 + $0x38] sm:$0xff] }
 0xec0   :  { %6906 = vst [vmem:[#allocation7_spill] sm:$0xff] %v6301_v17  ;;  %6907 = vst [vmem:[#allocation8_spill] sm:$0xff] %v6308_v19 }
 0xec1   :  { %5034 = vpow2.f32 %v2383_v9  ;;  %v2385_v20 = vmul.f32 1.442695, %v2380_v10  ;;  %v6315_v9 = vld [vmem:[%s6796_s5 + $0x30] sm:$0xff]  ;;  %v6322_v10 = vld [vmem:[%s6796_s5 + $0x28] sm:$0xff] }
 0xec2   :  { %6908 = vst [vmem:[#allocation9_spill] sm:$0xff] %v6315_v9  ;;  %6909 = vst [vmem:[#allocation11_spill] sm:$0xff] %v6322_v10 }
 0xec3   :  { %5036 = vpow2.f32 %v2385_v20  ;;  %v6329_v20 = vld [vmem:[%s6796_s5 + $0x20] sm:$0xff] }
 0xec4   :  { %6910 = vst [vmem:[#allocation3_spill] sm:$0xff] %v6329_v20 }
 0xece   :  { %v5035_v22 = vpop.eup %5034 }
 0xecf   :  { %v2391_v36 = vadd.f32 1.0, %v5035_v22  ;;  %v6336_v22 = vld [vmem:[%s6796_s5 + $0x18] sm:$0xff] }
 0xed0   :  { %v5037_v13 = vpop.eup %5036  ;;  %6911 = vst [vmem:[#allocation13_spill] sm:$0xff] %v6336_v22 }
 0xed1   :  { %v2392_v12 = vadd.f32 1.0, %v5037_v13  ;;  %5038 = vrcp.f32 %v2391_v36  ;;  %v6343_v36 = vld [vmem:[%s6796_s5 + $0x10] sm:$0xff]  ;;  %v6350_v13 = vld [vmem:[%s6796_s5 + $0x8] sm:$0xff] }
 0xed2   :  { %6912 = vst [vmem:[#allocation5_spill] sm:$0xff] %v6343_v36  ;;  %6913 = vst [vmem:[#allocation6_spill] sm:$0xff] %v6350_v13 }
 0xed3   :  { %5040 = vrcp.f32 %v2392_v12  ;;  %v6357_v12 = vld [vmem:[%s6796_s5] sm:$0xff] }
 0xed4   :  { %6914 = vst [vmem:[#allocation12_spill] sm:$0xff] %v6357_v12 }
 0xede   :  { %v5039_v16 = vpop.eup %5038 }
 0xedf   :  { %v2403_v60 = vmul.f32 %v5039_v16, %v6187_v46  ;;  %v2297_v16 = vpop.f32.mrf.mxu1 }
 0xee0   :  { %v5041_v30 = vpop.eup %5040 }
 0xee1   :  { %v2404_v15 = vmul.f32 %v5041_v30, %v6183_v61  ;;  %v2299_v30 = vpop.f32.mrf.mxu1 }
 0xee3   :  { %4744 = vmatprep.subr.mxu1 %v2404_v15 }
 0xee4   :  { %4745 = vmatpush3.msra.mxu1 %v2404_v15 }
 0xee5   :  { %4746 = vmatprep.subr.mxu1 %v2403_v60 }
 0xee6   :  { %4747 = vmatpush3.msra.mxu1 %v2403_v60 }
 0xee7   :  { %4749 = vmatmul.mubr.msk.f32.vlgmr.msra.gmra.mxu1 %vm35_vm0, %v6231_v45  ;;  %4751 = vmatprep.subr.msk.mxu1 %vm158_vm1, %v6238_v48 }
 0xee8   :  { %4752 = vmatpush3.msk.msra.mxu1 %vm158_vm1, %v6238_v48  ;;  %4753 = vmatprep.mubr.msk.f32.mxu1 %vm151_vm2, %v4234_v44  ;;  %v2374_v44 = vpop.f32.mrf.mxu0 }
 0xee9   :  { %4756 = vmatprep.subr.mxu1 %v6251_v51 }
 0xeeb   :  { %4754 = vmatmul.mubr.msk.f32.vlgmr.msra.gmra.mxu1 %vm151_vm2, %v4235_v49  ;;  %v2376_v49 = vpop.f32.mrf.mxu0 }
 0xeec   :  { %4757 = vmatpush3.msra.mxu1 %v6251_v51 }
 0xeed   :  { %4758 = vmatprep.subr.mxu1 %v6259_v52 }
 0xeee   :  { %4759 = vmatpush3.msra.mxu1 %v6259_v52 }
 0xeef   :  { %4760 = vmatprep.subr.mxu1 %v6266_v6 }
 0xef0   :  { %4761 = vmatpush3.msra.mxu1 %v6266_v6 }
 0xef1   :  { %4762 = vmatprep.subr.mxu1 %v6273_v7 }
 0xef2   :  { %4763 = vmatpush3.msra.mxu1 %v6273_v7 }
 0xef3   :  { %4764 = vmatprep.subr.mxu1 %v6280_v8 }
 0xef4   :  { %4765 = vmatpush3.msra.mxu1 %v6280_v8 }
 0xef5   :  { %4766 = vmatprep.subr.mxu1 %v6287_v11 }
 0xef6   :  { %4767 = vmatpush3.msra.mxu1 %v6287_v11 }
 0xef7   :  { %4768 = vmatprep.subr.mxu1 %v6294_v14 }
 0xef8   :  { %4769 = vmatpush3.msra.mxu1 %v6294_v14 }
 0xef9   :  { %4770 = vmatprep.subr.mxu1 %v6301_v17 }
 0xefa   :  { %4771 = vmatpush3.msra.mxu1 %v6301_v17 }
 0xefb   :  { %4772 = vmatprep.subr.mxu1 %v6308_v19 }
 0xefc   :  { %4773 = vmatpush3.msra.mxu1 %v6308_v19 }
 0xefd   :  { %4774 = vmatprep.subr.mxu1 %v6315_v9 }
 0xefe   :  { %4775 = vmatpush3.msra.mxu1 %v6315_v9 }
 0xeff   :  { %4776 = vmatprep.subr.mxu1 %v6322_v10 }
 0xf00   :  { %4777 = vmatpush3.msra.mxu1 %v6322_v10 }
 0xf01   :  { %4778 = vmatprep.subr.mxu1 %v6329_v20 }
 0xf02   :  { %4779 = vmatpush3.msra.mxu1 %v6329_v20 }
 0xf03   :  { %4780 = vmatprep.subr.mxu1 %v6336_v22 }
 0xf04   :  { %4781 = vmatpush3.msra.mxu1 %v6336_v22 }
 0xf05   :  { %4782 = vmatprep.subr.mxu1 %v6343_v36 }
 0xf06   :  { %4783 = vmatpush3.msra.mxu1 %v6343_v36  ;;  %v2375_v36 = vadd.f32 %v2374_v44, %v2297_v16 }
 0xf07   :  { %4784 = vmatprep.subr.mxu1 %v6350_v13 }
 0xf08   :  { %4785 = vmatpush3.msra.mxu1 %v6350_v13  ;;  %v2377_v13 = vadd.f32 %v2376_v49, %v2299_v30  ;;  %v2381_v20 = vsub.f32 0.0, %v2375_v36 }
 0xf09   :  { %4786 = vmatprep.subr.mxu1 %v6357_v12 }
 0xf0a   :  { %4787 = vmatpush3.msra.mxu1 %v6357_v12  ;;  %v2382_v22 = vsub.f32 0.0, %v2377_v13  ;;  %v2387_v9 = vmul.f32 1.442695, %v2381_v20 }
 0xf0c   :  { %v2389_v10 = vmul.f32 1.442695, %v2382_v22 }
 0xf0e   :  { %5042 = vpow2.f32 %v2389_v10 }
 0xf0f   :  { %5044 = vpow2.f32 %v2387_v9 }
 0xf1b   :  { %v5043_v12 = vpop.eup %5042 }
 0xf1c   :  { %v5045_v19 = vpop.eup %5044  ;;  %v2394_v14 = vadd.f32 1.0, %v5043_v12 }
 0xf1d   :  { %v2393_v11 = vadd.f32 1.0, %v5045_v19 }
 0xf1e   :  { %5046 = vrcp.f32 %v2394_v14 }
 0xf1f   :  { %5048 = vrcp.f32 %v2393_v11 }
 0xf2b   :  { %v5047_v13 = vpop.eup %5046 }
 0xf2c   :  { %v5049_v36 = vpop.eup %5048  ;;  %v2641_v22 = vsub.f32 1.0, %v5047_v13  ;;  %v2639_v9 = vmul.f32 %v5047_v13, %v6183_v61  ;;  %v4247_v61 = vld [vmem:[%s6792_s0 + $0x50] sm:$0xff] }
 0xf2d   :  { %v2640_v16 = vsub.f32 1.0, %v5049_v36  ;;  %v2638_v14 = vmul.f32 %v5049_v36, %v6187_v46  ;;  %v4248_v46 = vld [vmem:[%s6792_s0 + $0x58] sm:$0xff] }
 0xfa7   :  { %v4750_v15 = vpop.f32.mrf.mxu1 }
 0xfa9   :  { %v2471_v60 = vpop.f32.mrf.mxu1 }
 0xfaa   :  { %4788 = vmatprep.mubr.f32.mxu1 %v2471_v60 }
 0xfab   :  { %4789 = vmatmul.mubr.f32.vlgmr.msra.gmra.mxu1 %v4750_v15  ;;  %v4755_v17 = vpop.f32.mrf.mxu1 }
 0xfac   :  { %4802 = vmatprep.mubr.msk.f32.mxu1 %vm35_vm0, %v6216_v50 }
 0xfad   :  { %v2552_v60 = vpop.f32.mrf.mxu1 }
0x106b   :  { %v4790_v15 = vpop.f32.mrf.mxu1 }
0x106c   :  { %v2633_v50 = vadd.f32 %v4790_v15, %v4755_v17 }
0x106d   :  { %v2627_v8 = vpop.f32.mrf.mxu1 }
0x106e   :  { %5050 = vtanh.f32 %v2633_v50  ;;  %v2628_v30 = vadd.f32 %v2627_v8, %v2552_v60 }
0x1070   :  { %5052 = vtanh.f32 %v2628_v30 }
0x107b   :  { %v5051_v20 = vpop.eup %5050 }
0x107c   :  { %v2643_v10 = vmul.f32 %v5051_v20, %v2641_v22 }
0x107d   :  { %v5053_v44 = vpop.eup %5052 }
0x107e   :  { %v6364_v12 = vadd.f32 %v2643_v10, %v2639_v9  ;;  %v2642_v19 = vmul.f32 %v5053_v44, %v2640_v16 }
0x1080   :  { %4791 = vmatprep.subr.mxu0 %v6364_v12  ;;  %v6368_v11 = vadd.f32 %v2642_v19, %v2638_v14 }
0x1081   :  { %4792 = vmatpush3.msra.mxu0 %v6364_v12 }
0x1082   :  { %4793 = vmatprep.subr.mxu0 %v6368_v11 }
0x1083   :  { %4794 = vmatpush3.msra.mxu0 %v6368_v11 }
0x1084   :  { %4796 = vmatmul.mubr.msk.f32.vlgmr.msra.gmra.mxu0 %vm35_vm0, %v6899_v47  ;;  %4253 = vmatprep.subr.msk.mxu0 %vm158_vm1, %v6900_v18 }
0x1085   :  { %4254 = vmatpush1.msk.msra.mxu0 %vm158_vm1, %v6199_v21  ;;  %2797 = vmatprep.mubr.f32.mxu0 %v6870_v32 }
0x1086   :  { %2810 = vmatprep.subr.mxu0 %v5891_v23 }
0x1088   :  { %4255 = vmatmul.mubr.msk.f32.vlgmr.msra.gmra.mxu0 %vm151_vm2, %v4247_v61 }
0x1089   :  { %2811 = vmatpush1.msra.mxu0 %v5898_v24  ;;  %2803 = vmatprep.mubr.f32.mxu0 %v6870_v32 }
0x108a   :  { %2812 = vmatprep.subr.mxu0 %v5908_v25 }
0x108b   :  { %2813 = vmatpush1.msra.mxu0 %v5914_v26 }
0x108c   :  { %2814 = vmatprep.subr.mxu0 %v5920_v27  ;;  %4256 = vmatmul.mubr.msk.f32.gmra.mxu0 %vm151_vm2, %v4248_v46 }
0x108d   :  { %2815 = vmatpush1.msra.mxu0 %v5927_v54  ;;  %2874 = vmatprep.mubr.f32.mxu0 %v6870_v32 }
0x108e   :  { %2816 = vmatprep.subr.mxu0 %v5934_v55 }
0x108f   :  { %2817 = vmatpush1.msra.mxu0 %v5940_v37 }
0x1090   :  { %2818 = vmatprep.subr.mxu0 %v5946_v62 }
0x1091   :  { %2819 = vmatpush1.msra.mxu0 %v5952_v35 }
0x1092   :  { %2820 = vmatprep.subr.mxu0 %v5958_v56 }
0x1093   :  { %2821 = vmatpush1.msra.mxu0 %v5964_v0 }
0x1094   :  { %2822 = vmatprep.subr.mxu0 %v5970_v33 }
0x1095   :  { %2823 = vmatpush1.msra.mxu0 %v5976_v57 }
0x1096   :  { %2824 = vmatprep.subr.mxu0 %v5982_v58 }
0x1097   :  { %2825 = vmatpush1.msra.mxu0 %v5988_v31 }
0x1098   :  { %2826 = vmatprep.subr.mxu0 %v5994_v28 }
0x1099   :  { %2827 = vmatpush1.msra.mxu0 %v6000_v34 }
0x109a   :  { %2828 = vmatprep.subr.mxu0 %v6006_v59 }
0x109b   :  { %2829 = vmatpush1.msra.mxu0 %v6012_v29 }
0x109c   :  { %2830 = vmatprep.subr.mxu0 %v6018_v1 }
0x109d   :  { %2831 = vmatpush1.msra.mxu0 %v6024_v41 }
0x109e   :  { %2832 = vmatprep.subr.mxu0 %v6030_v3 }
0x109f   :  { %2833 = vmatpush1.msra.mxu0 %v6036_v4 }
0x10a0   :  { %2834 = vmatprep.subr.mxu0 %v6042_v2 }
0x10a1   :  { %2835 = vmatpush1.msra.mxu0 %v6048_v5 }
0x10a2   :  { %2836 = vmatprep.subr.mxu0 %v6893_v63 }
0x10a3   :  { %2837 = vmatpush1.msra.mxu0 %v6894_v38 }
0x10a4   :  { %2838 = vmatprep.subr.mxu0 %v6895_v39 }
0x10a5   :  { %2839 = vmatpush1.msra.mxu0 %v6896_v40 }
0x10a6   :  { %2840 = vmatprep.subr.mxu0 %v6171_v42 }
0x10a7   :  { %2841 = vmatpush1.msra.mxu0 %v6177_v43 }
0x1144   :  { %v4797_v47 = vpop.f32.mrf.mxu0 }
0x1146   :  { %v2718_v18 = vpop.f32.mrf.mxu0 }
0x1147   :  { %2875 = vmatmul.mubr.f32.vlgmr.msra.gmra.mxu0 %v2718_v18  ;;  %v4249_v18 = vld [vmem:[%s6795_s1 + $0x50] sm:$0xff] }
0x1148   :  { %2880 = vmatprep.mubr.f32.mxu0 %v6870_v32  ;;  %v2799_v50 = vpop.f32.mrf.mxu0 }
0x114a   :  { %v2801_v8 = vpop.f32.mrf.mxu0 }
0x114b   :  { %2881 = vmatmul.mubr.f32.gmra.mxu0 %v4797_v47 }
0x114c   :  { %4849 = vmatprep.mubr.msk.f32.mxu0 %vm35_vm0, %v6902_v53  ;;  %v6425_v17 = vpop.f32.mrf.mxu0 }
0x114e   :  { %v6427_v49 = vpop.f32.mrf.mxu0 }
0x1207   :  { %v2876_v60 = vpop.f32.mrf.mxu0 }
0x1208   :  { %v2877_v15 = vadd.f32 %v2876_v60, %v2799_v50  ;;  %v4250_v50 = vld [vmem:[%s6795_s1 + $0x58] sm:$0xff]  ;;  %v6916_v60 = vld [vmem:[#allocation14_spill] sm:$0xff] }
0x1209   :  { %v2878_v30 = vpop.f32.mrf.mxu0 }
0x120a   :  { %v2887_v13 = vsub.f32 0.0, %v2877_v15  ;;  %v2879_v36 = vadd.f32 %v2878_v30, %v2801_v8  ;;  %v6915_v8 = vld [vmem:[#allocation10_spill] sm:$0xff]  ;;  %v6918_v30 = vld [vmem:[#allocation7_spill] sm:$0xff] }
0x120b   :  { %v6917_v15 = vld [vmem:[#allocation2_spill] sm:$0xff] }
0x120c   :  { %v2891_v22 = vmul.f32 1.442695, %v2887_v13  ;;  %v2888_v20 = vsub.f32 0.0, %v2879_v36  ;;  %v6919_v13 = vld [vmem:[#allocation8_spill] sm:$0xff]  ;;  %v6920_v36 = vld [vmem:[#allocation9_spill] sm:$0xff] }
0x120e   :  { %5054 = vpow2.f32 %v2891_v22  ;;  %v2893_v9 = vmul.f32 1.442695, %v2888_v20  ;;  %v6921_v22 = vld [vmem:[#allocation11_spill] sm:$0xff] }
0x120f   :  { %v6922_v20 = vld [vmem:[#allocation3_spill] sm:$0xff] }
0x1210   :  { %5056 = vpow2.f32 %v2893_v9  ;;  %v6923_v9 = vld [vmem:[#allocation13_spill] sm:$0xff] }
0x121b   :  { %v5055_v10 = vpop.eup %5054 }
0x121c   :  { %v2899_v16 = vadd.f32 1.0, %v5055_v10  ;;  %v6924_v10 = vld [vmem:[#allocation5_spill] sm:$0xff] }
0x121d   :  { %v5057_v44 = vpop.eup %5056 }
0x121e   :  { %v2900_v14 = vadd.f32 1.0, %v5057_v44  ;;  %5058 = vrcp.f32 %v2899_v16  ;;  %v6925_v16 = vld [vmem:[#allocation6_spill] sm:$0xff]  ;;  %v6926_v44 = vld [vmem:[#allocation12_spill] sm:$0xff] }
0x1220   :  { %5060 = vrcp.f32 %v2900_v14 }
0x122b   :  { %v5059_v19 = vpop.eup %5058 }
0x122c   :  { %v2911_v47 = vmul.f32 %v5059_v19, %v6368_v11 }
0x122d   :  { %v5061_v61 = vpop.eup %5060 }
0x122e   :  { %v2912_v46 = vmul.f32 %v5061_v61, %v6364_v12 }
0x1230   :  { %4798 = vmatprep.subr.mxu1 %v2912_v46 }
0x1231   :  { %4799 = vmatpush3.msra.mxu1 %v2912_v46 }
0x1232   :  { %4800 = vmatprep.subr.mxu1 %v2911_v47 }
0x1233   :  { %4801 = vmatpush3.msra.mxu1 %v2911_v47 }
0x1234   :  { %4803 = vmatmul.mubr.msk.f32.vlgmr.msra.gmra.mxu1 %vm35_vm0, %v6231_v45  ;;  %4805 = vmatprep.subr.msk.mxu1 %vm158_vm1, %v6238_v48 }
0x1235   :  { %4806 = vmatpush3.msk.msra.mxu1 %vm158_vm1, %v6238_v48  ;;  %4807 = vmatprep.mubr.msk.f32.mxu1 %vm151_vm2, %v4249_v18 }
0x1236   :  { %4810 = vmatprep.subr.mxu1 %v6251_v51 }
0x1238   :  { %4808 = vmatmul.mubr.msk.f32.vlgmr.msra.gmra.mxu1 %vm151_vm2, %v4250_v50 }
0x1239   :  { %4811 = vmatpush3.msra.mxu1 %v6251_v51 }
0x123a   :  { %4812 = vmatprep.subr.mxu1 %v6259_v52 }
0x123b   :  { %4813 = vmatpush3.msra.mxu1 %v6259_v52 }
0x123c   :  { %4814 = vmatprep.subr.mxu1 %v6266_v6 }
0x123d   :  { %4815 = vmatpush3.msra.mxu1 %v6266_v6 }
0x123e   :  { %4816 = vmatprep.subr.mxu1 %v6273_v7 }
0x123f   :  { %4817 = vmatpush3.msra.mxu1 %v6273_v7 }
0x1240   :  { %4818 = vmatprep.subr.mxu1 %v6915_v8 }
0x1241   :  { %4819 = vmatpush3.msra.mxu1 %v6915_v8 }
0x1242   :  { %4820 = vmatprep.subr.mxu1 %v6916_v60 }
0x1243   :  { %4821 = vmatpush3.msra.mxu1 %v6916_v60 }
0x1244   :  { %4822 = vmatprep.subr.mxu1 %v6917_v15 }
0x1245   :  { %4823 = vmatpush3.msra.mxu1 %v6917_v15 }
0x1246   :  { %4824 = vmatprep.subr.mxu1 %v6918_v30 }
0x1247   :  { %4825 = vmatpush3.msra.mxu1 %v6918_v30 }
0x1248   :  { %4826 = vmatprep.subr.mxu1 %v6919_v13 }
0x1249   :  { %4827 = vmatpush3.msra.mxu1 %v6919_v13 }
0x124a   :  { %4828 = vmatprep.subr.mxu1 %v6920_v36 }
0x124b   :  { %4829 = vmatpush3.msra.mxu1 %v6920_v36 }
0x124c   :  { %4830 = vmatprep.subr.mxu1 %v6921_v22 }
0x124d   :  { %4831 = vmatpush3.msra.mxu1 %v6921_v22 }
0x124e   :  { %4832 = vmatprep.subr.mxu1 %v6922_v20 }
0x124f   :  { %4833 = vmatpush3.msra.mxu1 %v6922_v20 }
0x1250   :  { %4834 = vmatprep.subr.mxu1 %v6923_v9 }
0x1251   :  { %4835 = vmatpush3.msra.mxu1 %v6923_v9 }
0x1252   :  { %4836 = vmatprep.subr.mxu1 %v6924_v10 }
0x1253   :  { %4837 = vmatpush3.msra.mxu1 %v6924_v10 }
0x1254   :  { %4838 = vmatprep.subr.mxu1 %v6925_v16 }
0x1255   :  { %4839 = vmatpush3.msra.mxu1 %v6925_v16 }
0x1256   :  { %4840 = vmatprep.subr.mxu1 %v6926_v44 }
0x1257   :  { %4841 = vmatpush3.msra.mxu1 %v6926_v44 }
0x1258   :  { %3318 = vmatprep.subr.mxu1 %v5891_v23  ;;  %v2882_v23 = vpop.f32.mrf.mxu0 }
0x12f4   :  { %v4804_v14 = vpop.f32.mrf.mxu1 }
0x12f6   :  { %v2979_v19 = vpop.f32.mrf.mxu1 }
0x12f7   :  { %4842 = vmatprep.mubr.f32.mxu1 %v2979_v19 }
0x12f8   :  { %4843 = vmatmul.mubr.f32.vlgmr.msra.gmra.mxu1 %v4804_v14 }
0x12f9   :  { %3319 = vmatpush1.msra.mxu1 %v5898_v24  ;;  %3382 = vmatprep.mubr.f32.mxu1 %v6870_v32  ;;  %v2884_v24 = vpop.f32.mrf.mxu0 }
0x12fa   :  { %3320 = vmatprep.subr.mxu1 %v5908_v25  ;;  %v2885_v25 = vadd.f32 %v2884_v24, %v6427_v49 }
0x12fb   :  { %3321 = vmatpush1.msra.mxu1 %v5914_v26  ;;  %v2883_v26 = vadd.f32 %v2882_v23, %v6425_v17  ;;  %v6927_v17 = vld [vmem:[#allocation4_spill] sm:$0xff] }
0x12fc   :  { %3322 = vmatprep.subr.mxu1 %v5920_v27  ;;  %v2890_v27 = vsub.f32 0.0, %v2885_v25 }
0x12fd   :  { %3323 = vmatpush1.msra.mxu1 %v5927_v54  ;;  %v2889_v54 = vsub.f32 0.0, %v2883_v26 }
0x12fe   :  { %3324 = vmatprep.subr.mxu1 %v5934_v55  ;;  %v2897_v55 = vmul.f32 1.442695, %v2890_v27 }
0x12ff   :  { %3325 = vmatpush1.msra.mxu1 %v5940_v37  ;;  %v2895_v37 = vmul.f32 1.442695, %v2889_v54 }
0x1300   :  { %3326 = vmatprep.subr.mxu1 %v5946_v62  ;;  %5062 = vpow2.f32 %v2897_v55 }
0x1301   :  { %3327 = vmatpush1.msra.mxu1 %v5952_v35  ;;  %5064 = vpow2.f32 %v2895_v37 }
0x1302   :  { %3328 = vmatprep.subr.mxu1 %v5958_v56  ;;  %v4809_v56 = vpop.f32.mrf.mxu1 }
0x1303   :  { %3329 = vmatpush1.msra.mxu1 %v5964_v0 }
0x1304   :  { %3330 = vmatprep.subr.mxu1 %v5970_v33 }
0x1305   :  { %3331 = vmatpush1.msra.mxu1 %v5976_v57  ;;  %v3060_v57 = vpop.f32.mrf.mxu1 }
0x1306   :  { %3332 = vmatprep.subr.mxu1 %v5982_v58 }
0x1307   :  { %3333 = vmatpush1.msra.mxu1 %v5988_v31 }
0x1308   :  { %3334 = vmatprep.subr.mxu1 %v5994_v28 }
0x1309   :  { %3335 = vmatpush1.msra.mxu1 %v6000_v34 }
0x130a   :  { %3336 = vmatprep.subr.mxu1 %v6006_v59 }
0x130b   :  { %3337 = vmatpush1.msra.mxu1 %v6012_v29 }
0x130c   :  { %3338 = vmatprep.subr.mxu1 %v6018_v1 }
0x130d   :  { %3339 = vmatpush1.msra.mxu1 %v6024_v41  ;;  %v5063_v62 = vpop.eup %5062 }
0x130e   :  { %3340 = vmatprep.subr.mxu1 %v6030_v3  ;;  %v5065_v35 = vpop.eup %5064  ;;  %v2902_v0 = vadd.f32 1.0, %v5063_v62 }
0x130f   :  { %3341 = vmatpush1.msra.mxu1 %v6036_v4  ;;  %v2901_v33 = vadd.f32 1.0, %v5065_v35 }
0x1310   :  { %3342 = vmatprep.subr.mxu1 %v6042_v2  ;;  %5066 = vrcp.f32 %v2902_v0  ;;  %v4264_v0 = vld [vmem:[%s6795_s1 + $0x60] sm:$0xff] }
0x1311   :  { %3343 = vmatpush1.msra.mxu1 %v6048_v5  ;;  %5068 = vrcp.f32 %v2901_v33  ;;  %v4265_v33 = vld [vmem:[%s6795_s1 + $0x68] sm:$0xff] }
0x1312   :  { %3344 = vmatprep.subr.mxu1 %v6893_v63 }
0x1313   :  { %3345 = vmatpush1.msra.mxu1 %v6894_v38 }
0x1314   :  { %3346 = vmatprep.subr.mxu1 %v6895_v39 }
0x1315   :  { %3347 = vmatpush1.msra.mxu1 %v6896_v40 }
0x1316   :  { %3348 = vmatprep.subr.mxu1 %v6171_v42  ;;  %v6525_v42 = vld [vmem:[%s6789_s2 + $0x8] sm:$0xff] }
0x1317   :  { %3349 = vmatpush1.msra.mxu1 %v6177_v43  ;;  %v6532_v43 = vld [vmem:[%s6791_s6 + $0x8] sm:$0x1f] }
0x131d   :  { %v5067_v59 = vpop.eup %5066 }
0x131e   :  { %v5069_v29 = vpop.eup %5068  ;;  %v3149_v1 = vsub.f32 1.0, %v5067_v59  ;;  %v3147_v3 = vmul.f32 %v5067_v59, %v6364_v12  ;;  %v4262_v12 = vld [vmem:[%s6792_s0 + $0x60] sm:$0xff] }
0x131f   :  { %v3148_v2 = vsub.f32 1.0, %v5069_v29  ;;  %v3146_v38 = vmul.f32 %v5069_v29, %v6368_v11  ;;  %v4263_v11 = vld [vmem:[%s6792_s0 + $0x68] sm:$0xff] }
0x13b8   :  { %v4844_v58 = vpop.f32.mrf.mxu1 }
0x13b9   :  { %v3141_v31 = vadd.f32 %v4844_v58, %v4809_v56 }
0x13ba   :  { %v3135_v28 = vpop.f32.mrf.mxu1 }
0x13bb   :  { %5070 = vtanh.f32 %v3141_v31  ;;  %v3136_v34 = vadd.f32 %v3135_v28, %v3060_v57 }
0x13bd   :  { %5072 = vtanh.f32 %v3136_v34 }
0x13c8   :  { %v5071_v41 = vpop.eup %5070 }
0x13c9   :  { %v3151_v4 = vmul.f32 %v5071_v41, %v3149_v1 }
0x13ca   :  { %v5073_v5 = vpop.eup %5072 }
0x13cb   :  { %v6513_v63 = vadd.f32 %v3151_v4, %v3147_v3  ;;  %v3150_v39 = vmul.f32 %v5073_v5, %v3148_v2 }
0x13cd   :  { %4845 = vmatprep.subr.mxu0 %v6513_v63  ;;  %v6517_v40 = vadd.f32 %v3150_v39, %v3146_v38 }
0x13ce   :  { %4846 = vmatpush3.msra.mxu0 %v6513_v63 }
0x13cf   :  { %4847 = vmatprep.subr.mxu0 %v6517_v40 }
0x13d0   :  { %4848 = vmatpush3.msra.mxu0 %v6517_v40 }
0x13d1   :  { %4850 = vmatmul.mubr.msk.f32.vlgmr.msra.gmra.mxu0 %vm35_vm0, %v6525_v42  ;;  %4268 = vmatprep.subr.msk.mxu0 %vm158_vm1, %v6532_v43 }
0x13d2   :  { %4269 = vmatpush1.msk.msra.mxu0 %vm158_vm1, %v6199_v21  ;;  %3305 = vmatprep.mubr.f32.mxu0 %v6870_v32 }
0x13d5   :  { %4270 = vmatmul.mubr.msk.f32.vlgmr.msra.gmra.mxu0 %vm151_vm2, %v4262_v12 }
0x13d6   :  { %3311 = vmatprep.mubr.f32.mxu0 %v6870_v32 }
0x13d9   :  { %4271 = vmatmul.mubr.msk.f32.gmra.mxu0 %vm151_vm2, %v4263_v11 }
0x13da   :  { %4856 = vmatprep.mubr.msk.f32.mxu0 %vm35_vm0, %v6927_v17 }
0x1491   :  { %v4851_v49 = vpop.f32.mrf.mxu0 }
0x1493   :  { %v3226_v61 = vpop.f32.mrf.mxu0 }
0x1494   :  { %3383 = vmatmul.mubr.f32.vlgmr.msra.gmra.mxu1 %v3226_v61 }
0x1495   :  { %3388 = vmatprep.mubr.f32.mxu1 %v6870_v32  ;;  %v3307_v46 = vpop.f32.mrf.mxu0 }
0x1497   :  { %v3309_v50 = vpop.f32.mrf.mxu0 }
0x1498   :  { %3389 = vmatmul.mubr.f32.gmra.mxu1 %v4851_v49 }
0x1499   :  { %4903 = vmatprep.mubr.msk.f32.mxu1 %vm35_vm0, %v6902_v53  ;;  %v3313_v57 = vpop.f32.mrf.mxu0 }
0x149b   :  { %v3315_v58 = vpop.f32.mrf.mxu0 }
0x1554   :  { %v3384_v47 = vpop.f32.mrf.mxu1 }
0x1555   :  { %v3385_v18 = vadd.f32 %v3384_v47, %v3307_v46 }
0x1556   :  { %v3386_v14 = vpop.f32.mrf.mxu1 }
0x1557   :  { %v3395_v19 = vsub.f32 0.0, %v3385_v18  ;;  %v3387_v23 = vadd.f32 %v3386_v14, %v3309_v50 }
0x1558   :  { %v3390_v34 = vpop.f32.mrf.mxu1 }
0x1559   :  { %v3399_v24 = vmul.f32 1.442695, %v3395_v19  ;;  %v3396_v25 = vsub.f32 0.0, %v3387_v23  ;;  %v3391_v1 = vadd.f32 %v3390_v34, %v3313_v57  ;;  %v5180_v57 = vld [vmem:[%s6790_s4 + $0xb0] sm:$0xff] }
0x155a   :  { %v3392_v59 = vpop.f32.mrf.mxu1  ;;  %v5184_v34 = vld [vmem:[%s6790_s4 + $0x90] sm:$0xff] }
0x155b   :  { %5074 = vpow2.f32 %v3399_v24  ;;  %v3401_v26 = vmul.f32 1.442695, %v3396_v25  ;;  %v3393_v29 = vadd.f32 %v3392_v59, %v3315_v58  ;;  %v3397_v3 = vsub.f32 0.0, %v3391_v1  ;;  %v5181_v58 = vld [vmem:[%s6790_s4 + $0xa8] sm:$0xff]  ;;  %v5187_v1 = vld [vmem:[%s6790_s4 + $0x78] sm:$0xff] }
0x155c   :  { %v5185_v59 = vld [vmem:[%s6790_s4 + $0x88] sm:$0xff] }
0x155d   :  { %5076 = vpow2.f32 %v3401_v26  ;;  %v3398_v41 = vsub.f32 0.0, %v3393_v29  ;;  %v3403_v2 = vmul.f32 1.442695, %v3397_v3  ;;  %v5186_v29 = vld [vmem:[%s6790_s4 + $0x80] sm:$0xff]  ;;  %v5189_v3 = vld [vmem:[%s6790_s4 + $0x68] sm:$0xff] }
0x155f   :  { %v3405_v4 = vmul.f32 1.442695, %v3398_v41  ;;  %v5188_v41 = vld [vmem:[%s6790_s4 + $0x70] sm:$0xff] }
0x1568   :  { %v5075_v27 = vpop.eup %5074 }
0x1569   :  { %v3407_v54 = vadd.f32 1.0, %v5075_v27 }
0x156a   :  { %v5077_v55 = vpop.eup %5076 }
0x156b   :  { %v3408_v37 = vadd.f32 1.0, %v5077_v55  ;;  %5078 = vrcp.f32 %v3407_v54 }
0x156d   :  { %5080 = vrcp.f32 %v3408_v37 }
0x156e   :  { %5082 = vpow2.f32 %v3405_v4  ;;  %v5190_v4 = vld [vmem:[%s6790_s4 + $0x60] sm:$0xff] }
0x156f   :  { %5084 = vpow2.f32 %v3403_v2  ;;  %v5191_v2 = vld [vmem:[%s6790_s4 + $0x58] sm:$0xff] }
0x1578   :  { %v5079_v62 = vpop.eup %5078 }
0x1579   :  { %v3419_v56 = vmul.f32 %v5079_v62, %v6517_v40  ;;  %v5174_v62 = vld [vmem:[%s6790_s4 + $0xe0] sm:$0xff] }
0x157a   :  { %v5081_v53 = vpop.eup %5080 }
0x157b   :  { %v3420_v35 = vmul.f32 %v5081_v53, %v6513_v63  ;;  %v5083_v5 = vpop.eup %5082  ;;  %v5175_v53 = vld [vmem:[%s6790_s4 + $0xd8] sm:$0xff] }
0x157c   :  { %v5085_v38 = vpop.eup %5084  ;;  %v3410_v12 = vadd.f32 1.0, %v5083_v5  ;;  %v5192_v5 = vld [vmem:[%s6790_s4 + $0x50] sm:$0xff] }
0x157d   :  { %4852 = vmatprep.subr.mxu0 %v3420_v35  ;;  %v3409_v11 = vadd.f32 1.0, %v5085_v38  ;;  %v5193_v38 = vld [vmem:[%s6790_s4 + $0x48] sm:$0xff] }
0x157e   :  { %4853 = vmatpush3.msra.mxu0 %v3420_v35  ;;  %5086 = vrcp.f32 %v3410_v12  ;;  %v5176_v35 = vld [vmem:[%s6790_s4 + $0xd0] sm:$0xff]  ;;  %v5195_v12 = vld [vmem:[%s6790_s4 + $0x38] sm:$0xff] }
0x157f   :  { %4854 = vmatprep.subr.mxu0 %v3419_v56  ;;  %5088 = vrcp.f32 %v3409_v11  ;;  %v5196_v11 = vld [vmem:[%s6790_s4 + $0x30] sm:$0xff] }
0x1580   :  { %4855 = vmatpush3.msra.mxu0 %v3419_v56  ;;  %v5177_v56 = vld [vmem:[%s6790_s4 + $0xc8] sm:$0xff] }
0x1581   :  { %4857 = vmatmul.mubr.msk.f32.vlgmr.msra.gmra.mxu0 %vm35_vm0, %v6231_v45  ;;  %4859 = vmatprep.subr.msk.mxu0 %vm158_vm1, %v6238_v48 }
0x1582   :  { %4860 = vmatpush3.msk.msra.mxu0 %vm158_vm1, %v6238_v48  ;;  %4861 = vmatprep.mubr.msk.f32.mxu0 %vm151_vm2, %v4264_v0  ;;  %v5178_v0 = vld [vmem:[%s6790_s4 + $0xc0] sm:$0xff] }
0x1583   :  { %4864 = vmatprep.subr.mxu0 %v6251_v51 }
0x1585   :  { %4862 = vmatmul.mubr.msk.f32.vlgmr.msra.gmra.mxu0 %vm151_vm2, %v4265_v33  ;;  %v5179_v33 = vld [vmem:[%s6790_s4 + $0xb8] sm:$0xff] }
0x1586   :  { %4865 = vmatpush3.msra.mxu0 %v6251_v51 }
0x1587   :  { %4866 = vmatprep.subr.mxu0 %v6259_v52 }
0x1588   :  { %4867 = vmatpush3.msra.mxu0 %v6259_v52 }
0x1589   :  { %4868 = vmatprep.subr.mxu0 %v6266_v6 }
0x158a   :  { %4869 = vmatpush3.msra.mxu0 %v6266_v6 }
0x158b   :  { %4870 = vmatprep.subr.mxu0 %v6273_v7  ;;  %v5087_v18 = vpop.eup %5086 }
0x158c   :  { %4871 = vmatpush3.msra.mxu0 %v6273_v7  ;;  %v5089_v50 = vpop.eup %5088  ;;  %v3657_v14 = vsub.f32 1.0, %v5087_v18  ;;  %v3655_v23 = vmul.f32 %v5087_v18, %v6513_v63  ;;  %v4277_v63 = vld [vmem:[%s6792_s0 + $0x70] sm:$0xff]  ;;  %v5202_v18 = vld [vmem:[%s6790_s4] sm:$0xff] }
0x158d   :  { %4872 = vmatprep.subr.mxu0 %v6915_v8  ;;  %v3656_v25 = vsub.f32 1.0, %v5089_v50  ;;  %v3654_v54 = vmul.f32 %v5089_v50, %v6517_v40  ;;  %v5171_v40 = vld [vmem:[%s6790_s4 + $0xf8] sm:$0xff] }
0x158e   :  { %4873 = vmatpush3.msra.mxu0 %v6915_v8 }
0x158f   :  { %4874 = vmatprep.subr.mxu0 %v6916_v60 }
0x1590   :  { %4875 = vmatpush3.msra.mxu0 %v6916_v60 }
0x1591   :  { %4876 = vmatprep.subr.mxu0 %v6917_v15 }
0x1592   :  { %4877 = vmatpush3.msra.mxu0 %v6917_v15 }
0x1593   :  { %4878 = vmatprep.subr.mxu0 %v6918_v30 }
0x1594   :  { %4879 = vmatpush3.msra.mxu0 %v6918_v30 }
0x1595   :  { %4880 = vmatprep.subr.mxu0 %v6919_v13 }
0x1596   :  { %4881 = vmatpush3.msra.mxu0 %v6919_v13 }
0x1597   :  { %4882 = vmatprep.subr.mxu0 %v6920_v36 }
0x1598   :  { %4883 = vmatpush3.msra.mxu0 %v6920_v36 }
0x1599   :  { %4884 = vmatprep.subr.mxu0 %v6921_v22 }
0x159a   :  { %4885 = vmatpush3.msra.mxu0 %v6921_v22 }
0x159b   :  { %4886 = vmatprep.subr.mxu0 %v6922_v20 }
0x159c   :  { %4887 = vmatpush3.msra.mxu0 %v6922_v20 }
0x159d   :  { %4888 = vmatprep.subr.mxu0 %v6923_v9 }
0x159e   :  { %4889 = vmatpush3.msra.mxu0 %v6923_v9 }
0x159f   :  { %4890 = vmatprep.subr.mxu0 %v6924_v10 }
0x15a0   :  { %4891 = vmatpush3.msra.mxu0 %v6924_v10 }
0x15a1   :  { %4892 = vmatprep.subr.mxu0 %v6925_v16 }
0x15a2   :  { %4893 = vmatpush3.msra.mxu0 %v6925_v16 }
0x15a3   :  { %4894 = vmatprep.subr.mxu0 %v6926_v44 }
0x15a4   :  { %4895 = vmatpush3.msra.mxu0 %v6926_v44 }
0x1641   :  { %v4858_v31 = vpop.f32.mrf.mxu0 }
0x1643   :  { %v3487_v28 = vpop.f32.mrf.mxu0 }
0x1644   :  { %4896 = vmatprep.mubr.f32.mxu0 %v3487_v28  ;;  %v5183_v28 = vld [vmem:[%s6790_s4 + $0x98] sm:$0xff] }
0x1645   :  { %4897 = vmatmul.mubr.f32.vlgmr.msra.gmra.mxu0 %v4858_v31  ;;  %v4863_v39 = vpop.f32.mrf.mxu0  ;;  %v5182_v31 = vld [vmem:[%s6790_s4 + $0xa0] sm:$0xff] }
0x1646   :  { %4910 = vmatprep.mubr.msk.f32.mxu0 %vm35_vm0, %v6927_v17 }
0x1647   :  { %v3568_v49 = vpop.f32.mrf.mxu0 }
0x1705   :  { %v4898_v61 = vpop.f32.mrf.mxu0 }
0x1706   :  { %v3649_v17 = vadd.f32 %v4898_v61, %v4863_v39  ;;  %v5194_v39 = vld [vmem:[%s6790_s4 + $0x40] sm:$0xff] }
0x1707   :  { %v3643_v46 = vpop.f32.mrf.mxu0  ;;  %v5198_v61 = vld [vmem:[%s6790_s4 + $0x20] sm:$0xff] }
0x1708   :  { %5090 = vtanh.f32 %v3649_v17  ;;  %v3644_v47 = vadd.f32 %v3643_v46, %v3568_v49  ;;  %v5197_v49 = vld [vmem:[%s6790_s4 + $0x28] sm:$0xff]  ;;  %v5199_v17 = vld [vmem:[%s6790_s4 + $0x18] sm:$0xff]  ;;  %v5200_v46 = vld [vmem:[%s6790_s4 + $0x10] sm:$0xff] }
0x170a   :  { %5092 = vtanh.f32 %v3644_v47  ;;  %v5201_v47 = vld [vmem:[%s6790_s4 + $0x8] sm:$0xff] }
0x1715   :  { %v5091_v19 = vpop.eup %5090 }
0x1716   :  { %v3659_v24 = vmul.f32 %v5091_v19, %v3657_v14 }
0x1717   :  { %v5093_v26 = vpop.eup %5092 }
0x1718   :  { %v6604_v27 = vadd.f32 %v3659_v24, %v3655_v23  ;;  %v3658_v55 = vmul.f32 %v5093_v26, %v3656_v25 }
0x171a   :  { %4899 = vmatprep.subr.mxu1 %v6604_v27  ;;  %v6608_v37 = vadd.f32 %v3658_v55, %v3654_v54 }
0x171b   :  { %4900 = vmatpush3.msra.mxu1 %v6604_v27 }
0x171c   :  { %4901 = vmatprep.subr.mxu1 %v6608_v37 }
0x171d   :  { %4902 = vmatpush3.msra.mxu1 %v6608_v37 }
0x171e   :  { %4904 = vmatmul.mubr.msk.f32.vlgmr.msra.gmra.mxu1 %vm35_vm0, %v6525_v42  ;;  %4283 = vmatprep.subr.msk.mxu1 %vm158_vm1, %v6532_v43  ;;  %v5172_v42 = vld [vmem:[%s6790_s4 + $0xf0] sm:$0xff]  ;;  %v5173_v43 = vld [vmem:[%s6790_s4 + $0xe8] sm:$0xff] }
0x171f   :  { %4284 = vmatpush1.msk.msra.mxu1 %vm158_vm1, %v6199_v21  ;;  %3813 = vmatprep.mubr.f32.mxu1 %v6870_v32  ;;  %v4278_v21 = vld [vmem:[%s6792_s0 + $0x78] sm:$0xff] }
0x1720   :  { %3826 = vmatprep.subr.mxu1 %v5171_v40 }
0x1722   :  { %4285 = vmatmul.mubr.msk.f32.vlgmr.msra.gmra.mxu1 %vm151_vm2, %v4277_v63 }
0x1723   :  { %3827 = vmatpush1.msra.mxu1 %v5172_v42  ;;  %3819 = vmatprep.mubr.f32.mxu1 %v6870_v32 }
0x1724   :  { %3828 = vmatprep.subr.mxu1 %v5173_v43 }
0x1725   :  { %3829 = vmatpush1.msra.mxu1 %v5174_v62 }
0x1726   :  { %3830 = vmatprep.subr.mxu1 %v5175_v53  ;;  %4286 = vmatmul.mubr.msk.f32.gmra.mxu1 %vm151_vm2, %v4278_v21 }
0x1727   :  { %3831 = vmatpush1.msra.mxu1 %v5176_v35  ;;  %3890 = vmatprep.mubr.f32.mxu1 %v6870_v32 }
0x1728   :  { %3832 = vmatprep.subr.mxu1 %v5177_v56 }
0x1729   :  { %3833 = vmatpush1.msra.mxu1 %v5178_v0 }
0x172a   :  { %3834 = vmatprep.subr.mxu1 %v5179_v33 }
0x172b   :  { %3835 = vmatpush1.msra.mxu1 %v5180_v57 }
0x172c   :  { %3836 = vmatprep.subr.mxu1 %v5181_v58  ;;  %v4279_v58 = vld [vmem:[%s6795_s1 + $0x70] sm:$0xff] }
0x172d   :  { %3837 = vmatpush1.msra.mxu1 %v5182_v31  ;;  %v4280_v31 = vld [vmem:[%s6795_s1 + $0x78] sm:$0xff] }
0x172e   :  { %3838 = vmatprep.subr.mxu1 %v5183_v28 }
0x172f   :  { %3839 = vmatpush1.msra.mxu1 %v5184_v34 }
0x1730   :  { %3840 = vmatprep.subr.mxu1 %v5185_v59 }
0x1731   :  { %3841 = vmatpush1.msra.mxu1 %v5186_v29 }
0x1732   :  { %3842 = vmatprep.subr.mxu1 %v5187_v1 }
0x1733   :  { %3843 = vmatpush1.msra.mxu1 %v5188_v41 }
0x1734   :  { %3844 = vmatprep.subr.mxu1 %v5189_v3 }
0x1735   :  { %3845 = vmatpush1.msra.mxu1 %v5190_v4 }
0x1736   :  { %3846 = vmatprep.subr.mxu1 %v5191_v2 }
0x1737   :  { %3847 = vmatpush1.msra.mxu1 %v5192_v5 }
0x1738   :  { %3848 = vmatprep.subr.mxu1 %v5193_v38 }
0x1739   :  { %3849 = vmatpush1.msra.mxu1 %v5194_v39 }
0x173a   :  { %3850 = vmatprep.subr.mxu1 %v5195_v12 }
0x173b   :  { %3851 = vmatpush1.msra.mxu1 %v5196_v11 }
0x173c   :  { %3852 = vmatprep.subr.mxu1 %v5197_v49 }
0x173d   :  { %3853 = vmatpush1.msra.mxu1 %v5198_v61 }
0x173e   :  { %3854 = vmatprep.subr.mxu1 %v5199_v17 }
0x173f   :  { %3855 = vmatpush1.msra.mxu1 %v5200_v46 }
0x1740   :  { %3856 = vmatprep.subr.mxu1 %v5201_v47 }
0x1741   :  { %3857 = vmatpush1.msra.mxu1 %v5202_v18 }
0x17de   :  { %v4905_v50 = vpop.f32.mrf.mxu1 }
0x17e0   :  { %v3734_v14 = vpop.f32.mrf.mxu1 }
0x17e1   :  { %3891 = vmatmul.mubr.f32.vlgmr.msra.gmra.mxu1 %v3734_v14 }
0x17e2   :  { %3896 = vmatprep.mubr.f32.mxu1 %v6870_v32  ;;  %v3815_v19 = vpop.f32.mrf.mxu1 }
0x17e4   :  { %v3817_v23 = vpop.f32.mrf.mxu1 }
0x17e5   :  { %3897 = vmatmul.mubr.f32.gmra.mxu1 %v4905_v50 }
0x17e6   :  { %v6727_v24 = vpop.f32.mrf.mxu1 }
0x17e8   :  { %v6729_v25 = vpop.f32.mrf.mxu1 }
0x18a1   :  { %v3892_v26 = vpop.f32.mrf.mxu1 }
0x18a2   :  { %v3893_v54 = vadd.f32 %v3892_v26, %v3815_v19 }
0x18a3   :  { %v3894_v55 = vpop.f32.mrf.mxu1 }
0x18a4   :  { %v3903_v63 = vsub.f32 0.0, %v3893_v54  ;;  %v3895_v40 = vadd.f32 %v3894_v55, %v3817_v23 }
0x18a6   :  { %v3907_v42 = vmul.f32 1.442695, %v3903_v63  ;;  %v3904_v21 = vsub.f32 0.0, %v3895_v40 }
0x18a8   :  { %5094 = vpow2.f32 %v3907_v42  ;;  %v3909_v43 = vmul.f32 1.442695, %v3904_v21 }
0x18aa   :  { %5096 = vpow2.f32 %v3909_v43 }
0x18b5   :  { %v5095_v62 = vpop.eup %5094 }
0x18b6   :  { %v3915_v53 = vadd.f32 1.0, %v5095_v62 }
0x18b7   :  { %v5097_v32 = vpop.eup %5096 }
0x18b8   :  { %v3916_v35 = vadd.f32 1.0, %v5097_v32  ;;  %5098 = vrcp.f32 %v3915_v53 }
0x18ba   :  { %5100 = vrcp.f32 %v3916_v35 }
0x18c5   :  { %v5099_v56 = vpop.eup %5098 }
0x18c6   :  { %v3927_v57 = vmul.f32 %v5099_v56, %v6608_v37 }
0x18c7   :  { %v5101_v0 = vpop.eup %5100 }
0x18c8   :  { %v3928_v33 = vmul.f32 %v5101_v0, %v6604_v27 }
0x18ca   :  { %4906 = vmatprep.subr.mxu0 %v3928_v33 }
0x18cb   :  { %4907 = vmatpush3.msra.mxu0 %v3928_v33 }
0x18cc   :  { %4908 = vmatprep.subr.mxu0 %v3927_v57 }
0x18cd   :  { %4909 = vmatpush3.msra.mxu0 %v3927_v57 }
0x18ce   :  { %4911 = vmatmul.mubr.msk.f32.vlgmr.msra.gmra.mxu0 %vm35_vm0, %v6231_v45  ;;  %4913 = vmatprep.subr.msk.mxu0 %vm158_vm1, %v6238_v48 }
0x18cf   :  { %4914 = vmatpush3.msk.msra.mxu0 %vm158_vm1, %v6238_v48  ;;  %4915 = vmatprep.mubr.msk.f32.mxu0 %vm151_vm2, %v4279_v58 }
0x18d0   :  { %4918 = vmatprep.subr.mxu0 %v6251_v51 }
0x18d2   :  { %4916 = vmatmul.mubr.msk.f32.vlgmr.msra.gmra.mxu0 %vm151_vm2, %v4280_v31 }
0x18d3   :  { %4919 = vmatpush3.msra.mxu0 %v6251_v51  ;;  %v3898_v51 = vpop.f32.mrf.mxu1 }
0x18d4   :  { %4920 = vmatprep.subr.mxu0 %v6259_v52 }
0x18d5   :  { %4921 = vmatpush3.msra.mxu0 %v6259_v52  ;;  %v3900_v52 = vpop.f32.mrf.mxu1 }
0x18d6   :  { %4922 = vmatprep.subr.mxu0 %v6266_v6 }
0x18d7   :  { %4923 = vmatpush3.msra.mxu0 %v6266_v6  ;;  %v3901_v6 = vadd.f32 %v3900_v52, %v6729_v25 }
0x18d8   :  { %4924 = vmatprep.subr.mxu0 %v6273_v7 }
0x18d9   :  { %4925 = vmatpush3.msra.mxu0 %v6273_v7  ;;  %v3899_v7 = vadd.f32 %v3898_v51, %v6727_v24 }
0x18da   :  { %4926 = vmatprep.subr.mxu0 %v6915_v8 }
0x18db   :  { %4927 = vmatpush3.msra.mxu0 %v6915_v8  ;;  %v3906_v8 = vsub.f32 0.0, %v3901_v6 }
0x18dc   :  { %4928 = vmatprep.subr.mxu0 %v6916_v60 }
0x18dd   :  { %4929 = vmatpush3.msra.mxu0 %v6916_v60  ;;  %v3905_v60 = vsub.f32 0.0, %v3899_v7 }
0x18de   :  { %4930 = vmatprep.subr.mxu0 %v6917_v15 }
0x18df   :  { %4931 = vmatpush3.msra.mxu0 %v6917_v15  ;;  %v3913_v15 = vmul.f32 1.442695, %v3906_v8 }
0x18e0   :  { %4932 = vmatprep.subr.mxu0 %v6918_v30 }
0x18e1   :  { %4933 = vmatpush3.msra.mxu0 %v6918_v30  ;;  %v3911_v30 = vmul.f32 1.442695, %v3905_v60  ;;  %5102 = vpow2.f32 %v3913_v15 }
0x18e2   :  { %4934 = vmatprep.subr.mxu0 %v6919_v13 }
0x18e3   :  { %4935 = vmatpush3.msra.mxu0 %v6919_v13  ;;  %5104 = vpow2.f32 %v3911_v30 }
0x18e4   :  { %4936 = vmatprep.subr.mxu0 %v6920_v36 }
0x18e5   :  { %4937 = vmatpush3.msra.mxu0 %v6920_v36 }
0x18e6   :  { %4938 = vmatprep.subr.mxu0 %v6921_v22 }
0x18e7   :  { %4939 = vmatpush3.msra.mxu0 %v6921_v22 }
0x18e8   :  { %4940 = vmatprep.subr.mxu0 %v6922_v20 }
0x18e9   :  { %4941 = vmatpush3.msra.mxu0 %v6922_v20 }
0x18ea   :  { %4942 = vmatprep.subr.mxu0 %v6923_v9 }
0x18eb   :  { %4943 = vmatpush3.msra.mxu0 %v6923_v9 }
0x18ec   :  { %4944 = vmatprep.subr.mxu0 %v6924_v10 }
0x18ed   :  { %4945 = vmatpush3.msra.mxu0 %v6924_v10 }
0x18ee   :  { %4946 = vmatprep.subr.mxu0 %v6925_v16  ;;  %v5103_v13 = vpop.eup %5102 }
0x18ef   :  { %4947 = vmatpush3.msra.mxu0 %v6925_v16  ;;  %v3918_v20 = vadd.f32 1.0, %v5103_v13 }
0x18f0   :  { %4948 = vmatprep.subr.mxu0 %v6926_v44  ;;  %v5105_v36 = vpop.eup %5104 }
0x18f1   :  { %4949 = vmatpush3.msra.mxu0 %v6926_v44  ;;  %v3917_v9 = vadd.f32 1.0, %v5105_v36  ;;  %5106 = vrcp.f32 %v3918_v20 }
0x18f3   :  { %5108 = vrcp.f32 %v3917_v9 }
0x18fe   :  { %v5107_v59 = vpop.eup %5106 }
0x18ff   :  { %v4165_v1 = vsub.f32 1.0, %v5107_v59  ;;  %v4163_v3 = vmul.f32 %v5107_v59, %v6604_v27 }
0x1900   :  { %v5109_v29 = vpop.eup %5108 }
0x1901   :  { %v4164_v2 = vsub.f32 1.0, %v5109_v29  ;;  %v4162_v39 = vmul.f32 %v5109_v29, %v6608_v37 }
0x198e   :  { %v4912_v45 = vpop.f32.mrf.mxu0 }
0x1990   :  { %v3995_v48 = vpop.f32.mrf.mxu0 }
0x1991   :  { %4950 = vmatprep.mubr.f32.mxu0 %v3995_v48 }
0x1992   :  { %4951 = vmatmul.mubr.f32.vlgmr.msra.gmra.mxu0 %v4912_v45  ;;  %v4917_v22 = vpop.f32.mrf.mxu0 }
0x1994   :  { %v4076_v10 = vpop.f32.mrf.mxu0 }
0x1a52   :  { %v4952_v16 = vpop.f32.mrf.mxu0 }
0x1a53   :  { %v4157_v44 = vadd.f32 %v4952_v16, %v4917_v22 }
0x1a54   :  { %v4151_v28 = vpop.f32.mrf.mxu0 }
0x1a55   :  { %5110 = vtanh.f32 %v4157_v44  ;;  %v4152_v34 = vadd.f32 %v4151_v28, %v4076_v10 }
0x1a57   :  { %5112 = vtanh.f32 %v4152_v34 }
0x1a62   :  { %v5111_v41 = vpop.eup %5110 }
0x1a63   :  { %v4167_v4 = vmul.f32 %v5111_v41, %v4165_v1 }
0x1a64   :  { %v5113_v5 = vpop.eup %5112 }
0x1a65   :  { %v4169_v38 = vadd.f32 %v4167_v4, %v4163_v3  ;;  %v4166_v12 = vmul.f32 %v5113_v5, %v4164_v2 }
0x1a67   :  { %4171 = vst [vmem:[%s6797_s8 + $0x8] sm:$0xff] %v4169_v38  ;;  %v4168_v11 = vadd.f32 %v4166_v12, %v4162_v39 }
0x1a69   :  { %4170 = vst [vmem:[%s6797_s8] sm:$0xff] %v4168_v11 }

</bundles_post_ra>
